<compile_context>
chip_gen: v7x
topology: tpu7x:2x2x1
jax: 0.10.0
libtpu: 0.0.40
codegen_flags: <defaults>
</compile_context>

<pallas_src>
import jax
import jax.numpy as jnp
import numpy as np
from jax.experimental import pallas as pl
from jax.experimental.pallas import tpu as pltpu


# ------------------------------- kernel ----------------------------------------

def _pointnet_layer_fused(x, pos, adj, Wcp, Wsq, bcat):
    """One PyG PointNetConv layer, batched over graphs (all f32, MXU matmuls).
       Lin1 is linear, so its pos part splits: with c = x@W1x + pos@W1p + b1 and
       p = pos@W1p, the message pre-activation is c_j - p_i.  The pre-stacked
       Wcp = [[W1x, 0], [W1p, W1p]] yields [c - b1 | p] in one MXU push; b2 is
       uniform over edges so it is added after the max-aggregation."""
    Bt, N, Fin = x.shape
    P = pos.shape[-1]
    H = Wsq.shape[-1]

    W2, Wg1, Wg2 = Wsq[0:H], Wsq[H:2 * H], Wsq[2 * H:3 * H]
    b1, b2, bg1, bg2 = bcat[0:1], bcat[1:2], bcat[2:3], bcat[3:4]

    xp = jnp.concatenate([x, pos], axis=-1).reshape(Bt * N, Fin + P)
    cp = jnp.dot(xp, Wcp, preferred_element_type=jnp.float32)          # (Bt*N, 2H)
    c = (cp[:, 0:H] + b1).reshape(Bt, N, H)                            # c_j (b1 folded)
    p = cp[:, H:2 * H].reshape(Bt, N, H)

    pre = c[:, None, :, :] - p[:, :, None, :]                          # (Bt, N_i, N_j, H)
    hrel = jnp.maximum(pre, 0.0)
    m = jnp.dot(hrel.reshape(Bt * N * N, H), W2,
                preferred_element_type=jnp.float32).reshape(Bt, N, N, H)
    masked = jnp.where(adj[:, :, :, None] > 0.0, m, jnp.float32(-1e30))
    agg = jnp.max(masked, axis=2) + b2                                 # (Bt, N, H)

    g = jnp.maximum(jnp.dot(agg.reshape(Bt * N, H), Wg1,
                            preferred_element_type=jnp.float32) + bg1, 0.0)
    out = jnp.dot(g, Wg2, preferred_element_type=jnp.float32) + bg2
    return out.reshape(Bt, N, H)


def roiaware_mp_kernel(x_ref, pos_ref, adj_ref,
                       l1_Wcp, l1_Wsq, l1_b,
                       l2_Wcp, l2_Wsq, l2_b,
                       out_ref):
    x = x_ref[...]          # (Bt, N, F)
    pos = pos_ref[...]      # (Bt, N, P)
    adj = adj_ref[...]      # (Bt, N, N)

    h = _pointnet_layer_fused(x, pos, adj, l1_Wcp[...], l1_Wsq[...], l1_b[...])
    h = _pointnet_layer_fused(h, pos, adj, l2_Wcp[...], l2_Wsq[...], l2_b[...])

    out_ref[...] = h        # (Bt, N, H) per-node embeddings


# ------------------------------- wrapper ----------------------------------------

def pack_params(params):
    """Pack the 18 torch-style params (2 layers x 9) into 6 kernel arrays."""

    def pack_layer(W1x, W1p, b1, W2, b2, Wg1, bg1, Wg2, bg2):
        Fin, H = W1x.shape
        Wcp = jnp.concatenate(
            [jnp.concatenate([W1x, jnp.zeros((Fin, H), W1x.dtype)], axis=1),
             jnp.concatenate([W1p, W1p], axis=1)], axis=0)             # (Fin+P, 2H)
        Wsq = jnp.concatenate([W2, Wg1, Wg2], axis=0)                  # (3H, H)
        bcat = jnp.concatenate([b1, b2, bg1, bg2], axis=0)             # (4, H)
        return Wcp, Wsq, bcat

    return list(pack_layer(*params[0:9])) + list(pack_layer(*params[9:18]))


def roiaware_mp_pallas(x, pos, adj, params, block_b=None):
    B, N, F = x.shape
    P = pos.shape[-1]
    H = params[3].shape[1]
    if block_b is None:
        block_b = B if B <= 8 else 8          # whole batch per step when small
    nb = (B + block_b - 1) // block_b
    Bp = nb * block_b
    if Bp != B:                               # pad batch (padded graphs get self loops)
        pad = Bp - B
        x = jnp.concatenate([x, jnp.zeros((pad, N, F), x.dtype)], axis=0)
        pos = jnp.concatenate([pos, jnp.zeros((pad, N, P), pos.dtype)], axis=0)
        eye = jnp.broadcast_to(jnp.eye(N, dtype=adj.dtype), (pad, N, N))
        adj = jnp.concatenate([adj, eye], axis=0)

    packed = pack_params(params)

    def data_spec(shape):
        nd = len(shape)
        return pl.BlockSpec((block_b,) + tuple(shape[1:]),
                            lambda b, nd=nd: (b,) + (0,) * (nd - 1))

    def weight_spec(arr):
        nd = arr.ndim
        return pl.BlockSpec(arr.shape, lambda b, nd=nd: (0,) * nd)

    in_specs = [data_spec(x.shape), data_spec(pos.shape), data_spec(adj.shape)]
    in_specs += [weight_spec(w) for w in packed]

    out = pl.pallas_call(
        roiaware_mp_kernel,
        out_shape=jax.ShapeDtypeStruct((Bp, N, H), jnp.float32),
        grid_spec=pltpu.PrefetchScalarGridSpec(
            num_scalar_prefetch=0,
            grid=(nb,),
            in_specs=in_specs,
            out_specs=pl.BlockSpec((block_b, N, H), lambda b: (b, 0, 0)),
        ),
        compiler_params=pltpu.CompilerParams(dimension_semantics=("parallel",)),
    )(x, pos, adj, *packed)
    return out[:B]


# --------------------------- parameter initialization ---------------------------

def _linear_params(key, in_dim, out_dim):
    kw, kb = jax.random.split(key)
    bound = 1.0 / np.sqrt(in_dim)
    W = jax.random.uniform(kw, (in_dim, out_dim), jnp.float32, -bound, bound)
    b = jax.random.uniform(kb, (1, out_dim), jnp.float32, -bound, bound)
    return W, b


def init_params(key, in_dim, num_nodes, hid_dim, num_layers=2):
    """9 params per PointNetConv layer: W1x, W1p, b1 (local Lin1, split on x/pos),
       W2, b2 (local Lin2), Wg1, bg1, Wg2, bg2 (global net)."""
    params = []
    dims = [in_dim] + [hid_dim] * (num_layers - 1)
    keys = jax.random.split(key, 4 * num_layers)
    for l, d in enumerate(dims):
        k0, k1, k2, k3 = keys[4 * l: 4 * l + 4]
        W1, b1 = _linear_params(k0, d + num_nodes, hid_dim)
        W2, b2 = _linear_params(k1, hid_dim, hid_dim)
        Wg1, bg1 = _linear_params(k2, hid_dim, hid_dim)
        Wg2, bg2 = _linear_params(k3, hid_dim, hid_dim)
        params += [W1[:d], W1[d:], b1, W2, b2, Wg1, bg1, Wg2, bg2]
    return params


# ------------------------------- pure-JAX reference ------------------------------

def _ref_pointnet_layer(x, pos, adj, W1x, W1p, b1, W2, b2, Wg1, bg1, Wg2, bg2):
    N = x.shape[0]
    H = W2.shape[1]
    a = jnp.dot(x, W1x)
    p = jnp.dot(pos, W1p)
    pre = a[None, :, :] + p[None, :, :] - p[:, None, :] + b1[None, :, :]   # (N_i, N_j, H)
    h = jnp.maximum(pre, 0.0)
    m = jnp.dot(h.reshape(N * N, H), W2).reshape(N, N, H) + b2[None, :, :]
    masked = jnp.where(adj[:, :, None] > 0.0, m, jnp.float32(-1e30))
    agg = jnp.max(masked, axis=1)
    g = jnp.maximum(jnp.dot(agg, Wg1) + bg1, 0.0)
    return jnp.dot(g, Wg2) + bg2


def roiaware_mp_reference(x, pos, adj, params):
    def per_graph(xb, posb, adjb):
        h = _ref_pointnet_layer(xb, posb, adjb, *params[0:9])
        h = _ref_pointnet_layer(h, posb, adjb, *params[9:18])
        return h

    return jax.vmap(per_graph)(x, pos, adj)


if __name__ == "__main__":
    B, N, F, H = 2, 16, 4, 32     # batch of graphs, num_nodes, in_dim, hid_dim
    key = jax.random.PRNGKey(0)
    kx, ka, kp = jax.random.split(key, 3)

    x = jax.random.normal(kx, (B, N, F), jnp.float32)
    pos = jnp.tile(jnp.eye(N, dtype=jnp.float32)[None], (B, 1, 1))   # one-hot ROI positions
    rand = jax.random.bernoulli(ka, 0.3, (B, N, N))
    adj = (rand | jnp.swapaxes(rand, 1, 2) | jnp.eye(N, dtype=bool)[None]).astype(jnp.float32)

    params = init_params(kp, F, N, H, num_layers=2)

    out = jax.block_until_ready(roiaware_mp_pallas(x, pos, adj, params))
    ref = jax.block_until_ready(roiaware_mp_reference(x, pos, adj, params))

    assert out.shape == (B, N, H)
    np.testing.assert_allclose(np.asarray(out), np.asarray(ref), rtol=1e-4, atol=1e-4)
    print("KERNEL_OK")
</pallas_src>

<mosaic_0001>
module attributes {stable_mosaic.version = 11 : i64} {
  func.func @roiaware_mp_kernel(%arg0: i32, %arg1: memref<2x16x4xf32, #tpu.memory_space<vmem>>, %arg2: memref<2x16x16xf32, #tpu.memory_space<vmem>>, %arg3: memref<2x16x16xf32, #tpu.memory_space<vmem>>, %arg4: memref<20x64xf32, #tpu.memory_space<vmem>>, %arg5: memref<96x32xf32, #tpu.memory_space<vmem>>, %arg6: memref<4x32xf32, #tpu.memory_space<vmem>>, %arg7: memref<48x64xf32, #tpu.memory_space<vmem>>, %arg8: memref<96x32xf32, #tpu.memory_space<vmem>>, %arg9: memref<4x32xf32, #tpu.memory_space<vmem>>, %arg10: memref<2x16x32xf32, #tpu.memory_space<vmem>>) attributes {dimension_semantics = [#tpu.dimension_semantics<parallel>], iteration_bounds = array<i64: 1>, scalar_prefetch = 0 : i64, scratch_operands = 0 : i64, tpu.core_type = #tpu.core_type<tc>, window_params = [{transform_indices = @transform_0, window_bounds = array<i64: 2, 16, 4>}, {transform_indices = @transform_1, window_bounds = array<i64: 2, 16, 16>}, {transform_indices = @transform_2, window_bounds = array<i64: 2, 16, 16>}, {pipeline_mode = #tpu.pipeline_mode<synchronous>, transform_indices = @transform_3, window_bounds = array<i64: 20, 64>}, {pipeline_mode = #tpu.pipeline_mode<synchronous>, transform_indices = @transform_4, window_bounds = array<i64: 96, 32>}, {pipeline_mode = #tpu.pipeline_mode<synchronous>, transform_indices = @transform_5, window_bounds = array<i64: 4, 32>}, {pipeline_mode = #tpu.pipeline_mode<synchronous>, transform_indices = @transform_6, window_bounds = array<i64: 48, 64>}, {pipeline_mode = #tpu.pipeline_mode<synchronous>, transform_indices = @transform_7, window_bounds = array<i64: 96, 32>}, {pipeline_mode = #tpu.pipeline_mode<synchronous>, transform_indices = @transform_8, window_bounds = array<i64: 4, 32>}, {transform_indices = @transform_9, window_bounds = array<i64: 2, 16, 32>}]} {
    %c0 = arith.constant 0 : index
    %c0_0 = arith.constant 0 : index
    %c0_1 = arith.constant 0 : index
    %0 = vector.load %arg1[%c0, %c0_0, %c0_1] : memref<2x16x4xf32, #tpu.memory_space<vmem>>, vector<2x16x4xf32>
    %c0_2 = arith.constant 0 : index
    %c0_3 = arith.constant 0 : index
    %c0_4 = arith.constant 0 : index
    %1 = vector.load %arg2[%c0_2, %c0_3, %c0_4] : memref<2x16x16xf32, #tpu.memory_space<vmem>>, vector<2x16x16xf32>
    %c0_5 = arith.constant 0 : index
    %c0_6 = arith.constant 0 : index
    %c0_7 = arith.constant 0 : index
    %2 = vector.load %arg3[%c0_5, %c0_6, %c0_7] : memref<2x16x16xf32, #tpu.memory_space<vmem>>, vector<2x16x16xf32>
    %c0_8 = arith.constant 0 : index
    %c0_9 = arith.constant 0 : index
    %3 = vector.load %arg4[%c0_8, %c0_9] : memref<20x64xf32, #tpu.memory_space<vmem>>, vector<20x64xf32>
    %c0_10 = arith.constant 0 : index
    %c0_11 = arith.constant 0 : index
    %4 = vector.load %arg5[%c0_10, %c0_11] : memref<96x32xf32, #tpu.memory_space<vmem>>, vector<96x32xf32>
    %c0_12 = arith.constant 0 : index
    %c0_13 = arith.constant 0 : index
    %5 = vector.load %arg6[%c0_12, %c0_13] : memref<4x32xf32, #tpu.memory_space<vmem>>, vector<4x32xf32>
    %6 = vector.extract_strided_slice %4 {offsets = [0, 0], sizes = [32, 32], strides = [1, 1]} : vector<96x32xf32> to vector<32x32xf32>
    %7 = vector.extract_strided_slice %4 {offsets = [32, 0], sizes = [32, 32], strides = [1, 1]} : vector<96x32xf32> to vector<32x32xf32>
    %8 = vector.extract_strided_slice %4 {offsets = [64, 0], sizes = [32, 32], strides = [1, 1]} : vector<96x32xf32> to vector<32x32xf32>
    %9 = vector.extract_strided_slice %5 {offsets = [0, 0], sizes = [1, 32], strides = [1, 1]} : vector<4x32xf32> to vector<1x32xf32>
    %10 = vector.extract_strided_slice %5 {offsets = [1, 0], sizes = [1, 32], strides = [1, 1]} : vector<4x32xf32> to vector<1x32xf32>
    %11 = vector.extract_strided_slice %5 {offsets = [2, 0], sizes = [1, 32], strides = [1, 1]} : vector<4x32xf32> to vector<1x32xf32>
    %12 = vector.extract_strided_slice %5 {offsets = [3, 0], sizes = [1, 32], strides = [1, 1]} : vector<4x32xf32> to vector<1x32xf32>
    %13 = tpu.concatenate %0, %1 in 2 : vector<2x16x4xf32>, vector<2x16x16xf32> -> vector<2x16x20xf32>
    %14 = vector.shape_cast %13 : vector<2x16x20xf32> to vector<32x20xf32>
    %cst = arith.constant dense<0.000000e+00> : vector<32x64xf32>
    %15 = tpu.matmul %14, %3, %cst {dimension_numbers = #tpu.dot_dimension_numbers<[1], [0], [0], [1], [0, 0, 1, 1], [], []>} : vector<32x20xf32>, vector<20x64xf32>, vector<32x64xf32> -> vector<32x64xf32>
    %16 = vector.extract_strided_slice %15 {offsets = [0, 0], sizes = [32, 32], strides = [1, 1]} : vector<32x64xf32> to vector<32x32xf32>
    %17 = vector.broadcast %9 : vector<1x32xf32> to vector<32x32xf32>
    %18 = arith.addf %16, %17 : vector<32x32xf32>
    %19 = vector.shape_cast %18 : vector<32x32xf32> to vector<2x16x32xf32>
    %20 = vector.extract_strided_slice %15 {offsets = [0, 32], sizes = [32, 32], strides = [1, 1]} : vector<32x64xf32> to vector<32x32xf32>
    %21 = vector.shape_cast %20 : vector<32x32xf32> to vector<2x16x32xf32>
    %22 = vector.shape_cast %19 : vector<2x16x32xf32> to vector<2x1x16x32xf32>
    %23 = vector.shape_cast %21 : vector<2x16x32xf32> to vector<2x16x1x32xf32>
    %24 = vector.broadcast %22 : vector<2x1x16x32xf32> to vector<2x16x16x32xf32>
    %25 = vector.broadcast %23 : vector<2x16x1x32xf32> to vector<2x16x16x32xf32>
    %26 = arith.subf %24, %25 : vector<2x16x16x32xf32>
    %cst_14 = arith.constant 0.000000e+00 : f32
    %27 = vector.broadcast %cst_14 : f32 to vector<2x16x16x32xf32>
    %28 = arith.maximumf %26, %27 : vector<2x16x16x32xf32>
    %29 = vector.shape_cast %28 : vector<2x16x16x32xf32> to vector<512x32xf32>
    %cst_15 = arith.constant dense<0.000000e+00> : vector<512x32xf32>
    %30 = tpu.matmul %29, %6, %cst_15 {dimension_numbers = #tpu.dot_dimension_numbers<[1], [0], [0], [1], [0, 0, 1, 1], [], []>} : vector<512x32xf32>, vector<32x32xf32>, vector<512x32xf32> -> vector<512x32xf32>
    %31 = vector.shape_cast %30 : vector<512x32xf32> to vector<2x16x16x32xf32>
    %32 = vector.shape_cast %2 : vector<2x16x16xf32> to vector<2x16x16x1xf32>
    %cst_16 = arith.constant 0.000000e+00 : f32
    %33 = vector.broadcast %cst_16 : f32 to vector<2x16x16x1xf32>
    %34 = arith.cmpf ogt, %32, %33 : vector<2x16x16x1xf32>
    %cst_17 = arith.constant -1.000000e+30 : f32
    %35 = vector.shape_cast %34 : vector<2x16x16x1xi1> to vector<2x16x16x1xi1>
    %36 = vector.broadcast %35 : vector<2x16x16x1xi1> to vector<2x16x16x32xi1>
    %37 = vector.broadcast %cst_17 : f32 to vector<2x16x16x32xf32>
    %38 = arith.select %36, %31, %37 : vector<2x16x16x32xi1>, vector<2x16x16x32xf32>
    %cst_18 = arith.constant dense<0xFF800000> : vector<2x16x32xf32>
    %39 = vector.multi_reduction <maximumf>, %38, %cst_18 [2] : vector<2x16x16x32xf32> to vector<2x16x32xf32>
    %40 = vector.shape_cast %10 : vector<1x32xf32> to vector<1x1x32xf32>
    %41 = vector.broadcast %40 : vector<1x1x32xf32> to vector<2x16x32xf32>
    %42 = arith.addf %39, %41 : vector<2x16x32xf32>
    %43 = vector.shape_cast %42 : vector<2x16x32xf32> to vector<32x32xf32>
    %cst_19 = arith.constant dense<0.000000e+00> : vector<32x32xf32>
    %44 = tpu.matmul %43, %7, %cst_19 {dimension_numbers = #tpu.dot_dimension_numbers<[1], [0], [0], [1], [0, 0, 1, 1], [], []>} : vector<32x32xf32>, vector<32x32xf32>, vector<32x32xf32> -> vector<32x32xf32>
    %45 = vector.broadcast %11 : vector<1x32xf32> to vector<32x32xf32>
    %46 = arith.addf %44, %45 : vector<32x32xf32>
    %cst_20 = arith.constant 0.000000e+00 : f32
    %47 = vector.broadcast %cst_20 : f32 to vector<32x32xf32>
    %48 = arith.maximumf %46, %47 : vector<32x32xf32>
    %cst_21 = arith.constant dense<0.000000e+00> : vector<32x32xf32>
    %49 = tpu.matmul %48, %8, %cst_21 {dimension_numbers = #tpu.dot_dimension_numbers<[1], [0], [0], [1], [0, 0, 1, 1], [], []>} : vector<32x32xf32>, vector<32x32xf32>, vector<32x32xf32> -> vector<32x32xf32>
    %50 = vector.broadcast %12 : vector<1x32xf32> to vector<32x32xf32>
    %51 = arith.addf %49, %50 : vector<32x32xf32>
    %52 = vector.shape_cast %51 : vector<32x32xf32> to vector<2x16x32xf32>
    %c0_22 = arith.constant 0 : index
    %c0_23 = arith.constant 0 : index
    %53 = vector.load %arg7[%c0_22, %c0_23] : memref<48x64xf32, #tpu.memory_space<vmem>>, vector<48x64xf32>
    %c0_24 = arith.constant 0 : index
    %c0_25 = arith.constant 0 : index
    %54 = vector.load %arg8[%c0_24, %c0_25] : memref<96x32xf32, #tpu.memory_space<vmem>>, vector<96x32xf32>
    %c0_26 = arith.constant 0 : index
    %c0_27 = arith.constant 0 : index
    %55 = vector.load %arg9[%c0_26, %c0_27] : memref<4x32xf32, #tpu.memory_space<vmem>>, vector<4x32xf32>
    %56 = vector.extract_strided_slice %54 {offsets = [0, 0], sizes = [32, 32], strides = [1, 1]} : vector<96x32xf32> to vector<32x32xf32>
    %57 = vector.extract_strided_slice %54 {offsets = [32, 0], sizes = [32, 32], strides = [1, 1]} : vector<96x32xf32> to vector<32x32xf32>
    %58 = vector.extract_strided_slice %54 {offsets = [64, 0], sizes = [32, 32], strides = [1, 1]} : vector<96x32xf32> to vector<32x32xf32>
    %59 = vector.extract_strided_slice %55 {offsets = [0, 0], sizes = [1, 32], strides = [1, 1]} : vector<4x32xf32> to vector<1x32xf32>
    %60 = vector.extract_strided_slice %55 {offsets = [1, 0], sizes = [1, 32], strides = [1, 1]} : vector<4x32xf32> to vector<1x32xf32>
    %61 = vector.extract_strided_slice %55 {offsets = [2, 0], sizes = [1, 32], strides = [1, 1]} : vector<4x32xf32> to vector<1x32xf32>
    %62 = vector.extract_strided_slice %55 {offsets = [3, 0], sizes = [1, 32], strides = [1, 1]} : vector<4x32xf32> to vector<1x32xf32>
    %63 = tpu.concatenate %52, %1 in 2 : vector<2x16x32xf32>, vector<2x16x16xf32> -> vector<2x16x48xf32>
    %64 = vector.shape_cast %63 : vector<2x16x48xf32> to vector<32x48xf32>
    %cst_28 = arith.constant dense<0.000000e+00> : vector<32x64xf32>
    %65 = tpu.matmul %64, %53, %cst_28 {dimension_numbers = #tpu.dot_dimension_numbers<[1], [0], [0], [1], [0, 0, 1, 1], [], []>} : vector<32x48xf32>, vector<48x64xf32>, vector<32x64xf32> -> vector<32x64xf32>
    %66 = vector.extract_strided_slice %65 {offsets = [0, 0], sizes = [32, 32], strides = [1, 1]} : vector<32x64xf32> to vector<32x32xf32>
    %67 = vector.broadcast %59 : vector<1x32xf32> to vector<32x32xf32>
    %68 = arith.addf %66, %67 : vector<32x32xf32>
    %69 = vector.shape_cast %68 : vector<32x32xf32> to vector<2x16x32xf32>
    %70 = vector.extract_strided_slice %65 {offsets = [0, 32], sizes = [32, 32], strides = [1, 1]} : vector<32x64xf32> to vector<32x32xf32>
    %71 = vector.shape_cast %70 : vector<32x32xf32> to vector<2x16x32xf32>
    %72 = vector.shape_cast %69 : vector<2x16x32xf32> to vector<2x1x16x32xf32>
    %73 = vector.shape_cast %71 : vector<2x16x32xf32> to vector<2x16x1x32xf32>
    %74 = vector.broadcast %72 : vector<2x1x16x32xf32> to vector<2x16x16x32xf32>
    %75 = vector.broadcast %73 : vector<2x16x1x32xf32> to vector<2x16x16x32xf32>
    %76 = arith.subf %74, %75 : vector<2x16x16x32xf32>
    %cst_29 = arith.constant 0.000000e+00 : f32
    %77 = vector.broadcast %cst_29 : f32 to vector<2x16x16x32xf32>
    %78 = arith.maximumf %76, %77 : vector<2x16x16x32xf32>
    %79 = vector.shape_cast %78 : vector<2x16x16x32xf32> to vector<512x32xf32>
    %cst_30 = arith.constant dense<0.000000e+00> : vector<512x32xf32>
    %80 = tpu.matmul %79, %56, %cst_30 {dimension_numbers = #tpu.dot_dimension_numbers<[1], [0], [0], [1], [0, 0, 1, 1], [], []>} : vector<512x32xf32>, vector<32x32xf32>, vector<512x32xf32> -> vector<512x32xf32>
    %81 = vector.shape_cast %80 : vector<512x32xf32> to vector<2x16x16x32xf32>
    %82 = vector.shape_cast %2 : vector<2x16x16xf32> to vector<2x16x16x1xf32>
    %cst_31 = arith.constant 0.000000e+00 : f32
    %83 = vector.broadcast %cst_31 : f32 to vector<2x16x16x1xf32>
    %84 = arith.cmpf ogt, %82, %83 : vector<2x16x16x1xf32>
    %cst_32 = arith.constant -1.000000e+30 : f32
    %85 = vector.shape_cast %84 : vector<2x16x16x1xi1> to vector<2x16x16x1xi1>
    %86 = vector.broadcast %85 : vector<2x16x16x1xi1> to vector<2x16x16x32xi1>
    %87 = vector.broadcast %cst_32 : f32 to vector<2x16x16x32xf32>
    %88 = arith.select %86, %81, %87 : vector<2x16x16x32xi1>, vector<2x16x16x32xf32>
    %cst_33 = arith.constant dense<0xFF800000> : vector<2x16x32xf32>
    %89 = vector.multi_reduction <maximumf>, %88, %cst_33 [2] : vector<2x16x16x32xf32> to vector<2x16x32xf32>
    %90 = vector.shape_cast %60 : vector<1x32xf32> to vector<1x1x32xf32>
    %91 = vector.broadcast %90 : vector<1x1x32xf32> to vector<2x16x32xf32>
    %92 = arith.addf %89, %91 : vector<2x16x32xf32>
    %93 = vector.shape_cast %92 : vector<2x16x32xf32> to vector<32x32xf32>
    %cst_34 = arith.constant dense<0.000000e+00> : vector<32x32xf32>
    %94 = tpu.matmul %93, %57, %cst_34 {dimension_numbers = #tpu.dot_dimension_numbers<[1], [0], [0], [1], [0, 0, 1, 1], [], []>} : vector<32x32xf32>, vector<32x32xf32>, vector<32x32xf32> -> vector<32x32xf32>
    %95 = vector.broadcast %61 : vector<1x32xf32> to vector<32x32xf32>
    %96 = arith.addf %94, %95 : vector<32x32xf32>
    %cst_35 = arith.constant 0.000000e+00 : f32
    %97 = vector.broadcast %cst_35 : f32 to vector<32x32xf32>
    %98 = arith.maximumf %96, %97 : vector<32x32xf32>
    %cst_36 = arith.constant dense<0.000000e+00> : vector<32x32xf32>
    %99 = tpu.matmul %98, %58, %cst_36 {dimension_numbers = #tpu.dot_dimension_numbers<[1], [0], [0], [1], [0, 0, 1, 1], [], []>} : vector<32x32xf32>, vector<32x32xf32>, vector<32x32xf32> -> vector<32x32xf32>
    %100 = vector.broadcast %62 : vector<1x32xf32> to vector<32x32xf32>
    %101 = arith.addf %99, %100 : vector<32x32xf32>
    %102 = vector.shape_cast %101 : vector<32x32xf32> to vector<2x16x32xf32>
    %c0_37 = arith.constant 0 : index
    %c0_38 = arith.constant 0 : index
    %c0_39 = arith.constant 0 : index
    %103 = vector.load %arg10[%c0_37, %c0_38, %c0_39] : memref<2x16x32xf32, #tpu.memory_space<vmem>>, vector<2x16x32xf32>
    tpu.vector_store %arg10[%c0_37, %c0_38, %c0_39], %102 {strides = array<i32>} : memref<2x16x32xf32, #tpu.memory_space<vmem>>, vector<2x16x32xf32>,
    return
  }
  func.func @transform_0(%arg0: i32) -> (i32, i32, i32) {
    %c0_i32 = arith.constant 0 : i32
    %c0_i32_0 = arith.constant 0 : i32
    %c0_i32_1 = arith.constant 0 : i32
    return %arg0, %c0_i32, %c0_i32_0 : i32, i32, i32
  }
  func.func @transform_1(%arg0: i32) -> (i32, i32, i32) {
    %c0_i32 = arith.constant 0 : i32
    %c0_i32_0 = arith.constant 0 : i32
    %c0_i32_1 = arith.constant 0 : i32
    return %arg0, %c0_i32, %c0_i32_0 : i32, i32, i32
  }
  func.func @transform_2(%arg0: i32) -> (i32, i32, i32) {
    %c0_i32 = arith.constant 0 : i32
    %c0_i32_0 = arith.constant 0 : i32
    %c0_i32_1 = arith.constant 0 : i32
    return %arg0, %c0_i32, %c0_i32_0 : i32, i32, i32
  }
  func.func @transform_3(%arg0: i32) -> (i32, i32) {
    %c0_i32 = arith.constant 0 : i32
    %c0_i32_0 = arith.constant 0 : i32
    %c0_i32_1 = arith.constant 0 : i32
    return %c0_i32, %c0_i32_0 : i32, i32
  }
  func.func @transform_4(%arg0: i32) -> (i32, i32) {
    %c0_i32 = arith.constant 0 : i32
    %c0_i32_0 = arith.constant 0 : i32
    %c0_i32_1 = arith.constant 0 : i32
    return %c0_i32, %c0_i32_0 : i32, i32
  }
  func.func @transform_5(%arg0: i32) -> (i32, i32) {
    %c0_i32 = arith.constant 0 : i32
    %c0_i32_0 = arith.constant 0 : i32
    %c0_i32_1 = arith.constant 0 : i32
    return %c0_i32, %c0_i32_0 : i32, i32
  }
  func.func @transform_6(%arg0: i32) -> (i32, i32) {
    %c0_i32 = arith.constant 0 : i32
    %c0_i32_0 = arith.constant 0 : i32
    %c0_i32_1 = arith.constant 0 : i32
    return %c0_i32, %c0_i32_0 : i32, i32
  }
  func.func @transform_7(%arg0: i32) -> (i32, i32) {
    %c0_i32 = arith.constant 0 : i32
    %c0_i32_0 = arith.constant 0 : i32
    %c0_i32_1 = arith.constant 0 : i32
    return %c0_i32, %c0_i32_0 : i32, i32
  }
  func.func @transform_8(%arg0: i32) -> (i32, i32) {
    %c0_i32 = arith.constant 0 : i32
    %c0_i32_0 = arith.constant 0 : i32
    %c0_i32_1 = arith.constant 0 : i32
    return %c0_i32, %c0_i32_0 : i32, i32
  }
  func.func @transform_9(%arg0: i32) -> (i32, i32, i32) {
    %c0_i32 = arith.constant 0 : i32
    %c0_i32_0 = arith.constant 0 : i32
    %c0_i32_1 = arith.constant 0 : i32
    return %arg0, %c0_i32, %c0_i32_0 : i32, i32, i32
  }
}

</mosaic_0001>

<bundles_post_ra>
// kernel: tpu_custom_call.1
= control target key start
LH: loop header
LB: loop body
LE: loop exit
PB: predicated region body
PF: predicated region fallthrough
CT: control target
= control target key end

     0   :  { %s5253_s13 = smov 4   ;;  %s6815_s0 = inlined_call_operand.vmem [shape: f32[2,16,4], index: 0, kind: input, shape index: {}]   ;;  %s6816_s1 = inlined_call_operand.vmem [shape: f32[2,16,16], index: 1, kind: input, shape index: {}]   ;;  %s6817_s2 = inlined_call_operand.vmem [shape: f32[2,16,16], index: 2, kind: input, shape index: {}]   ;;  %s6818_s3 = inlined_call_operand.vmem [shape: f32[20,64], index: 3, kind: input, shape index: {}]   ;;  %s6819_s4 = inlined_call_operand.vmem [shape: f32[96,32], index: 4, kind: input, shape index: {}]   ;;  %s6820_s5 = inlined_call_operand.vmem [shape: f32[4,32], index: 5, kind: input, shape index: {}]   ;;  %s6821_s6 = inlined_call_operand.vmem [shape: f32[48,64], index: 6, kind: input, shape index: {}]   ;;  %s6822_s7 = inlined_call_operand.vmem [shape: f32[96,32], index: 7, kind: input, shape index: {}]   ;;  %s6823_s8 = inlined_call_operand.vmem [shape: f32[4,32], index: 8, kind: input, shape index: {}]   ;;  %s6824_s9 = inlined_call_operand.hbm [shape: f32[2,16,32], index: 9, kind: output, shape index: {}]  }
   0x1   :  { %v37_v0 = vld [vmem:[%s6816_s1] sm:$0xff]  ;;  %v39_v1 = vld [vmem:[%s6816_s1 + $0x10] sm:$0xff]  ;;  %v38_v3 = vld [vmem:[%s6816_s1 + $0x8] sm:$0xff] }
   0x2   :  { %65 = vrot.lane.b32.xlu0 %v37_v0, %s5253_s13  ;;  %69 = vrot.lane.b32.xlu1 %v39_v1, %s5253_s13  ;;  %v45_v2 = vld [vmem:[%s6818_s3] sm:$0xff]  ;;  %v40_v4 = vld [vmem:[%s6816_s1 + $0x18] sm:$0xff] }
   0x3   :  { %v46_v5 = vld [vmem:[%s6818_s3 + $0x8] sm:$0xff] }
   0x4   :  { %v5151_v6 = vpack.c.bf16 %v46_v5, %v45_v2 }
   0x5   :  { %14 = vsyncpa [#allocation3], 0  ;;  %v47_v7 = vld [vmem:[%s6818_s3 + $0x10] sm:$0xf]  ;;  %vm95_vm0 = vcmask 1043456   ;;  %v33_v8 = vld [vmem:[%s6815_s0] sm:$0xff]  ;;  %v184_v25 = vlaneseq }
   0x6   :  { %67 = vrot.lane.b32.xlu0 %v38_v3, %s5253_s13  ;;  %71 = vrot.lane.b32.xlu1 %v40_v4, %s5253_s13  ;;  %vm77_vm1 = vcmask 31744   ;;  %vm82_vm2 = vcmask 162816   ;;  %v35_v12 = vld [vmem:[%s6815_s0 + $0x10] sm:$0xff]  ;;  %v34_v13 = vld [vmem:[%s6815_s0 + $0x8] sm:$0xff]  ;;  %v5254_v23 = vmov 1966171168  }
   0x7   :  { %5152 = vmatprep.subr.bf16.mxu0 %v5151_v6  ;;  %v36_v17 = vld [vmem:[%s6815_s0 + $0x18] sm:$0xff]  ;;  %v48_v20 = vld [vmem:[%s6819_s4] sm:$0xff]  ;;  %v49_v21 = vld [vmem:[%s6819_s4 + $0x8] sm:$0xff]  ;;  %v198_v24 = vunpack.c.l.s4 %v5254_v23  ;;  %v5349_v27 = vshrl.u32 %v184_v25, 7  ;;  %s5255_s19 = smov 96   ;;  %vm744_vm3 = vcmask 261120  }
   0x8   :  { %5154 = vmatpush3.bf16.msra.mxu0 %v5151_v6  ;;  %v5155_v22 = vpack.c.bf16 %v49_v21, %v48_v20  ;;  %v50_v28 = vld [vmem:[%s6819_s4 + $0x10] sm:$0xff]  ;;  %v51_v29 = vld [vmem:[%s6819_s4 + $0x18] sm:$0xff]  ;;  %v60_v41 = vld [vmem:[%s6820_s5] sm:$0xf]  ;;  %vm2291_vm14 = vcmask 1041409  }
   0x9   :  { %4861 = vmatprep.subr.msk.mxu0 %vm95_vm0, %v47_v7  ;;  %v199_v26 = vunpack.c.0.s8 %v198_v24  ;;  %v5159_v31 = vpack.c.bf16 %v51_v29, %v50_v28  ;;  %v5369_v36 = vsub.s32 0, %v5349_v27 }
   0xa   :  { %5156 = vmatprep.subr.bf16.mxu1 %v5155_v22 }
   0xb   :  { %5158 = vmatpush3.bf16.msra.mxu1 %v5155_v22  ;;  %v5358_v30 = vsub.s32 %v199_v26, %v5349_v27  ;;  %v5383_v46 = vrot.slane %v60_v41, %v5369_v36 }
   0xc   :  { %4862 = vmatpush3.msk.msra.mxu0 %vm95_vm0, %v47_v7  ;;  %5160 = vmatprep.subr.bf16.mxu1 %v5159_v31 }
   0xf   :  { %5162 = vmatpush3.bf16.msra.mxu1 %v5159_v31 }
  0x74   :  { %v66_v9 = vpop.permute.xlu0 %65  ;;  %v70_v10 = vpop.permute.xlu1 %69 }
  0x75   :  { %v78_v11 = vsel %vm77_vm1, %v33_v8, %v66_v9  ;;  %v80_v15 = vsel %vm77_vm1, %v35_v12, %v70_v10 }
  0x76   :  { %4863 = vmatprep.mubr.msk.f32.mxu0 %vm82_vm2, %v78_v11 }
  0x78   :  { %v68_v14 = vpop.permute.xlu0 %67  ;;  %v72_v16 = vpop.permute.xlu1 %71 }
  0x79   :  { %v79_v18 = vsel %vm77_vm1, %v34_v13, %v68_v14  ;;  %v81_v19 = vsel %vm77_vm1, %v36_v17, %v72_v16 }
  0x7a   :  { %4864 = vmatmul.mubr.msk.f32.vlgmr.msra.gmra.mrb[0].mxu0 %vm82_vm2, %v79_v18 }
  0x7b   :  { %4866 = vmatprep.mubr.msk.f32.mxu0 %vm82_vm2, %v80_v15 }
  0x7e   :  { %4867 = vmatmul.mubr.msk.f32.gmra.mrb[2].mxu0 %vm82_vm2, %v81_v19 }
 0x14d   :  { %v5360_v32 = vpop.f32.mrb[0].mxu0 }
 0x14e   :  { %v5362_v33 = vpop.f32.mrb[1].mxu0  ;;  %v252_v53 = vrot.slane %v5360_v32, %v5358_v30  ;;  %v245_v58 = vcombine.high %v5360_v32, %v5360_v32 }
 0x14f   :  { %v196_v34 = vcombine.high %v5362_v33, %v5362_v33  ;;  %v203_v35 = vrot.slane %v5362_v33, %v5358_v30 }
 0x150   :  { %v260_v59 = vcombine.high %v252_v53, %v252_v53  ;;  %v268_v62 = vrot.slane %v252_v53, %v5358_v30  ;;  %v259_v0 = vrot.slane %v245_v58, %v5358_v30 }
 0x151   :  { %v210_v37 = vrot.slane %v196_v34, %v5358_v30  ;;  %v211_v38 = vcombine.high %v203_v35, %v203_v35  ;;  %v219_v39 = vrot.slane %v203_v35, %v5358_v30  ;;  %v5373_v40 = vpop.f32.mrb[2].mxu0 }
 0x152   :  { %v5378_v42 = vpop.f32.mrb[3].mxu0  ;;  %v5392_v52 = vadd.f32 %v5373_v40, %v5383_v46  ;;  %v282_v2 = vrot.slane %v260_v59, %v5358_v30  ;;  %v427_v3 = vrot.slane %v268_v62, %v5369_v36  ;;  %v290_v4 = vcombine.high %v268_v62, %v268_v62 }
 0x153   :  { %v395_v43 = vrot.slane %v219_v39, %v5369_v36  ;;  %v233_v44 = vrot.slane %v211_v38, %v5358_v30  ;;  %v241_v45 = vcombine.high %v219_v39, %v219_v39  ;;  %v212_v47 = vcombine.high %v210_v37, %v210_v37 }
 0x154   :  { %v226_v51 = vrot.slane %v210_v37, %v5358_v30  ;;  %v261_v5 = vcombine.high %v259_v0, %v259_v0  ;;  %v431_v6 = vrot.slane %v282_v2, %v5369_v36  ;;  %v292_v7 = vcombine.high %v282_v2, %v282_v2 }
 0x155   :  { %520 = vrot.lane.b32.xlu0 %v395_v43, %s5255_s19  ;;  %v399_v48 = vrot.slane %v233_v44, %v5369_v36  ;;  %v243_v49 = vcombine.high %v233_v44, %v233_v44  ;;  %v403_v50 = vrot.slane %v241_v45, %v5369_v36  ;;  %v240_v55 = vrot.slane %v212_v47, %v5358_v30 }
 0x156   :  { %v411_v56 = vrot.slane %v226_v51, %v5369_v36  ;;  %v242_v57 = vcombine.high %v226_v51, %v226_v51  ;;  %v435_v8 = vrot.slane %v290_v4, %v5369_v36  ;;  %v275_v9 = vrot.slane %v259_v0, %v5358_v30  ;;  %v41_v4 = vld [vmem:[%s6817_s2] sm:$0xff] }
 0x157   :  { %522 = vrot.lane.b32.xlu1 %v399_v48, %s5255_s19  ;;  %v407_v54 = vrot.slane %v243_v49, %v5369_v36  ;;  %v415_v60 = vrot.slane %v240_v55, %v5369_v36  ;;  %v244_v61 = vcombine.high %v240_v55, %v240_v55  ;;  %v301_v10 = vrot.slane %v5378_v42, %v5358_v30 }
 0x158   :  { %v419_v63 = vrot.slane %v242_v57, %v5369_v36  ;;  %v439_v11 = vrot.slane %v292_v7, %v5369_v36  ;;  %v289_v12 = vrot.slane %v261_v5, %v5358_v30  ;;  %v443_v13 = vrot.slane %v275_v9, %v5369_v36 }
 0x159   :  { %524 = vrot.lane.b32.xlu0 %v403_v50, %s5255_s19  ;;  %v423_v1 = vrot.slane %v244_v61, %v5369_v36  ;;  %v294_v14 = vcombine.high %v5378_v42, %v5378_v42  ;;  %v309_v15 = vcombine.high %v301_v10, %v301_v10  ;;  %v291_v16 = vcombine.high %v275_v9, %v275_v9  ;;  %v5495_v9 = vld [vmem:[%s6817_s2 + $0x8] sm:$0xff] }
 0x15a   :  { %v317_v17 = vrot.slane %v301_v10, %v5358_v30  ;;  %v447_v18 = vrot.slane %v289_v12, %v5369_v36  ;;  %v293_v19 = vcombine.high %v289_v12, %v289_v12  ;;  %v350_v35 = vrot.slane %v5373_v40, %v5358_v30 }
 0x15b   :  { %526 = vrot.lane.b32.xlu1 %v407_v54, %s5255_s19  ;;  %v308_v20 = vrot.slane %v294_v14, %v5358_v30  ;;  %v451_v21 = vrot.slane %v291_v16, %v5369_v36  ;;  %v331_v22 = vrot.slane %v309_v15, %v5358_v30  ;;  %v343_v43 = vcombine.high %v5373_v40, %v5373_v40 }
 0x15c   :  { %v455_v23 = vrot.slane %v293_v19, %v5369_v36  ;;  %v459_v24 = vrot.slane %v317_v17, %v5369_v36  ;;  %v339_v25 = vcombine.high %v317_v17, %v317_v17  ;;  %v358_v44 = vcombine.high %v350_v35, %v350_v35 }
 0x15d   :  { %528 = vrot.lane.b32.xlu0 %v411_v56, %s5255_s19  ;;  %v310_v26 = vcombine.high %v308_v20, %v308_v20  ;;  %v463_v28 = vrot.slane %v331_v22, %v5369_v36  ;;  %v341_v29 = vcombine.high %v331_v22, %v331_v22  ;;  %v324_v34 = vrot.slane %v308_v20, %v5358_v30 }
 0x15e   :  { %v467_v31 = vrot.slane %v339_v25, %v5369_v36  ;;  %v366_v48 = vrot.slane %v350_v35, %v5358_v30  ;;  %v357_v50 = vrot.slane %v343_v43, %v5358_v30  ;;  %v380_v40 = vrot.slane %v358_v44, %v5358_v30 }
 0x15f   :  { %530 = vrot.lane.b32.xlu1 %v415_v60, %s5255_s19  ;;  %v471_v37 = vrot.slane %v341_v29, %v5369_v36  ;;  %v338_v38 = vrot.slane %v310_v26, %v5358_v30  ;;  %v475_v39 = vrot.slane %v324_v34, %v5369_v36  ;;  %v340_v41 = vcombine.high %v324_v34, %v324_v34 }
 0x160   :  { %v491_v53 = vrot.slane %v366_v48, %v5369_v36  ;;  %v388_v54 = vcombine.high %v366_v48, %v366_v48  ;;  %v359_v55 = vcombine.high %v357_v50, %v357_v50  ;;  %v495_v56 = vrot.slane %v380_v40, %v5369_v36 }
 0x161   :  { %532 = vrot.lane.b32.xlu0 %v419_v63, %s5255_s19  ;;  %v479_v45 = vrot.slane %v338_v38, %v5369_v36  ;;  %v342_v47 = vcombine.high %v338_v38, %v338_v38  ;;  %v483_v49 = vrot.slane %v340_v41, %v5369_v36  ;;  %v390_v57 = vcombine.high %v380_v40, %v380_v40 }
 0x162   :  { %v499_v58 = vrot.slane %v388_v54, %v5369_v36  ;;  %v373_v59 = vrot.slane %v357_v50, %v5358_v30  ;;  %v387_v61 = vrot.slane %v359_v55, %v5358_v30  ;;  %v5484_v5 = vsub.s32 1, %v5349_v27  ;;  %v5554_v50 = vld [vmem:[%s6817_s2 + $0x10] sm:$0xff] }
 0x163   :  { %534 = vrot.lane.b32.xlu1 %v423_v1, %s5255_s19  ;;  %v487_v51 = vrot.slane %v342_v47, %v5369_v36  ;;  %v503_v60 = vrot.slane %v390_v57, %v5369_v36  ;;  %v5489_v7 = vsub.s32 2, %v5349_v27  ;;  %v5501_v12 = vsub.s32 3, %v5349_v27 }
 0x164   :  { %v507_v62 = vrot.slane %v373_v59, %v5369_v36  ;;  %v389_v63 = vcombine.high %v373_v59, %v373_v59  ;;  %v511_v0 = vrot.slane %v387_v61, %v5369_v36  ;;  %v391_v1 = vcombine.high %v387_v61, %v387_v61  ;;  %6916 = vst [vmem:[#allocation5_spill] sm:$0xff] %v5484_v5 }
 0x165   :  { %536 = vrot.lane.b32.xlu0 %v427_v3, %s5255_s19  ;;  %v1424_v10 = vrot.slane %v5495_v9, %v5484_v5  ;;  %v1435_v14 = vrot.slane %v5495_v9, %v5489_v7  ;;  %v5507_v15 = vsub.s32 4, %v5349_v27  ;;  %v1413_v17 = vrot.slane %v5495_v9, %v5369_v36 }
 0x166   :  { %v515_v2 = vrot.slane %v389_v63, %v5369_v36  ;;  %v519_v3 = vrot.slane %v391_v1, %v5369_v36  ;;  %v5515_v19 = vsub.s32 5, %v5349_v27  ;;  %v5521_v22 = vsub.s32 6, %v5349_v27  ;;  %v5571_v63 = vld [vmem:[%s6817_s2 + $0x18] sm:$0xff] }
 0x167   :  { %538 = vrot.lane.b32.xlu1 %v431_v6, %s5255_s19  ;;  %v1336_v6 = vrot.slane %v41_v4, %v5484_v5  ;;  %v1369_v16 = vrot.slane %v41_v4, %v5507_v15  ;;  %v5528_v25 = vadd.f32 %v5360_v32, %v5383_v46  ;;  %v5532_v26 = vadd.f32 %v5383_v46, %v5362_v33 }
 0x168   :  { %v1380_v20 = vrot.slane %v41_v4, %v5515_v19  ;;  %v1479_v33 = vrot.slane %v5495_v9, %v5521_v22  ;;  %v1512_v54 = vrot.slane %v5554_v50, %v5484_v5 }
 0x169   :  { %540 = vrot.lane.b32.xlu0 %v435_v8, %s5255_s19  ;;  %v1347_v8 = vrot.slane %v41_v4, %v5489_v7 }
 0x16b   :  { %542 = vrot.lane.b32.xlu1 %v439_v11, %s5255_s19  ;;  %v1325_v11 = vrot.slane %v41_v4, %v5369_v36 }
 0x16d   :  { %544 = vrot.lane.b32.xlu0 %v443_v13, %s5255_s19  ;;  %v1358_v13 = vrot.slane %v41_v4, %v5501_v12 }
 0x16f   :  { %546 = vrot.lane.b32.xlu1 %v447_v18, %s5255_s19  ;;  %v1446_v18 = vrot.slane %v5495_v9, %v5501_v12 }
 0x171   :  { %548 = vrot.lane.b32.xlu0 %v451_v21, %s5255_s19  ;;  %v1457_v21 = vrot.slane %v5495_v9, %v5507_v15 }
 0x173   :  { %550 = vrot.lane.b32.xlu1 %v455_v23, %s5255_s19  ;;  %v1391_v23 = vrot.slane %v41_v4, %v5521_v22 }
 0x175   :  { %552 = vrot.lane.b32.xlu0 %v459_v24, %s5255_s19  ;;  %v1468_v24 = vrot.slane %v5495_v9, %v5515_v19 }
 0x177   :  { %554 = vrot.lane.b32.xlu1 %v463_v28, %s5255_s19  ;;  %v5535_v28 = vsub.s32 7, %v5349_v27 }
 0x179   :  { %556 = vrot.lane.b32.xlu0 %v467_v31, %s5255_s19  ;;  %v1402_v35 = vrot.slane %v41_v4, %v5535_v28  ;;  %v1490_v47 = vrot.slane %v5495_v9, %v5535_v28 }
 0x17b   :  { %558 = vrot.lane.b32.xlu1 %v471_v37, %s5255_s19 }
 0x17d   :  { %560 = vrot.lane.b32.xlu0 %v475_v39, %s5255_s19 }
 0x17f   :  { %562 = vrot.lane.b32.xlu1 %v479_v45, %s5255_s19 }
 0x181   :  { %564 = vrot.lane.b32.xlu0 %v483_v49, %s5255_s19 }
 0x183   :  { %566 = vrot.lane.b32.xlu1 %v487_v51, %s5255_s19 }
 0x185   :  { %568 = vrot.lane.b32.xlu0 %v491_v53, %s5255_s19 }
 0x187   :  { %570 = vrot.lane.b32.xlu1 %v495_v56, %s5255_s19 }
 0x189   :  { %572 = vrot.lane.b32.xlu0 %v499_v58, %s5255_s19 }
 0x18b   :  { %574 = vrot.lane.b32.xlu1 %v503_v60, %s5255_s19  ;;  %v1523_v60 = vrot.slane %v5554_v50, %v5489_v7 }
 0x18d   :  { %576 = vrot.lane.b32.xlu0 %v507_v62, %s5255_s19 }
 0x18f   :  { %578 = vrot.lane.b32.xlu1 %v511_v0, %s5255_s19 }
 0x191   :  { %580 = vrot.lane.b32.xlu0 %v515_v2, %s5255_s19 }
 0x193   :  { %582 = vrot.lane.b32.xlu1 %v519_v3, %s5255_s19  ;;  %v1600_v3 = vrot.slane %v5571_v63, %v5484_v5 }
 0x195   :  { %1338 = vbcast.lane.b32.xlu0 %v1336_v6, 256 }
 0x197   :  { %1342 = vbcast.lane.b32.xlu1 %v1336_v6, 264 }
 0x199   :  { %1349 = vbcast.lane.b32.xlu0 %v1347_v8, 256 }
 0x19b   :  { %1353 = vbcast.lane.b32.xlu1 %v1347_v8, 264 }
 0x19d   :  { %1426 = vbcast.lane.b32.xlu0 %v1424_v10, 256 }
 0x19f   :  { %1430 = vbcast.lane.b32.xlu1 %v1424_v10, 264 }
 0x1a1   :  { %1327 = vbcast.lane.b32.xlu0 %v1325_v11, 256 }
 0x1a3   :  { %1331 = vbcast.lane.b32.xlu1 %v1325_v11, 264  ;;  %v1501_v11 = vrot.slane %v5554_v50, %v5369_v36 }
 0x1a5   :  { %1360 = vbcast.lane.b32.xlu0 %v1358_v13, 256 }
 0x1a7   :  { %1364 = vbcast.lane.b32.xlu1 %v1358_v13, 264 }
 0x1a9   :  { %1437 = vbcast.lane.b32.xlu0 %v1435_v14, 256 }
 0x1ab   :  { %1441 = vbcast.lane.b32.xlu1 %v1435_v14, 264 }
 0x1ad   :  { %1371 = vbcast.lane.b32.xlu0 %v1369_v16, 256 }
 0x1af   :  { %1375 = vbcast.lane.b32.xlu1 %v1369_v16, 264 }
 0x1b1   :  { %1415 = vbcast.lane.b32.xlu0 %v1413_v17, 256 }
 0x1b3   :  { %1419 = vbcast.lane.b32.xlu1 %v1413_v17, 264 }
 0x1b5   :  { %1448 = vbcast.lane.b32.xlu0 %v1446_v18, 256 }
 0x1b7   :  { %1452 = vbcast.lane.b32.xlu1 %v1446_v18, 264 }
 0x1b9   :  { %1382 = vbcast.lane.b32.xlu0 %v1380_v20, 256 }
 0x1bb   :  { %1386 = vbcast.lane.b32.xlu1 %v1380_v20, 264  ;;  %v1534_v20 = vrot.slane %v5554_v50, %v5501_v12 }
 0x1bd   :  { %1459 = vbcast.lane.b32.xlu0 %v1457_v21, 256 }
 0x1bf   :  { %1463 = vbcast.lane.b32.xlu1 %v1457_v21, 264 }
 0x1c1   :  { %1393 = vbcast.lane.b32.xlu0 %v1391_v23, 256 }
 0x1c3   :  { %1397 = vbcast.lane.b32.xlu1 %v1391_v23, 264 }
 0x1c5   :  { %1470 = vbcast.lane.b32.xlu0 %v1468_v24, 256 }
 0x1c7   :  { %v521_v29 = vpop.permute.xlu0 %520  ;;  %1474 = vbcast.lane.b32.xlu1 %v1468_v24, 264 }
 0x1c8   :  { %v617_v31 = vsub.f32 %v5528_v25, %v521_v29  ;;  %v616_v34 = vsub.f32 %v5532_v26, %v521_v29 }
 0x1c9   :  { %v523_v37 = vpop.permute.xlu1 %522  ;;  %1404 = vbcast.lane.b32.xlu0 %v1402_v35, 256 }
 0x1ca   :  { %v681_v32 = vmax.f32 %v617_v31, 0.0  ;;  %v618_v38 = vsub.f32 %v5532_v26, %v523_v37  ;;  %v680_v39 = vmax.f32 %v616_v34, 0.0  ;;  %v619_v27 = vsub.f32 %v5528_v25, %v523_v37 }
 0x1cb   :  { %v525_v41 = vpop.permute.xlu0 %524  ;;  %1408 = vbcast.lane.b32.xlu1 %v1402_v35, 264  ;;  %v1611_v34 = vrot.slane %v5571_v63, %v5489_v7 }
 0x1cc   :  { %v682_v43 = vmax.f32 %v618_v38, 0.0  ;;  %v620_v44 = vsub.f32 %v5532_v26, %v525_v41  ;;  %4877 = vmatprep.mubr.msk.f32.mxu1 %vm744_vm3, %v680_v39  ;;  %v683_v48 = vmax.f32 %v619_v27, 0.0  ;;  %v621_v49 = vsub.f32 %v5528_v25, %v525_v41 }
 0x1cd   :  { %v527_v45 = vpop.permute.xlu1 %526  ;;  %4878 = vmatmul.mubr.msk.f32.vlgmr.msra.gmra.mrb[0].mxu1 %vm744_vm3, %v681_v32  ;;  %1481 = vbcast.lane.b32.xlu0 %v1479_v33, 256 }
 0x1ce   :  { %4880 = vmatprep.mubr.msk.f32.mxu1 %vm744_vm3, %v682_v43  ;;  %v684_v51 = vmax.f32 %v620_v44, 0.0  ;;  %v622_v40 = vsub.f32 %v5532_v26, %v527_v45  ;;  %v685_v55 = vmax.f32 %v621_v49, 0.0  ;;  %v623_v56 = vsub.f32 %v5528_v25, %v527_v45 }
 0x1cf   :  { %1485 = vbcast.lane.b32.xlu1 %v1479_v33, 264  ;;  %v529_v53 = vpop.permute.xlu0 %528  ;;  %v1545_v33 = vrot.slane %v5554_v50, %v5507_v15 }
 0x1d0   :  { %v686_v57 = vmax.f32 %v622_v40, 0.0  ;;  %v624_v58 = vsub.f32 %v5532_v26, %v529_v53  ;;  %v687_v61 = vmax.f32 %v623_v56, 0.0  ;;  %v625_v62 = vsub.f32 %v5528_v25, %v529_v53 }
 0x1d1   :  { %4881 = vmatmul.mubr.msk.f32.gmra.mrb[2].mxu1 %vm744_vm3, %v683_v48  ;;  %1492 = vbcast.lane.b32.xlu0 %v1490_v47, 256  ;;  %v531_v59 = vpop.permute.xlu1 %530 }
 0x1d2   :  { %4883 = vmatprep.mubr.msk.f32.mxu1 %vm744_vm3, %v684_v51  ;;  %v688_v0 = vmax.f32 %v624_v58, 0.0  ;;  %v626_v1 = vsub.f32 %v5532_v26, %v531_v59  ;;  %v689_v4 = vmax.f32 %v625_v62, 0.0  ;;  %v627_v6 = vsub.f32 %v5528_v25, %v531_v59 }
 0x1d3   :  { %1496 = vbcast.lane.b32.xlu1 %v1490_v47, 264  ;;  %v533_v2 = vpop.permute.xlu0 %532  ;;  %v1589_v47 = vrot.slane %v5571_v63, %v5369_v36 }
 0x1d4   :  { %v690_v8 = vmax.f32 %v626_v1, 0.0  ;;  %v628_v9 = vsub.f32 %v5532_v26, %v533_v2  ;;  %v691_v13 = vmax.f32 %v627_v6, 0.0  ;;  %v629_v14 = vsub.f32 %v5528_v25, %v533_v2 }
 0x1d5   :  { %4884 = vmatmul.mubr.msk.f32.gmra.mrb[4].mxu1 %vm744_vm3, %v685_v55  ;;  %1514 = vbcast.lane.b32.xlu0 %v1512_v54, 256  ;;  %v535_v10 = vpop.permute.xlu1 %534 }
 0x1d6   :  { %4886 = vmatprep.mubr.msk.f32.mxu1 %vm744_vm3, %v686_v57  ;;  %v692_v16 = vmax.f32 %v628_v9, 0.0  ;;  %v630_v17 = vsub.f32 %v5532_v26, %v535_v10  ;;  %v693_v21 = vmax.f32 %v629_v14, 0.0  ;;  %v631_v23 = vsub.f32 %v5528_v25, %v535_v10 }
 0x1d7   :  { %1518 = vbcast.lane.b32.xlu1 %v1512_v54, 264  ;;  %v537_v18 = vpop.permute.xlu0 %536  ;;  %v1622_v54 = vrot.slane %v5571_v63, %v5501_v12 }
 0x1d8   :  { %v694_v24 = vmax.f32 %v630_v17, 0.0  ;;  %v632_v29 = vsub.f32 %v5532_v26, %v537_v18  ;;  %v695_v35 = vmax.f32 %v631_v23, 0.0  ;;  %v633_v37 = vsub.f32 %v5528_v25, %v537_v18 }
 0x1d9   :  { %4887 = vmatmul.mubr.msk.f32.gmra.mrb[6].mxu1 %vm744_vm3, %v687_v61  ;;  %1525 = vbcast.lane.b32.xlu0 %v1523_v60, 256  ;;  %v539_v31 = vpop.permute.xlu1 %538  ;;  %v5637_v18 = vadd.f32 %v5383_v46, %v5378_v42  ;;  %v1578_v42 = vrot.slane %v5554_v50, %v5535_v28 }
 0x1da   :  { %4889 = vmatprep.mubr.msk.f32.mxu1 %vm744_vm3, %v688_v0  ;;  %v696_v32 = vmax.f32 %v632_v29, 0.0  ;;  %v634_v38 = vsub.f32 %v5532_v26, %v539_v31  ;;  %v697_v27 = vmax.f32 %v633_v37, 0.0  ;;  %v635_v41 = vsub.f32 %v5528_v25, %v539_v31 }
 0x1db   :  { %1529 = vbcast.lane.b32.xlu1 %v1523_v60, 264  ;;  %v541_v39 = vpop.permute.xlu0 %540  ;;  %v1556_v60 = vrot.slane %v5554_v50, %v5515_v19 }
 0x1dc   :  { %v698_v43 = vmax.f32 %v634_v38, 0.0  ;;  %v636_v44 = vsub.f32 %v5532_v26, %v541_v39  ;;  %v699_v48 = vmax.f32 %v635_v41, 0.0  ;;  %v637_v49 = vsub.f32 %v5528_v25, %v541_v39 }
 0x1dd   :  { %4890 = vmatmul.mubr.msk.f32.gmra.mrb[8].mxu1 %vm744_vm3, %v689_v4  ;;  %1602 = vbcast.lane.b32.xlu0 %v1600_v3, 256  ;;  %v543_v45 = vpop.permute.xlu1 %542 }
 0x1de   :  { %4892 = vmatprep.mubr.msk.f32.mxu1 %vm744_vm3, %v690_v8  ;;  %v700_v51 = vmax.f32 %v636_v44, 0.0  ;;  %v638_v40 = vsub.f32 %v5532_v26, %v543_v45  ;;  %v701_v55 = vmax.f32 %v637_v49, 0.0  ;;  %v639_v56 = vsub.f32 %v5528_v25, %v543_v45 }
 0x1df   :  { %1606 = vbcast.lane.b32.xlu1 %v1600_v3, 264  ;;  %v545_v53 = vpop.permute.xlu0 %544  ;;  %v1633_v3 = vrot.slane %v5571_v63, %v5507_v15 }
 0x1e0   :  { %v702_v57 = vmax.f32 %v638_v40, 0.0  ;;  %v640_v58 = vsub.f32 %v5532_v26, %v545_v53  ;;  %v703_v61 = vmax.f32 %v639_v56, 0.0  ;;  %v641_v62 = vsub.f32 %v5528_v25, %v545_v53 }
 0x1e1   :  { %4893 = vmatmul.mubr.msk.f32.gmra.mrb[10].mxu1 %vm744_vm3, %v691_v13  ;;  %1503 = vbcast.lane.b32.xlu0 %v1501_v11, 256  ;;  %v547_v59 = vpop.permute.xlu1 %546 }
 0x1e2   :  { %4895 = vmatprep.mubr.msk.f32.mxu1 %vm744_vm3, %v692_v16  ;;  %v704_v0 = vmax.f32 %v640_v58, 0.0  ;;  %v642_v1 = vsub.f32 %v5532_v26, %v547_v59  ;;  %v705_v4 = vmax.f32 %v641_v62, 0.0  ;;  %v643_v6 = vsub.f32 %v5528_v25, %v547_v59 }
 0x1e3   :  { %1507 = vbcast.lane.b32.xlu1 %v1501_v11, 264  ;;  %v549_v2 = vpop.permute.xlu0 %548  ;;  %v1567_v11 = vrot.slane %v5554_v50, %v5521_v22 }
 0x1e4   :  { %v706_v8 = vmax.f32 %v642_v1, 0.0  ;;  %v644_v9 = vsub.f32 %v5532_v26, %v549_v2  ;;  %v707_v13 = vmax.f32 %v643_v6, 0.0  ;;  %v645_v14 = vsub.f32 %v5528_v25, %v549_v2 }
 0x1e5   :  { %4896 = vmatmul.mubr.msk.f32.gmra.mrb[12].mxu1 %vm744_vm3, %v693_v21  ;;  %1536 = vbcast.lane.b32.xlu0 %v1534_v20, 256  ;;  %v551_v10 = vpop.permute.xlu1 %550 }
 0x1e6   :  { %4898 = vmatprep.mubr.msk.f32.mxu1 %vm744_vm3, %v694_v24  ;;  %v708_v15 = vmax.f32 %v644_v9, 0.0  ;;  %v646_v16 = vsub.f32 %v5532_v26, %v551_v10  ;;  %v709_v21 = vmax.f32 %v645_v14, 0.0  ;;  %v647_v23 = vsub.f32 %v5528_v25, %v551_v10 }
 0x1e7   :  { %1540 = vbcast.lane.b32.xlu1 %v1534_v20, 264  ;;  %v553_v17 = vpop.permute.xlu0 %552  ;;  %v1644_v20 = vrot.slane %v5571_v63, %v5515_v19 }
 0x1e8   :  { %v710_v24 = vmax.f32 %v646_v16, 0.0  ;;  %v648_v26 = vsub.f32 %v5637_v18, %v553_v17  ;;  %v711_v46 = vmax.f32 %v647_v23, 0.0  ;;  %v649_v31 = vsub.f32 %v5392_v52, %v553_v17 }
 0x1e9   :  { %4899 = vmatmul.mubr.msk.f32.gmra.mrb[14].mxu1 %vm744_vm3, %v695_v35  ;;  %1613 = vbcast.lane.b32.xlu0 %v1611_v34, 256  ;;  %v555_v29 = vpop.permute.xlu1 %554  ;;  %v1655_v16 = vrot.slane %v5571_v63, %v5521_v22 }
 0x1ea   :  { %4901 = vmatprep.mubr.msk.f32.mxu1 %vm744_vm3, %v696_v32  ;;  %v712_v19 = vmax.f32 %v648_v26, 0.0  ;;  %v650_v25 = vsub.f32 %v5637_v18, %v555_v29  ;;  %v713_v35 = vmax.f32 %v649_v31, 0.0  ;;  %v651_v37 = vsub.f32 %v5392_v52, %v555_v29 }
 0x1eb   :  { %1617 = vbcast.lane.b32.xlu1 %v1611_v34, 264  ;;  %v557_v34 = vpop.permute.xlu0 %556  ;;  %v1666_v26 = vrot.slane %v5571_v63, %v5535_v28 }
 0x1ec   :  { %v714_v32 = vmax.f32 %v650_v25, 0.0  ;;  %v652_v50 = vsub.f32 %v5637_v18, %v557_v34  ;;  %v715_v39 = vmax.f32 %v651_v37, 0.0 }
 0x1ed   :  { %4902 = vmatmul.mubr.msk.f32.gmra.mrb[16].mxu1 %vm744_vm3, %v697_v27  ;;  %1547 = vbcast.lane.b32.xlu0 %v1545_v33, 256  ;;  %v559_v38 = vpop.permute.xlu1 %558 }
 0x1ee   :  { %4904 = vmatprep.mubr.msk.f32.mxu1 %vm744_vm3, %v698_v43  ;;  %v716_v27 = vmax.f32 %v652_v50, 0.0  ;;  %v654_v41 = vsub.f32 %v5637_v18, %v559_v38  ;;  %v655_v45 = vsub.f32 %v5392_v52, %v559_v38 }
 0x1ef   :  { %1551 = vbcast.lane.b32.xlu1 %v1545_v33, 264  ;;  %v653_v33 = vsub.f32 %v5392_v52, %v557_v34  ;;  %v561_v43 = vpop.permute.xlu0 %560 }
 0x1f0   :  { %v657_v40 = vsub.f32 %v5392_v52, %v561_v43 }
 0x1f1   :  { %4905 = vmatmul.mubr.msk.f32.gmra.mrb[18].mxu1 %vm744_vm3, %v699_v48  ;;  %1591 = vbcast.lane.b32.xlu0 %v1589_v47, 256  ;;  %v717_v44 = vmax.f32 %v653_v33, 0.0  ;;  %v656_v48 = vsub.f32 %v5637_v18, %v561_v43  ;;  %v563_v49 = vpop.permute.xlu1 %562 }
 0x1f2   :  { %4907 = vmatprep.mubr.msk.f32.mxu1 %vm744_vm3, %v700_v51  ;;  %v719_v51 = vmax.f32 %v655_v45, 0.0  ;;  %v721_v56 = vmax.f32 %v657_v40, 0.0 }
 0x1f3   :  { %1595 = vbcast.lane.b32.xlu1 %v1589_v47, 264  ;;  %v718_v47 = vmax.f32 %v654_v41, 0.0  ;;  %v720_v53 = vmax.f32 %v656_v48, 0.0 }
 0x1f5   :  { %4908 = vmatmul.mubr.msk.f32.gmra.mrb[20].mxu1 %vm744_vm3, %v701_v55  ;;  %1624 = vbcast.lane.b32.xlu0 %v1622_v54, 256  ;;  %v565_v55 = vpop.permute.xlu0 %564 }
 0x1f6   :  { %4910 = vmatprep.mubr.msk.f32.mxu1 %vm744_vm3, %v702_v57  ;;  %v659_v57 = vsub.f32 %v5392_v52, %v563_v49  ;;  %v660_v59 = vsub.f32 %v5637_v18, %v565_v55  ;;  %v661_v62 = vsub.f32 %v5392_v52, %v565_v55 }
 0x1f7   :  { %1628 = vbcast.lane.b32.xlu1 %v1622_v54, 264  ;;  %v658_v54 = vsub.f32 %v5637_v18, %v563_v49 }
 0x1f9   :  { %4911 = vmatmul.mubr.msk.f32.gmra.mrb[22].mxu1 %vm744_vm3, %v703_v61  ;;  %1558 = vbcast.lane.b32.xlu0 %v1556_v60, 256  ;;  %v722_v58 = vmax.f32 %v658_v54, 0.0  ;;  %v723_v61 = vmax.f32 %v659_v57, 0.0  ;;  %v569_v2 = vpop.permute.xlu0 %568 }
 0x1fa   :  { %4913 = vmatprep.mubr.msk.f32.mxu1 %vm744_vm3, %v704_v0  ;;  %v724_v0 = vmax.f32 %v660_v59, 0.0 }
 0x1fb   :  { %1562 = vbcast.lane.b32.xlu1 %v1556_v60, 264  ;;  %v567_v60 = vpop.permute.xlu1 %566 }
 0x1fc   :  { %v662_v1 = vsub.f32 %v5637_v18, %v567_v60 }
 0x1fd   :  { %4914 = vmatmul.mubr.msk.f32.gmra.mrb[24].mxu1 %vm744_vm3, %v705_v4  ;;  %1635 = vbcast.lane.b32.xlu0 %v1633_v3, 256  ;;  %v663_v4 = vsub.f32 %v5392_v52, %v567_v60 }
 0x1fe   :  { %4916 = vmatprep.mubr.msk.f32.mxu1 %vm744_vm3, %v706_v8  ;;  %v726_v6 = vmax.f32 %v662_v1, 0.0  ;;  %v664_v8 = vsub.f32 %v5637_v18, %v569_v2 }
 0x1ff   :  { %1639 = vbcast.lane.b32.xlu1 %v1633_v3, 264  ;;  %v725_v3 = vmax.f32 %v661_v62, 0.0  ;;  %v571_v9 = vpop.permute.xlu1 %570  ;;  %v727_v10 = vmax.f32 %v663_v4, 0.0  ;;  %v53_v4 = vld [vmem:[%s6819_s4 + $0x28] sm:$0xff] }
 0x200   :  { %v666_v14 = vsub.f32 %v5637_v18, %v571_v9 }
 0x201   :  { %4917 = vmatmul.mubr.msk.f32.gmra.mrb[26].mxu1 %vm744_vm3, %v707_v13  ;;  %1569 = vbcast.lane.b32.xlu0 %v1567_v11, 256  ;;  %v728_v13 = vmax.f32 %v664_v8, 0.0 }
 0x202   :  { %4919 = vmatprep.mubr.msk.f32.mxu1 %vm744_vm3, %v708_v15  ;;  %v573_v15 = vpop.permute.xlu0 %572 }
 0x203   :  { %1573 = vbcast.lane.b32.xlu1 %v1567_v11, 264  ;;  %v665_v11 = vsub.f32 %v5392_v52, %v569_v2  ;;  %v668_v23 = vsub.f32 %v5637_v18, %v573_v15 }
 0x205   :  { %4920 = vmatmul.mubr.msk.f32.gmra.mrb[28].mxu1 %vm744_vm3, %v709_v21  ;;  %1646 = vbcast.lane.b32.xlu0 %v1644_v20, 256  ;;  %v729_v17 = vmax.f32 %v665_v11, 0.0  ;;  %v730_v21 = vmax.f32 %v666_v14, 0.0  ;;  %v732_v22 = vmax.f32 %v668_v23, 0.0 }
 0x206   :  { %4922 = vmatprep.mubr.msk.f32.mxu1 %vm744_vm3, %v710_v24  ;;  %v575_v24 = vpop.permute.xlu1 %574  ;;  %v577_v31 = vpop.permute.xlu0 %576 }
 0x207   :  { %1650 = vbcast.lane.b32.xlu1 %v1644_v20, 264  ;;  %v667_v20 = vsub.f32 %v5392_v52, %v571_v9  ;;  %v671_v25 = vsub.f32 %v5392_v52, %v575_v24  ;;  %v673_v37 = vsub.f32 %v5392_v52, %v577_v31  ;;  %v54_v9 = vld [vmem:[%s6819_s4 + $0x30] sm:$0xff] }
 0x209   :  { %4923 = vmatmul.mubr.msk.f32.gmra.mrb[30].mxu1 %vm744_vm3, %v711_v46  ;;  %1580 = vbcast.lane.b32.xlu0 %v1578_v42, 256  ;;  %v731_v29 = vmax.f32 %v667_v20, 0.0  ;;  %v670_v46 = vsub.f32 %v5637_v18, %v575_v24  ;;  %v735_v63 = vmax.f32 %v671_v25, 0.0 }
 0x20a   :  { %4925 = vmatprep.mubr.msk.f32.mxu1 %vm744_vm3, %v712_v19  ;;  %v579_v28 = vpop.permute.xlu1 %578  ;;  %v581_v38 = vpop.permute.xlu0 %580 }
 0x20b   :  { %1584 = vbcast.lane.b32.xlu1 %v1578_v42, 264  ;;  %v669_v42 = vsub.f32 %v5392_v52, %v573_v15  ;;  %v734_v34 = vmax.f32 %v670_v46, 0.0  ;;  %v674_v50 = vsub.f32 %v5637_v18, %v579_v28  ;;  %v675_v33 = vsub.f32 %v5392_v52, %v579_v28 }
 0x20c   :  { %v676_v41 = vsub.f32 %v5637_v18, %v581_v38  ;;  %v677_v45 = vsub.f32 %v5392_v52, %v581_v38 }
 0x20d   :  { %4926 = vmatmul.mubr.msk.f32.gmra.mrb[32].mxu1 %vm744_vm3, %v713_v35  ;;  %1657 = vbcast.lane.b32.xlu0 %v1655_v16, 256  ;;  %v733_v19 = vmax.f32 %v669_v42, 0.0  ;;  %v672_v35 = vsub.f32 %v5637_v18, %v577_v31 }
 0x20e   :  { %4928 = vmatprep.mubr.msk.f32.mxu1 %vm744_vm3, %v714_v32  ;;  %v583_v43 = vpop.permute.xlu1 %582  ;;  %v741_v49 = vmax.f32 %v677_v45, 0.0  ;;  %v5718_v55 = vpop.permute.xlu0 %1338 }
 0x20f   :  { %1661 = vbcast.lane.b32.xlu1 %v1655_v16, 264  ;;  %v736_v32 = vmax.f32 %v672_v35, 0.0  ;;  %v678_v48 = vsub.f32 %v5637_v18, %v583_v43  ;;  %vm6861_vm7 = vcmp.gt.f32.partialorder %v5718_v55, 0.0 }
 0x211   :  { %4929 = vmatmul.mubr.msk.f32.gmra.mrb[34].mxu1 %vm744_vm3, %v715_v39  ;;  %1668 = vbcast.lane.b32.xlu0 %v1666_v26, 256  ;;  %v737_v39 = vmax.f32 %v673_v37, 0.0  ;;  %v742_v40 = vmax.f32 %v678_v48, 0.0 }
 0x212   :  { %4931 = vmatprep.mubr.msk.f32.mxu1 %vm744_vm3, %v716_v27  ;;  %v738_v27 = vmax.f32 %v674_v50, 0.0  ;;  %v5715_v54 = vpop.permute.xlu1 %1342 }
 0x213   :  { %1672 = vbcast.lane.b32.xlu1 %v1666_v26, 264  ;;  %vm1677_vm6 = vcmp.gt.f32.partialorder %v5715_v54, 0.0 }
 0x215   :  { %4932 = vmatmul.mubr.msk.f32.gmra.mrb[36].mxu1 %vm744_vm3, %v717_v44  ;;  %v739_v44 = vmax.f32 %v675_v33, 0.0 }
 0x216   :  { %4934 = vmatprep.mubr.msk.f32.mxu1 %vm744_vm3, %v718_v47  ;;  %v740_v47 = vmax.f32 %v676_v41, 0.0  ;;  %v5720_v18 = vpop.permute.xlu1 %1353 }
 0x217   :  { %vm6855_vm8 = vcmp.gt.f32.partialorder %v5720_v18, 0.0 }
 0x219   :  { %4935 = vmatmul.mubr.msk.f32.gmra.mrb[38].mxu1 %vm744_vm3, %v719_v51  ;;  %v679_v51 = vsub.f32 %v5392_v52, %v583_v43 }
 0x21a   :  { %4937 = vmatprep.mubr.msk.f32.mxu1 %vm744_vm3, %v720_v53  ;;  %v5724_v57 = vpop.permute.xlu1 %1430 }
 0x21b   :  { %v743_v53 = vmax.f32 %v679_v51, 0.0 }
 0x21d   :  { %4938 = vmatmul.mubr.msk.f32.gmra.mrb[40].mxu1 %vm744_vm3, %v721_v56  ;;  %v5722_v56 = vpop.permute.xlu0 %1349 }
 0x21e   :  { %4940 = vmatprep.mubr.msk.f32.mxu1 %vm744_vm3, %v722_v58  ;;  %v5728_v52 = vpop.permute.xlu1 %1331  ;;  %vm6852_vm9 = vcmp.gt.f32.partialorder %v5722_v56, 0.0 }
 0x21f   :  { %vm1675_vm4 = vcmp.gt.f32.partialorder %v5728_v52, 0.0 }
 0x221   :  { %4941 = vmatmul.mubr.msk.f32.gmra.mrb[42].mxu1 %vm744_vm3, %v723_v61  ;;  %v5726_v58 = vpop.permute.xlu0 %1426 }
 0x222   :  { %4943 = vmatprep.mubr.msk.f32.mxu1 %vm744_vm3, %v724_v0  ;;  %6917 = vst [vmem:[#allocation6_spill] sm:$0xff] %v5726_v58  ;;  %v5732_v60 = vpop.permute.xlu1 %1364 }
 0x223   :  { %vm6837_vm10 = vcmp.gt.f32.partialorder %v5732_v60, 0.0 }
 0x225   :  { %4944 = vmatmul.mubr.msk.f32.gmra.mrb[44].mxu1 %vm744_vm3, %v725_v3  ;;  %v5730_v59 = vpop.permute.xlu0 %1327  ;;  %v52_v3 = vld [vmem:[%s6819_s4 + $0x20] sm:$0xff] }
 0x226   :  { %4946 = vmatprep.mubr.msk.f32.mxu1 %vm744_vm3, %v726_v6  ;;  %v5736_v62 = vpop.permute.xlu1 %1441  ;;  %v5163_v6 = vpack.c.bf16 %v53_v4, %v52_v3  ;;  %vm1674_vm5 = vcmp.gt.f32.partialorder %v5730_v59, 0.0 }
 0x228   :  { %5164 = vmatprep.subr.bf16.mxu0 %v5163_v6 }
 0x229   :  { %4947 = vmatmul.mubr.msk.f32.gmra.mrb[46].mxu1 %vm744_vm3, %v727_v10  ;;  %v5734_v61 = vpop.permute.xlu0 %1360  ;;  %5166 = vmatpush3.bf16.msra.mxu0 %v5163_v6  ;;  %v55_v10 = vld [vmem:[%s6819_s4 + $0x38] sm:$0xff] }
 0x22a   :  { %4949 = vmatprep.mubr.msk.f32.mxu1 %vm744_vm3, %v728_v13  ;;  %v5740_v1 = vpop.permute.xlu1 %1375  ;;  %v5167_v13 = vpack.c.bf16 %v55_v10, %v54_v9  ;;  %vm6835_vm11 = vcmp.gt.f32.partialorder %v5734_v61, 0.0 }
 0x22b   :  { %vm6833_vm12 = vcmp.gt.f32.partialorder %v5740_v1, 0.0 }
 0x22c   :  { %5168 = vmatprep.subr.bf16.mxu0 %v5167_v13 }
 0x22d   :  { %4950 = vmatmul.mubr.msk.f32.gmra.mrb[48].mxu1 %vm744_vm3, %v729_v17  ;;  %v5738_v0 = vpop.permute.xlu0 %1437  ;;  %5170 = vmatpush3.bf16.msra.mxu0 %v5167_v13 }
 0x22e   :  { %4952 = vmatprep.mubr.msk.f32.mxu1 %vm744_vm3, %v730_v21  ;;  %v5750_v8 = vpop.permute.xlu1 %1419 }
 0x22f   :  { %6919 = vst [vmem:[#allocation8_spill] sm:$0xff] %v5750_v8 }
 0x231   :  { %4953 = vmatmul.mubr.msk.f32.gmra.mrb[50].mxu1 %vm744_vm3, %v731_v29  ;;  %v5742_v2 = vpop.permute.xlu0 %1371 }
 0x232   :  { %4955 = vmatprep.mubr.msk.f32.mxu1 %vm744_vm3, %v732_v22  ;;  %6918 = vst [vmem:[#allocation7_spill] sm:$0xff] %v5742_v2  ;;  %v5760_v14 = vpop.permute.xlu1 %1452  ;;  %vm6831_vm13 = vcmp.gt.f32.partialorder %v5742_v2, 0.0 }
 0x233   :  { %6921 = vst [vmem:[#allocation10_spill] sm:$0xff] %v5760_v14 }
 0x235   :  { %4956 = vmatmul.mubr.msk.f32.gmra.mrb[52].mxu1 %vm744_vm3, %v733_v19  ;;  %v5758_v11 = vpop.permute.xlu0 %1415 }
 0x236   :  { %4958 = vmatprep.mubr.msk.f32.mxu1 %vm744_vm3, %v734_v34  ;;  %6920 = vst [vmem:[#allocation9_spill] sm:$0xff] %v5758_v11  ;;  %v5764_v16 = vpop.permute.xlu1 %1386 }
 0x237   :  { %6923 = vst [vmem:[#allocation12_spill] sm:$0xff] %v5764_v16  ;;  %vm6826_vm15 = vcmp.gt.f32.partialorder %v5764_v16, 0.0 }
 0x239   :  { %4959 = vmatmul.mubr.msk.f32.gmra.mrb[54].mxu1 %vm744_vm3, %v735_v63  ;;  %v5762_v15 = vpop.permute.xlu0 %1448 }
 0x23a   :  { %4961 = vmatprep.mubr.msk.f32.mxu1 %vm744_vm3, %v736_v32  ;;  %6922 = vst [vmem:[#allocation11_spill] sm:$0xff] %v5762_v15  ;;  %v5768_v20 = vpop.permute.xlu1 %1463 }
 0x23b   :  { %6925 = vst [vmem:[#allocation14_spill] sm:$0xff] %v5768_v20 }
 0x23d   :  { %4962 = vmatmul.mubr.msk.f32.gmra.mrb[56].mxu1 %vm744_vm3, %v737_v39  ;;  %v5766_v17 = vpop.permute.xlu0 %1382 }
 0x23e   :  { %4964 = vmatprep.mubr.msk.f32.mxu1 %vm744_vm3, %v738_v27  ;;  %6924 = vst [vmem:[#allocation13_spill] sm:$0xff] %v5766_v17  ;;  %v5772_v23 = vpop.permute.xlu1 %1397  ;;  %vm6827_vm0 = vcmp.gt.f32.partialorder %v5766_v17, 0.0 }
 0x23f   :  { %vm6832_vm1 = vcmp.gt.f32.partialorder %v5772_v23, 0.0 }
 0x241   :  { %4965 = vmatmul.mubr.msk.f32.gmra.mrb[58].mxu1 %vm744_vm3, %v739_v44  ;;  %v5770_v21 = vpop.permute.xlu0 %1459 }
 0x242   :  { %4967 = vmatprep.mubr.msk.f32.mxu1 %vm744_vm3, %v740_v47  ;;  %6926 = vst [vmem:[#allocation15_spill] sm:$0xff] %v5770_v21  ;;  %v5776_v26 = vpop.permute.xlu1 %1474 }
 0x245   :  { %4968 = vmatmul.mubr.msk.f32.gmra.mrb[60].mxu1 %vm744_vm3, %v741_v49  ;;  %v5774_v24 = vpop.permute.xlu0 %1393 }
 0x246   :  { %4970 = vmatprep.mubr.msk.f32.mxu1 %vm744_vm3, %v742_v40  ;;  %6927 = vst [vmem:[#allocation16_spill] sm:$0xff] %v5774_v24  ;;  %v5780_v42 = vpop.permute.xlu1 %1408  ;;  %vm6834_vm2 = vcmp.gt.f32.partialorder %v5774_v24, 0.0 }
 0x247   :  { %6929 = vst [vmem:[#allocation18_spill] sm:$0xff] %v5780_v42 }
 0x249   :  { %4971 = vmatmul.mubr.msk.f32.gmra.mrb[62].mxu1 %vm744_vm3, %v743_v53  ;;  %v5778_v29 = vpop.permute.xlu0 %1470 }
 0x24a   :  { %6928 = vst [vmem:[#allocation17_spill] sm:$0xff] %v5778_v29  ;;  %v5784_v46 = vpop.permute.xlu1 %1485 }
 0x24d   :  { %v5782_v22 = vpop.permute.xlu0 %1404 }
 0x24e   :  { %6930 = vst [vmem:[#allocation19_spill] sm:$0xff] %v5782_v22  ;;  %v5795_v63 = vpop.permute.xlu1 %1496 }
 0x251   :  { %v5787_v31 = vpop.permute.xlu0 %1481 }
 0x252   :  { %6931 = vst [vmem:[#allocation20_spill] sm:$0xff] %v5787_v31  ;;  %v5809_v49 = vpop.permute.xlu1 %1518 }
 0x253   :  { %6933 = vst [vmem:[#allocation22_spill] sm:$0xff] %v5809_v49 }
 0x255   :  { %v5799_v38 = vpop.permute.xlu0 %1492 }
 0x256   :  { %6932 = vst [vmem:[#allocation21_spill] sm:$0xff] %v5799_v38 }
 0x259   :  { %v5818_v9 = vpop.permute.xlu0 %1514 }
 0x25a   :  { %6934 = vst [vmem:[#allocation23_spill] sm:$0xff] %v5818_v9 }
 0x2a0   :  { %v4879_v19 = vpop.f32.mrb[0].mxu1 }
 0x2a1   :  { %v1867_v25 = vsel %vm1675_vm4, %v4879_v19, -1e+30  ;;  %v1003_v34 = vpop.f32.mrb[1].mxu1 }
 0x2a2   :  { %v1931_v35 = vsel %vm744_vm3, %v1867_v25, -inf  ;;  %v1866_v28 = vsel %vm1674_vm5, %v1003_v34, -1e+30 }
 0x2a3   :  { %v1930_v37 = vsel %vm744_vm3, %v1866_v28, -inf }
 0x2a4   :  { %v1932_v32 = vmax.f32 %v1930_v37, %v1931_v35  ;;  %v4882_v50 = vpop.f32.mrb[2].mxu1 }
 0x2a5   :  { %v1869_v39 = vsel %vm1677_vm6, %v4882_v50, -1e+30  ;;  %v1013_v33 = vpop.f32.mrb[3].mxu1 }
 0x2a6   :  { %v1933_v27 = vrot.slane %v1932_v32, 4  ;;  %v1940_v41 = vsel %vm744_vm3, %v1869_v39, -inf  ;;  %v1868_v43 = vsel %vm6861_vm7, %v1013_v33, -1e+30  ;;  %v5826_v39 = vpop.permute.xlu1 %1529  ;;  %v5222_v33 = vld [vmem:[%s6820_s5] sm:$0xf] }
 0x2a7   :  { %v1939_v44 = vsel %vm744_vm3, %v1868_v43, -inf  ;;  %6935 = vst [vmem:[#allocation24_spill] sm:$0xff] %v5826_v39  ;;  %vm6870_vm7 = vcmp.gt.f32.partialorder %v5795_v63, 0.0 }
 0x2a8   :  { %v1934_v45 = vmax.f32 %v1932_v32, %v1933_v27  ;;  %v1941_v47 = vmax.f32 %v1939_v44, %v1940_v41  ;;  %v4885_v48 = vpop.f32.mrb[4].mxu1  ;;  %v5832_v27 = vrot.slane %v5222_v33, %v5484_v5 }
 0x2a9   :  { %v1871_v51 = vsel %vm6855_vm8, %v4885_v48, -1e+30  ;;  %v1023_v40 = vpop.f32.mrb[5].mxu1  ;;  %vm6863_vm8 = vcmp.gt.f32.partialorder %v5778_v29, 0.0 }
 0x2aa   :  { %v1935_v53 = vrot.slane %v1934_v45, 2  ;;  %v1942_v3 = vrot.slane %v1941_v47, 4  ;;  %v1949_v4 = vsel %vm744_vm3, %v1871_v51, -inf  ;;  %v1870_v6 = vsel %vm6852_vm9, %v1023_v40, -1e+30  ;;  %v5838_v51 = vpop.permute.xlu0 %1525 }
 0x2ab   :  { %v1948_v10 = vsel %vm744_vm3, %v1870_v6, -inf  ;;  %6936 = vst [vmem:[#allocation25_spill] sm:$0xff] %v5838_v51  ;;  %vm2309_vm9 = vcmask 1047559  }
 0x2ac   :  { %v1936_v13 = vmax.f32 %v1934_v45, %v1935_v53  ;;  %v1943_v19 = vmax.f32 %v1941_v47, %v1942_v3  ;;  %v1950_v25 = vmax.f32 %v1948_v10, %v1949_v4  ;;  %v4888_v34 = vpop.f32.mrb[6].mxu1 }
 0x2ad   :  { %v1873_v35 = vsel %vm6837_vm10, %v4888_v34, -1e+30  ;;  %v1033_v28 = vpop.f32.mrb[7].mxu1  ;;  %vm6850_vm10 = vcmp.gt.f32.partialorder %v5738_v0, 0.0 }
 0x2ae   :  { %v1944_v37 = vrot.slane %v1943_v19, 2  ;;  %v1951_v32 = vrot.slane %v1950_v25, 4  ;;  %v1958_v50 = vsel %vm744_vm3, %v1873_v35, -inf  ;;  %v1937_v41 = vrot.slane %v1936_v13, 1  ;;  %v56_v35 = vld [vmem:[%s6819_s4 + $0x40] sm:$0xff] }
 0x2af   :  { %v1872_v43 = vsel %vm6835_vm11, %v1033_v28, -1e+30  ;;  %v57_v28 = vld [vmem:[%s6819_s4 + $0x48] sm:$0xff]  ;;  %vm6845_vm11 = vcmp.gt.f32.partialorder %v5758_v11, 0.0 }
 0x2b0   :  { %v1945_v44 = vmax.f32 %v1943_v19, %v1944_v37  ;;  %v1952_v45 = vmax.f32 %v1950_v25, %v1951_v32  ;;  %v1957_v47 = vsel %vm744_vm3, %v1872_v43, -inf  ;;  %v4891_v48 = vpop.f32.mrb[8].mxu1  ;;  %v1938_v19 = vmax.f32 %v1936_v13, %v1937_v41  ;;  %v5855_v13 = vpop.permute.xlu1 %1606 }
 0x2b1   :  { %v1959_v40 = vmax.f32 %v1957_v47, %v1958_v50  ;;  %v1875_v53 = vsel %vm6833_vm12, %v4891_v48, -1e+30  ;;  %v1043_v3 = vpop.f32.mrb[9].mxu1  ;;  %v5857_v41 = vpack.c.bf16 %v57_v28, %v56_v35  ;;  %vm6839_vm12 = vcmp.gt.f32.partialorder %v5750_v8, 0.0 }
 0x2b2   :  { %v1946_v4 = vrot.slane %v1945_v44, 1  ;;  %v1953_v6 = vrot.slane %v1952_v45, 2  ;;  %v1967_v10 = vsel %vm744_vm3, %v1875_v53, -inf  ;;  %v1874_v34 = vsel %vm6831_vm13, %v1043_v3, -1e+30 }
 0x2b3   :  { %v1960_v25 = vrot.slane %v1959_v40, 4  ;;  %v1966_v50 = vsel %vm744_vm3, %v1874_v34, -inf  ;;  %5172 = vmatprep.subr.bf16.mxu0 %v5857_v41  ;;  %vm2294_vm13 = vcmask 1042434  }
 0x2b4   :  { %v1947_v37 = vmax.f32 %v1945_v44, %v1946_v4  ;;  %v1954_v32 = vmax.f32 %v1952_v45, %v1953_v6  ;;  %v4894_v33 = vpop.f32.mrb[10].mxu1  ;;  %v1968_v47 = vmax.f32 %v1966_v50, %v1967_v10  ;;  %v5866_v4 = vpop.permute.xlu0 %1602 }
 0x2b5   :  { %v1961_v43 = vmax.f32 %v1959_v40, %v1960_v25  ;;  %v1877_v48 = vsel %vm6826_vm15, %v4894_v33, -1e+30  ;;  %v1053_v53 = vpop.f32.mrb[11].mxu1  ;;  %vm6836_vm15 = vcmp.gt.f32.partialorder %v5780_v42, 0.0  ;;  %v2222_v25 = vadd.f32 %v5832_v27, %v1938_v19  ;;  %v5878_v19 = vpop.permute.xlu1 %1507 }
 0x2b6   :  { %v2223_v3 = vadd.f32 %v5832_v27, %v1947_v37  ;;  %v1955_v2 = vrot.slane %v1954_v32, 1  ;;  %v1976_v44 = vsel %vm744_vm3, %v1877_v48, -inf  ;;  %v1876_v45 = vsel %vm6827_vm0, %v1053_v53, -1e+30 }
 0x2b7   :  { %v1962_v40 = vrot.slane %v1961_v43, 2  ;;  %v1969_v6 = vrot.slane %v1968_v47, 4  ;;  %v1975_v10 = vsel %vm744_vm3, %v1876_v45, -inf  ;;  %vm6840_vm0 = vcmp.gt.f32.partialorder %v5782_v22, 0.0 }
 0x2b8   :  { %v2290_v34 = vrot.slane %v2223_v3, 7  ;;  %v1956_v35 = vmax.f32 %v1954_v32, %v1955_v2  ;;  %v1977_v28 = vmax.f32 %v1975_v10, %v1976_v44  ;;  %v4897_v37 = vpop.f32.mrb[12].mxu1 }
 0x2b9   :  { %v1963_v50 = vmax.f32 %v1961_v43, %v1962_v40  ;;  %v1970_v33 = vmax.f32 %v1968_v47, %v1969_v6  ;;  %v1879_v48 = vsel %vm6832_vm1, %v4897_v37, -1e+30  ;;  %v1063_v53 = vpop.f32.mrb[13].mxu1  ;;  %vm6846_vm1 = vcmp.gt.f32.partialorder %v5724_v57, 0.0  ;;  %v5885_v6 = vpop.permute.xlu0 %1503 }
 0x2ba   :  { %v2292_v17 = vsel %vm2291_vm14, %v2290_v34, %v2222_v25  ;;  %v2224_v45 = vadd.f32 %v5832_v27, %v1956_v35  ;;  %v1978_v16 = vrot.slane %v1977_v28, 4  ;;  %v1985_v5 = vsel %vm744_vm3, %v1879_v48, -inf  ;;  %6937 = vst [vmem:[#allocation26_spill] sm:$0xff] %v5885_v6 }
 0x2bb   :  { %v1964_v2 = vrot.slane %v1963_v50, 1  ;;  %v1971_v32 = vrot.slane %v1970_v33, 2  ;;  %v1878_v43 = vsel %vm6834_vm2, %v1063_v53, -1e+30  ;;  %vm6848_vm2 = vcmp.gt.f32.partialorder %v5726_v58, 0.0 }
 0x2bc   :  { %v2293_v47 = vrot.slane %v2224_v45, 6  ;;  %v1979_v3 = vmax.f32 %v1977_v28, %v1978_v16  ;;  %v1984_v44 = vsel %vm744_vm3, %v1878_v43, -inf  ;;  %v4900_v40 = vpop.f32.mrb[14].mxu1 }
 0x2bd   :  { %v1965_v10 = vmax.f32 %v1963_v50, %v1964_v2  ;;  %v1972_v25 = vmax.f32 %v1970_v33, %v1971_v32  ;;  %v1986_v34 = vmax.f32 %v1984_v44, %v1985_v5  ;;  %v1881_v35 = vsel %vm6836_vm15, %v4900_v40, -1e+30  ;;  %v1073_v37 = vpop.f32.mrb[15].mxu1  ;;  %v5897_v44 = vpop.permute.xlu1 %1540 }
 0x2be   :  { %v1980_v48 = vrot.slane %v1979_v3, 2  ;;  %v1994_v53 = vsel %vm744_vm3, %v1881_v35, -inf  ;;  %v1880_v16 = vsel %vm6840_vm0, %v1073_v37, -1e+30  ;;  %v2295_v28 = vsel %vm2294_vm13, %v2293_v47, %v2292_v17  ;;  %6938 = vst [vmem:[#allocation27_spill] sm:$0xff] %v5897_v44 }
 0x2bf   :  { %v2225_v45 = vadd.f32 %v5832_v27, %v1965_v10  ;;  %v1973_v43 = vrot.slane %v1972_v25, 1  ;;  %v1987_v50 = vrot.slane %v1986_v34, 4  ;;  %v1993_v5 = vsel %vm744_vm3, %v1880_v16, -inf }
 0x2c0   :  { %v1981_v33 = vmax.f32 %v1979_v3, %v1980_v48  ;;  %v1995_v2 = vmax.f32 %v1993_v5, %v1994_v53  ;;  %v4903_v32 = vpop.f32.mrb[16].mxu1  ;;  %vm2297_vm15 = vcmask 1043459   ;;  %v5905_v48 = vpop.permute.xlu0 %1536  ;;  %vm6849_vm0 = vcmp.gt.f32.partialorder %v5736_v62, 0.0 }
 0x2c1   :  { %v2296_v40 = vrot.slane %v2225_v45, 5  ;;  %v1974_v35 = vmax.f32 %v1972_v25, %v1973_v43  ;;  %v1988_v37 = vmax.f32 %v1986_v34, %v1987_v50  ;;  %v1883_v17 = vsel %vm6839_vm12, %v4903_v32, -1e+30  ;;  %v1083_v47 = vpop.f32.mrb[17].mxu1 }
 0x2c2   :  { %v1982_v10 = vrot.slane %v1981_v33, 1  ;;  %v1996_v22 = vrot.slane %v1995_v2, 4  ;;  %v2003_v16 = vsel %vm744_vm3, %v1883_v17, -inf  ;;  %v1882_v3 = vsel %vm6845_vm11, %v1083_v47, -1e+30 }
 0x2c3   :  { %v2226_v53 = vadd.f32 %v5832_v27, %v1974_v35  ;;  %v1989_v5 = vrot.slane %v1988_v37, 2  ;;  %v2002_v45 = vsel %vm744_vm3, %v1882_v3, -inf  ;;  %v2298_v25 = vsel %vm2297_vm15, %v2296_v40, %v2295_v28  ;;  %v5915_v28 = vpop.permute.xlu1 %1617 }
 0x2c4   :  { %v1983_v34 = vmax.f32 %v1981_v33, %v1982_v10  ;;  %v1997_v43 = vmax.f32 %v1995_v2, %v1996_v22  ;;  %v2004_v50 = vmax.f32 %v2002_v45, %v2003_v16  ;;  %v4906_v32 = vpop.f32.mrb[18].mxu1  ;;  %vm2300_vm12 = vcmask 1044484  }
 0x2c5   :  { %v2299_v17 = vrot.slane %v2226_v53, 4  ;;  %v1990_v8 = vmax.f32 %v1988_v37, %v1989_v5  ;;  %v1885_v47 = vsel %vm6846_vm1, %v4906_v32, -1e+30  ;;  %v1093_v11 = vpop.f32.mrb[19].mxu1  ;;  %vm2303_vm11 = vcmask 1045509   ;;  %v5921_v5 = vpop.permute.xlu0 %1613 }
 0x2c6   :  { %v2227_v35 = vadd.f32 %v5832_v27, %v1983_v34  ;;  %v1998_v42 = vrot.slane %v1997_v43, 2  ;;  %v2005_v24 = vrot.slane %v2004_v50, 4  ;;  %v2012_v3 = vsel %vm744_vm3, %v1885_v47, -inf }
 0x2c7   :  { %v1991_v22 = vrot.slane %v1990_v8, 1  ;;  %v1884_v33 = vsel %vm6848_vm2, %v1093_v11, -1e+30  ;;  %v2301_v2 = vsel %vm2300_vm12, %v2299_v17, %v2298_v25  ;;  %vm6851_vm1 = vcmp.gt.f32.partialorder %v5760_v14, 0.0 }
 0x2c8   :  { %v2302_v40 = vrot.slane %v2227_v35, 3  ;;  %v1999_v37 = vmax.f32 %v1997_v43, %v1998_v42  ;;  %v2006_v10 = vmax.f32 %v2004_v50, %v2005_v24  ;;  %v2011_v16 = vsel %vm744_vm3, %v1884_v33, -inf  ;;  %v4909_v53 = vpop.f32.mrb[20].mxu1 }
 0x2c9   :  { %v1992_v45 = vmax.f32 %v1990_v8, %v1991_v22  ;;  %v2013_v34 = vmax.f32 %v2011_v16, %v2012_v3  ;;  %v1887_v32 = vsel %vm6849_vm0, %v4909_v53, -1e+30  ;;  %v1103_v47 = vpop.f32.mrb[21].mxu1  ;;  %vm6853_vm2 = vcmp.gt.f32.partialorder %v5762_v15, 0.0  ;;  %v5933_v22 = vpop.permute.xlu1 %1551 }
 0x2ca   :  { %v2000_v11 = vrot.slane %v1999_v37, 1  ;;  %v2007_v58 = vrot.slane %v2006_v10, 2  ;;  %v2021_v25 = vsel %vm744_vm3, %v1887_v32, -inf  ;;  %v1886_v24 = vsel %vm6850_vm10, %v1103_v47, -1e+30  ;;  %6939 = vst [vmem:[#allocation28_spill] sm:$0xff] %v5933_v22 }
 0x2cb   :  { %v2228_v42 = vadd.f32 %v5832_v27, %v1992_v45  ;;  %v2014_v43 = vrot.slane %v2013_v34, 4  ;;  %v2020_v50 = vsel %vm744_vm3, %v1886_v24, -inf  ;;  %v2304_v17 = vsel %vm2303_vm11, %v2302_v40, %v2301_v2 }
 0x2cc   :  { %v2001_v8 = vmax.f32 %v1999_v37, %v2000_v11  ;;  %v2022_v35 = vmax.f32 %v2020_v50, %v2021_v25  ;;  %v4912_v3 = vpop.f32.mrb[22].mxu1  ;;  %vm2306_vm0 = vcmask 1046534   ;;  %v2008_v33 = vmax.f32 %v2006_v10, %v2007_v58  ;;  %v5941_v37 = vpop.permute.xlu0 %1547 }
 0x2cd   :  { %v2015_v16 = vmax.f32 %v2013_v34, %v2014_v43  ;;  %v1889_v53 = vsel %vm6851_vm1, %v4912_v3, -1e+30  ;;  %v1113_v32 = vpop.f32.mrb[23].mxu1  ;;  %v2305_v45 = vrot.slane %v2228_v42, 2  ;;  %vm6856_vm10 = vcmp.gt.f32.partialorder %v5768_v20, 0.0 }
 0x2ce   :  { %v2023_v47 = vrot.slane %v2022_v35, 4  ;;  %v2030_v2 = vsel %vm744_vm3, %v1889_v53, -inf  ;;  %v1888_v40 = vsel %vm6853_vm2, %v1113_v32, -1e+30  ;;  %v2229_v58 = vadd.f32 %v5832_v27, %v2001_v8 }
 0x2cf   :  { %v2016_v11 = vrot.slane %v2015_v16, 2  ;;  %v2029_v25 = vsel %vm744_vm3, %v1888_v40, -inf  ;;  %v2307_v10 = vsel %vm2306_vm0, %v2305_v45, %v2304_v17  ;;  %vm6860_vm1 = vcmp.gt.f32.partialorder %v5770_v21, 0.0  ;;  %v5951_v17 = vpop.permute.xlu1 %1595 }
 0x2d0   :  { %v2024_v34 = vmax.f32 %v2022_v35, %v2023_v47  ;;  %v2031_v24 = vmax.f32 %v2029_v25, %v2030_v2  ;;  %v4915_v42 = vpop.f32.mrb[24].mxu1  ;;  %v2009_v43 = vrot.slane %v2008_v33, 1  ;;  %v2308_v32 = vrot.slane %v2229_v58, 1  ;;  %v5960_v58 = vpop.permute.xlu0 %1591 }
 0x2d1   :  { %v2017_v50 = vmax.f32 %v2015_v16, %v2016_v11  ;;  %v1891_v3 = vsel %vm6856_vm10, %v4915_v42, -1e+30  ;;  %v1123_v53 = vpop.f32.mrb[25].mxu1  ;;  %vm6867_vm2 = vcmp.gt.f32.partialorder %v5776_v26, 0.0  ;;  %vm6864_vm10 = vcmp.gt.f32.partialorder %v5784_v46, 0.0 }
 0x2d2   :  { %v2025_v40 = vrot.slane %v2024_v34, 2  ;;  %v2032_v15 = vrot.slane %v2031_v24, 4  ;;  %v2039_v8 = vsel %vm744_vm3, %v1891_v3, -inf  ;;  %v1890_v45 = vsel %vm6860_vm1, %v1123_v53, -1e+30 }
 0x2d3   :  { %v2018_v35 = vrot.slane %v2017_v50, 1  ;;  %v2310_v16 = vsel %vm2309_vm9, %v2308_v32, %v2307_v10  ;;  %v2038_v11 = vsel %vm744_vm3, %v1890_v45, -inf  ;;  %v2010_v42 = vmax.f32 %v2008_v33, %v2009_v43 }
 0x2d4   :  { %v2026_v47 = vmax.f32 %v2024_v34, %v2025_v40  ;;  %v2033_v2 = vmax.f32 %v2031_v24, %v2032_v15  ;;  %4981 = vmatprep.mubr.msk.f32.mxu0 %vm744_vm3, %v2310_v16  ;;  %v4918_v25 = vpop.f32.mrb[26].mxu1  ;;  %v2040_v20 = vmax.f32 %v2038_v11, %v2039_v8  ;;  %vm6866_vm1 = vcmp.gt.f32.partialorder %v5787_v31, 0.0 }
 0x2d5   :  { %v2019_v3 = vmax.f32 %v2017_v50, %v2018_v35  ;;  %v1893_v21 = vsel %vm6867_vm2, %v4918_v25, -1e+30  ;;  %v1133_v53 = vpop.f32.mrb[27].mxu1  ;;  %v5971_v35 = vpop.permute.xlu1 %1628  ;;  %vm6873_vm2 = vcmp.gt.f32.partialorder %v5809_v49, 0.0 }
 0x2d6   :  { %v2027_v14 = vrot.slane %v2026_v47, 1  ;;  %v2034_v10 = vrot.slane %v2033_v2, 2  ;;  %v2048_v32 = vsel %vm744_vm3, %v1893_v21, -inf  ;;  %v1892_v15 = vsel %vm6863_vm8, %v1133_v53, -1e+30 }
 0x2d7   :  { %v2231_v34 = vadd.f32 %v5832_v27, %v2019_v3  ;;  %v2041_v24 = vrot.slane %v2040_v20, 4  ;;  %v2047_v33 = vsel %vm744_vm3, %v1892_v15, -inf  ;;  %v2230_v21 = vadd.f32 %v5832_v27, %v2010_v42 }
 0x2d8   :  { %v2028_v43 = vmax.f32 %v2026_v47, %v2027_v14  ;;  %v2035_v50 = vmax.f32 %v2033_v2, %v2034_v10  ;;  %v2049_v40 = vmax.f32 %v2047_v33, %v2048_v32  ;;  %v4921_v8 = vpop.f32.mrb[28].mxu1  ;;  %v5978_v14 = vpop.permute.xlu0 %1624  ;;  %vm6869_vm8 = vcmp.gt.f32.partialorder %v5799_v38, 0.0 }
 0x2d9   :  { %v2311_v45 = vrot.slane %v2231_v34, 7  ;;  %v2042_v16 = vmax.f32 %v2040_v20, %v2041_v24  ;;  %v1895_v11 = vsel %vm6864_vm10, %v4921_v8, -1e+30  ;;  %v1143_v25 = vpop.f32.mrb[29].mxu1  ;;  %vm1707_vm10 = vcmp.gt.f32.partialorder %v5878_v19, 0.0 }
 0x2da   :  { %v2232_v3 = vadd.f32 %v5832_v27, %v2028_v43  ;;  %v2036_v53 = vrot.slane %v2035_v50, 1  ;;  %v2050_v15 = vrot.slane %v2049_v40, 4  ;;  %v2057_v29 = vsel %vm744_vm3, %v1895_v11, -inf }
 0x2db   :  { %v2312_v47 = vsel %vm2291_vm14, %v2311_v45, %v2230_v21  ;;  %v2043_v2 = vrot.slane %v2042_v16, 2  ;;  %v1894_v20 = vsel %vm6866_vm1, %v1143_v25, -1e+30  ;;  %vm6872_vm1 = vcmp.gt.f32.partialorder %v5885_v6, 0.0 }
 0x2dc   :  { %v2313_v42 = vrot.slane %v2232_v3, 6  ;;  %v2037_v10 = vmax.f32 %v2035_v50, %v2036_v53  ;;  %v2051_v32 = vmax.f32 %v2049_v40, %v2050_v15  ;;  %v2056_v34 = vsel %vm744_vm3, %v1894_v20, -inf  ;;  %v4924_v24 = vpop.f32.mrb[30].mxu1  ;;  %v5991_v50 = vpop.permute.xlu1 %1562 }
 0x2dd   :  { %v2044_v33 = vmax.f32 %v2042_v16, %v2043_v2  ;;  %v2058_v43 = vmax.f32 %v2056_v34, %v2057_v29  ;;  %v1897_v8 = vsel %vm6870_vm7, %v4924_v24, -1e+30  ;;  %v1153_v11 = vpop.f32.mrb[31].mxu1  ;;  %v5998_v2 = vpop.permute.xlu0 %1558  ;;  %vm6879_vm7 = vcmp.gt.f32.partialorder %v5826_v39, 0.0 }
 0x2de   :  { %v2314_v21 = vsel %vm2294_vm13, %v2313_v42, %v2312_v47  ;;  %v2233_v45 = vadd.f32 %v5832_v27, %v2037_v10  ;;  %v2052_v31 = vrot.slane %v2051_v32, 2  ;;  %v2066_v25 = vsel %vm744_vm3, %v1897_v8, -inf }
 0x2df   :  { %v2045_v40 = vrot.slane %v2044_v33, 1  ;;  %v2059_v16 = vrot.slane %v2058_v43, 4  ;;  %v1896_v29 = vsel %vm6869_vm8, %v1153_v11, -1e+30  ;;  %vm6876_vm8 = vcmp.gt.f32.partialorder %v5818_v9, 0.0 }
 0x2e0   :  { %v2315_v3 = vrot.slane %v2233_v45, 5  ;;  %v2053_v53 = vmax.f32 %v2051_v32, %v2052_v31  ;;  %v2065_v15 = vsel %vm744_vm3, %v1896_v29, -inf  ;;  %v4927_v47 = vpop.f32.mrb[32].mxu1 }
 0x2e1   :  { %v2046_v20 = vmax.f32 %v2044_v33, %v2045_v40  ;;  %v2060_v42 = vmax.f32 %v2058_v43, %v2059_v16  ;;  %v2067_v10 = vmax.f32 %v2065_v15, %v2066_v25  ;;  %v1899_v34 = vsel %vm1707_vm10, %v4927_v47, -1e+30  ;;  %v1163_v24 = vpop.f32.mrb[33].mxu1 }
 0x2e2   :  { %v2316_v8 = vsel %vm2297_vm15, %v2315_v3, %v2314_v21  ;;  %v2054_v38 = vrot.slane %v2053_v53, 1  ;;  %v2075_v11 = vsel %vm744_vm3, %v1899_v34, -inf  ;;  %v1898_v31 = vsel %vm6872_vm1, %v1163_v24, -1e+30  ;;  %v6010_v21 = vpop.permute.xlu1 %1639 }
 0x2e3   :  { %v2234_v32 = vadd.f32 %v5832_v27, %v2046_v20  ;;  %v2061_v45 = vrot.slane %v2060_v42, 2  ;;  %v2068_v29 = vrot.slane %v2067_v10, 4  ;;  %v2074_v33 = vsel %vm744_vm3, %v1898_v31, -inf  ;;  %6940 = vst [vmem:[#allocation29_spill] sm:$0xff] %v6010_v21 }
 0x2e4   :  { %v2055_v43 = vmax.f32 %v2053_v53, %v2054_v38  ;;  %v2076_v25 = vmax.f32 %v2074_v33, %v2075_v11  ;;  %v4930_v40 = vpop.f32.mrb[34].mxu1  ;;  %v6018_v38 = vpop.permute.xlu0 %1635  ;;  %vm6878_vm1 = vcmp.gt.f32.partialorder %v5838_v51, 0.0 }
 0x2e5   :  { %v2317_v16 = vrot.slane %v2234_v32, 4  ;;  %v2062_v3 = vmax.f32 %v2060_v42, %v2061_v45  ;;  %v2069_v15 = vmax.f32 %v2067_v10, %v2068_v29  ;;  %v1901_v47 = vsel %vm6873_vm2, %v4930_v40, -1e+30  ;;  %v1173_v20 = vpop.f32.mrb[35].mxu1  ;;  %6941 = vst [vmem:[#allocation30_spill] sm:$0xff] %v6018_v38 }
 0x2e6   :  { %v2235_v34 = vadd.f32 %v5832_v27, %v2055_v43  ;;  %v2077_v24 = vrot.slane %v2076_v25, 4  ;;  %v2084_v31 = vsel %vm744_vm3, %v1901_v47, -inf  ;;  %v1900_v6 = vsel %vm6876_vm8, %v1173_v20, -1e+30 }
 0x2e7   :  { %v2063_v53 = vrot.slane %v2062_v3, 1  ;;  %v2070_v11 = vrot.slane %v2069_v15, 2  ;;  %v2083_v32 = vsel %vm744_vm3, %v1900_v6, -inf  ;;  %v2318_v42 = vsel %vm2300_vm12, %v2317_v16, %v2316_v8  ;;  %v6029_v16 = vpop.permute.xlu1 %1573 }
 0x2e8   :  { %v2319_v10 = vrot.slane %v2235_v34, 3  ;;  %v2078_v45 = vmax.f32 %v2076_v25, %v2077_v24  ;;  %v2085_v29 = vmax.f32 %v2083_v32, %v2084_v31  ;;  %v4933_v33 = vpop.f32.mrb[36].mxu1  ;;  %vm6883_vm2 = vcmp.gt.f32.partialorder %v5897_v44, 0.0  ;;  %v6035_v32 = vpop.permute.xlu0 %1569 }
 0x2e9   :  { %v2064_v43 = vmax.f32 %v2062_v3, %v2063_v53  ;;  %v2071_v40 = vmax.f32 %v2069_v15, %v2070_v11  ;;  %v1903_v47 = vsel %vm6879_vm7, %v4933_v33, -1e+30  ;;  %v1183_v20 = vpop.f32.mrb[37].mxu1  ;;  %vm6882_vm8 = vcmp.gt.f32.partialorder %v5905_v48, 0.0  ;;  %6942 = vst [vmem:[#allocation31_spill] sm:$0xff] %v6035_v32 }
 0x2ea   :  { %v2079_v9 = vrot.slane %v2078_v45, 2  ;;  %v2086_v49 = vrot.slane %v2085_v29, 4  ;;  %v2093_v6 = vsel %vm744_vm3, %v1903_v47, -inf  ;;  %v1902_v8 = vsel %vm6878_vm1, %v1183_v20, -1e+30 }
 0x2eb   :  { %v2236_v25 = vadd.f32 %v5832_v27, %v2064_v43  ;;  %v2072_v34 = vrot.slane %v2071_v40, 1  ;;  %v2092_v24 = vsel %vm744_vm3, %v1902_v8, -inf  ;;  %v2320_v3 = vsel %vm2303_vm11, %v2319_v10, %v2318_v42 }
 0x2ec   :  { %v2080_v15 = vmax.f32 %v2078_v45, %v2079_v9  ;;  %v2087_v31 = vmax.f32 %v2085_v29, %v2086_v49  ;;  %v2094_v53 = vmax.f32 %v2092_v24, %v2093_v6  ;;  %v4936_v11 = vpop.f32.mrb[38].mxu1  ;;  %vm6884_vm1 = vcmp.gt.f32.partialorder %v5933_v22, 0.0 }
 0x2ed   :  { %v2321_v33 = vrot.slane %v2236_v25, 2  ;;  %v2073_v47 = vmax.f32 %v2071_v40, %v2072_v34  ;;  %v1905_v20 = vsel %vm6883_vm2, %v4936_v11, -1e+30  ;;  %v1193_v51 = vpop.f32.mrb[39].mxu1  ;;  %vm6886_vm7 = vcmp.gt.f32.partialorder %v5941_v37, 0.0  ;;  %v6047_v34 = vpop.permute.xlu1 %1650 }
 0x2ee   :  { %v2088_v43 = vrot.slane %v2087_v31, 2  ;;  %v2095_v8 = vrot.slane %v2094_v53, 4  ;;  %v2102_v42 = vsel %vm744_vm3, %v1905_v20, -inf  ;;  %v1904_v49 = vsel %vm6882_vm8, %v1193_v51, -1e+30  ;;  %6943 = vst [vmem:[#allocation32_spill] sm:$0xff] %v6047_v34 }
 0x2ef   :  { %v2237_v10 = vadd.f32 %v5832_v27, %v2073_v47  ;;  %v2322_v9 = vsel %vm2306_vm0, %v2321_v33, %v2320_v3  ;;  %v2081_v45 = vrot.slane %v2080_v15, 1  ;;  %v2101_v6 = vsel %vm744_vm3, %v1904_v49, -inf  ;;  %v6053_v3 = vpop.permute.xlu0 %1646 }
 0x2f0   :  { %v2089_v29 = vmax.f32 %v2087_v31, %v2088_v43  ;;  %v2096_v40 = vmax.f32 %v2094_v53, %v2095_v8  ;;  %v4939_v25 = vpop.f32.mrb[40].mxu1  ;;  %v2103_v11 = vmax.f32 %v2101_v6, %v2102_v42  ;;  %vm6888_vm8 = vcmp.gt.f32.partialorder %v5991_v50, 0.0  ;;  %6944 = vst [vmem:[#allocation33_spill] sm:$0xff] %v6053_v3 }
 0x2f1   :  { %v2323_v24 = vrot.slane %v2237_v10, 1  ;;  %v1907_v47 = vsel %vm6884_vm1, %v4939_v25, -1e+30  ;;  %v1203_v20 = vpop.f32.mrb[41].mxu1  ;;  %vm6887_vm2 = vcmp.gt.f32.partialorder %v5998_v2, 0.0  ;;  %v2082_v43 = vmax.f32 %v2080_v15, %v2081_v45  ;;  %v6069_v45 = vpop.permute.xlu1 %1584 }
 0x2f2   :  { %v2090_v44 = vrot.slane %v2089_v29, 1  ;;  %v2097_v39 = vrot.slane %v2096_v40, 2  ;;  %v2111_v51 = vsel %vm744_vm3, %v1907_v47, -inf  ;;  %v2104_v31 = vrot.slane %v2103_v11, 4 }
 0x2f3   :  { %v1906_v53 = vsel %vm6886_vm7, %v1203_v20, -1e+30  ;;  %v2324_v33 = vsel %vm2309_vm9, %v2323_v24, %v2322_v9  ;;  %vm6891_vm1 = vcmp.gt.f32.partialorder %v6029_v16, 0.0  ;;  %vm6890_vm7 = vcmp.gt.f32.partialorder %v6035_v32, 0.0 }
 0x2f4   :  { %v2091_v8 = vmax.f32 %v2089_v29, %v2090_v44  ;;  %v2098_v42 = vmax.f32 %v2096_v40, %v2097_v39  ;;  %v2110_v10 = vsel %vm744_vm3, %v1906_v53, -inf  ;;  %4982 = vmatmul.mubr.msk.f32.vlgmr.msra.gmra.mrb[4].mxu0 %vm744_vm3, %v2324_v33  ;;  %v4942_v49 = vpop.f32.mrb[42].mxu1  ;;  %v2105_v6 = vmax.f32 %v2103_v11, %v2104_v31  ;;  %v6074_v53 = vpop.permute.xlu0 %1580 }
 0x2f5   :  { %v2112_v25 = vmax.f32 %v2110_v10, %v2111_v51  ;;  %v1909_v47 = vsel %vm6888_vm8, %v4942_v49, -1e+30  ;;  %v1213_v22 = vpop.f32.mrb[43].mxu1  ;;  %5174 = vmatpush3.bf16.msra.mxu0 %v5857_v41  ;;  %v2238_v11 = vadd.f32 %v5832_v27, %v2082_v43  ;;  %6945 = vst [vmem:[#allocation34_spill] sm:$0xff] %v6074_v53  ;;  %vm6893_vm8 = vcmp.gt.f32.partialorder %v6074_v53, 0.0 }
 0x2f6   :  { %v2239_v9 = vadd.f32 %v5832_v27, %v2091_v8  ;;  %v2099_v15 = vrot.slane %v2098_v42, 1  ;;  %v2120_v39 = vsel %vm744_vm3, %v1909_v47, -inf  ;;  %v1908_v44 = vsel %vm6887_vm2, %v1213_v22, -1e+30 }
 0x2f7   :  { %v2106_v29 = vrot.slane %v2105_v6, 2  ;;  %v2113_v40 = vrot.slane %v2112_v25, 4  ;;  %v2119_v24 = vsel %vm744_vm3, %v1908_v44, -inf  ;;  %vm6898_vm2 = vcmp.gt.f32.partialorder %v6069_v45, 0.0 }
 0x2f8   :  { %v2325_v20 = vrot.slane %v2239_v9, 7  ;;  %v2100_v41 = vmax.f32 %v2098_v42, %v2099_v15  ;;  %v2121_v51 = vmax.f32 %v2119_v24, %v2120_v39  ;;  %v4945_v31 = vpop.f32.mrb[44].mxu1 }
 0x2f9   :  { %v2107_v33 = vmax.f32 %v2105_v6, %v2106_v29  ;;  %v2114_v8 = vmax.f32 %v2112_v25, %v2113_v40  ;;  %v1911_v22 = vsel %vm6891_vm1, %v4945_v31, -1e+30  ;;  %v1223_v10 = vpop.f32.mrb[45].mxu1  ;;  %vm6895_vm1 = vcmp.gt.f32.partialorder %v5960_v58, 0.0 }
 0x2fa   :  { %v2326_v49 = vsel %vm2291_vm14, %v2325_v20, %v2238_v11  ;;  %v2240_v47 = vadd.f32 %v5832_v27, %v2100_v41  ;;  %v2122_v44 = vrot.slane %v2121_v51, 4  ;;  %v2129_v43 = vsel %vm744_vm3, %v1911_v22, -inf }
 0x2fb   :  { %v2108_v42 = vrot.slane %v2107_v33, 1  ;;  %v2115_v9 = vrot.slane %v2114_v8, 2  ;;  %v1910_v15 = vsel %vm6890_vm7, %v1223_v10, -1e+30  ;;  %vm6894_vm7 = vcmp.gt.f32.partialorder %v5951_v17, 0.0 }
 0x2fc   :  { %v2327_v6 = vrot.slane %v2240_v47, 6  ;;  %v2123_v25 = vmax.f32 %v2121_v51, %v2122_v44  ;;  %v2128_v39 = vsel %vm744_vm3, %v1910_v15, -inf  ;;  %v4948_v29 = vpop.f32.mrb[46].mxu1 }
 0x2fd   :  { %v2109_v40 = vmax.f32 %v2107_v33, %v2108_v42  ;;  %v2116_v24 = vmax.f32 %v2114_v8, %v2115_v9  ;;  %v2130_v11 = vmax.f32 %v2128_v39, %v2129_v43  ;;  %v1913_v20 = vsel %vm6898_vm2, %v4948_v29, -1e+30  ;;  %v1233_v41 = vpop.f32.mrb[47].mxu1 }
 0x2fe   :  { %v2124_v31 = vrot.slane %v2123_v25, 2  ;;  %v2138_v22 = vsel %vm744_vm3, %v1913_v20, -inf  ;;  %v1912_v10 = vsel %vm6893_vm8, %v1233_v41, -1e+30  ;;  %v2328_v32 = vsel %vm2294_vm13, %v2327_v6, %v2326_v49 }
 0x2ff   :  { %v2241_v51 = vadd.f32 %v5832_v27, %v2109_v40  ;;  %v2117_v47 = vrot.slane %v2116_v24, 1  ;;  %v2131_v44 = vrot.slane %v2130_v11, 4  ;;  %v2137_v33 = vsel %vm744_vm3, %v1912_v10, -inf }
 0x300   :  { %v2125_v8 = vmax.f32 %v2123_v25, %v2124_v31  ;;  %v2139_v43 = vmax.f32 %v2137_v33, %v2138_v22  ;;  %v4951_v42 = vpop.f32.mrb[48].mxu1  ;;  %vm6896_vm8 = vcmp.gt.f32.partialorder %v5855_v13, 0.0  ;;  %vm6901_vm2 = vcmp.gt.f32.partialorder %v5978_v14, 0.0 }
 0x301   :  { %v2329_v9 = vrot.slane %v2241_v51, 5  ;;  %v2118_v15 = vmax.f32 %v2116_v24, %v2117_v47  ;;  %v2132_v39 = vmax.f32 %v2130_v11, %v2131_v44  ;;  %v1915_v29 = vsel %vm6894_vm7, %v4951_v42, -1e+30  ;;  %v1243_v49 = vpop.f32.mrb[49].mxu1 }
 0x302   :  { %v2126_v6 = vrot.slane %v2125_v8, 1  ;;  %v2140_v40 = vrot.slane %v2139_v43, 4  ;;  %v2147_v20 = vsel %vm744_vm3, %v1915_v29, -inf  ;;  %v1914_v41 = vsel %vm6895_vm1, %v1243_v49, -1e+30 }
 0x303   :  { %v2242_v10 = vadd.f32 %v5832_v27, %v2118_v15  ;;  %v2133_v53 = vrot.slane %v2132_v39, 2  ;;  %v2146_v25 = vsel %vm744_vm3, %v1914_v41, -inf  ;;  %v2330_v31 = vsel %vm2297_vm15, %v2329_v9, %v2328_v32 }
 0x304   :  { %v2127_v24 = vmax.f32 %v2125_v8, %v2126_v6  ;;  %v2141_v11 = vmax.f32 %v2139_v43, %v2140_v40  ;;  %v2148_v22 = vmax.f32 %v2146_v25, %v2147_v20  ;;  %v4954_v51 = vpop.f32.mrb[50].mxu1  ;;  %vm6897_vm7 = vcmp.gt.f32.partialorder %v5866_v4, 0.0 }
 0x305   :  { %v2331_v47 = vrot.slane %v2242_v10, 4  ;;  %v2134_v44 = vmax.f32 %v2132_v39, %v2133_v53  ;;  %v1917_v33 = vsel %vm6896_vm8, %v4954_v51, -1e+30  ;;  %v1253_v42 = vpop.f32.mrb[51].mxu1  ;;  %vm6902_vm1 = vcmp.gt.f32.partialorder %v5915_v28, 0.0 }
 0x306   :  { %v2243_v15 = vadd.f32 %v5832_v27, %v2127_v24  ;;  %v2142_v29 = vrot.slane %v2141_v11, 2  ;;  %v2149_v49 = vrot.slane %v2148_v22, 4  ;;  %v2156_v32 = vsel %vm744_vm3, %v1917_v33, -inf }
 0x307   :  { %v2135_v8 = vrot.slane %v2134_v44, 1  ;;  %v1916_v43 = vsel %vm6897_vm7, %v1253_v42, -1e+30  ;;  %v2332_v9 = vsel %vm2300_vm12, %v2331_v47, %v2330_v31  ;;  %vm6899_vm8 = vcmp.gt.f32.partialorder %v5921_v5, 0.0 }
 0x308   :  { %v2333_v6 = vrot.slane %v2243_v15, 3  ;;  %v2143_v53 = vmax.f32 %v2141_v11, %v2142_v29  ;;  %v2150_v39 = vmax.f32 %v2148_v22, %v2149_v49  ;;  %v2155_v40 = vsel %vm744_vm3, %v1916_v43, -inf  ;;  %v4957_v20 = vpop.f32.mrb[52].mxu1 }
 0x309   :  { %v2136_v41 = vmax.f32 %v2134_v44, %v2135_v8  ;;  %v2157_v10 = vmax.f32 %v2155_v40, %v2156_v32  ;;  %v1919_v25 = vsel %vm6902_vm1, %v4957_v20, -1e+30  ;;  %v1263_v24 = vpop.f32.mrb[53].mxu1  ;;  %vm6900_vm7 = vcmp.gt.f32.partialorder %v5971_v35, 0.0 }
 0x30a   :  { %v2144_v51 = vrot.slane %v2143_v53, 1  ;;  %v2151_v33 = vrot.slane %v2150_v39, 2  ;;  %v2165_v42 = vsel %vm744_vm3, %v1919_v25, -inf  ;;  %v1918_v31 = vsel %vm6899_vm8, %v1263_v24, -1e+30 }
 0x30b   :  { %v2244_v11 = vadd.f32 %v5832_v27, %v2136_v41  ;;  %v2158_v22 = vrot.slane %v2157_v10, 4  ;;  %v2164_v47 = vsel %vm744_vm3, %v1918_v31, -inf  ;;  %v2334_v15 = vsel %vm2303_vm11, %v2333_v6, %v2332_v9 }
 0x30c   :  { %v2145_v44 = vmax.f32 %v2143_v53, %v2144_v51  ;;  %v2166_v29 = vmax.f32 %v2164_v47, %v2165_v42  ;;  %v4960_v49 = vpop.f32.mrb[54].mxu1  ;;  %v2152_v32 = vmax.f32 %v2150_v39, %v2151_v33  ;;  %v6134_v39 = vpop.permute.xlu1 %1661  ;;  %vm6903_vm8 = vcmp.gt.f32.partialorder %v6010_v21, 0.0 }
 0x30d   :  { %v2159_v8 = vmax.f32 %v2157_v10, %v2158_v22  ;;  %v1921_v43 = vsel %vm6900_vm7, %v4960_v49, -1e+30  ;;  %v1273_v40 = vpop.f32.mrb[55].mxu1  ;;  %v2335_v20 = vrot.slane %v2244_v11, 2  ;;  %6946 = vst [vmem:[#allocation35_spill] sm:$0xff] %v6134_v39  ;;  %vm6906_vm7 = vcmp.gt.f32.partialorder %v6018_v38, 0.0 }
 0x30e   :  { %v2167_v41 = vrot.slane %v2166_v29, 4  ;;  %v2174_v25 = vsel %vm744_vm3, %v1921_v43, -inf  ;;  %v1920_v9 = vsel %vm6901_vm2, %v1273_v40, -1e+30  ;;  %v2245_v53 = vadd.f32 %v5832_v27, %v2145_v44  ;;  %v6142_v40 = vpop.permute.xlu0 %1657 }
 0x30f   :  { %v2160_v6 = vrot.slane %v2159_v8, 2  ;;  %v2173_v24 = vsel %vm744_vm3, %v1920_v9, -inf  ;;  %v2336_v51 = vsel %vm2306_vm0, %v2335_v20, %v2334_v15  ;;  %v2153_v31 = vrot.slane %v2152_v32, 1  ;;  %6947 = vst [vmem:[#allocation36_spill] sm:$0xff] %v6142_v40 }
 0x310   :  { %v2168_v10 = vmax.f32 %v2166_v29, %v2167_v41  ;;  %v2175_v33 = vmax.f32 %v2173_v24, %v2174_v25  ;;  %v4963_v42 = vpop.f32.mrb[56].mxu1  ;;  %v2337_v49 = vrot.slane %v2245_v53, 1  ;;  %vm6907_vm2 = vcmp.gt.f32.partialorder %v6047_v34, 0.0  ;;  %v6153_v38 = vpop.permute.xlu1 %1672 }
 0x311   :  { %v2161_v11 = vmax.f32 %v2159_v8, %v2160_v6  ;;  %v1923_v22 = vsel %vm6903_vm8, %v4963_v42, -1e+30  ;;  %v1283_v47 = vpop.f32.mrb[57].mxu1  ;;  %vm6908_vm1 = vcmp.gt.f32.partialorder %v6053_v3, 0.0  ;;  %vm1735_vm8 = vcmp.gt.f32.partialorder %v6134_v39, 0.0  ;;  %6948 = vst [vmem:[#allocation37_spill] sm:$0xff] %v6153_v38 }
 0x312   :  { %v2169_v44 = vrot.slane %v2168_v10, 2  ;;  %v2176_v15 = vrot.slane %v2175_v33, 4  ;;  %v2183_v43 = vsel %vm744_vm3, %v1923_v22, -inf  ;;  %v1922_v20 = vsel %vm6906_vm7, %v1283_v47, -1e+30 }
 0x313   :  { %v2162_v29 = vrot.slane %v2161_v11, 1  ;;  %v2338_v8 = vsel %vm2309_vm9, %v2337_v49, %v2336_v51  ;;  %v2182_v9 = vsel %vm744_vm3, %v1922_v20, -inf  ;;  %v2154_v24 = vmax.f32 %v2152_v32, %v2153_v31 }
 0x314   :  { %v2170_v41 = vmax.f32 %v2168_v10, %v2169_v44  ;;  %v2177_v25 = vmax.f32 %v2175_v33, %v2176_v15  ;;  %4984 = vmatprep.mubr.msk.f32.mxu0 %vm744_vm3, %v2338_v8  ;;  %v4966_v6 = vpop.f32.mrb[58].mxu1  ;;  %v2184_v42 = vmax.f32 %v2182_v9, %v2183_v43  ;;  %vm1734_vm7 = vcmp.gt.f32.partialorder %v6142_v40, 0.0 }
 0x315   :  { %v2163_v53 = vmax.f32 %v2161_v11, %v2162_v29  ;;  %v1925_v22 = vsel %vm6907_vm2, %v4966_v6, -1e+30  ;;  %v1293_v21 = vpop.f32.mrb[59].mxu1  ;;  %vm1737_vm2 = vcmp.gt.f32.partialorder %v6153_v38, 0.0  ;;  %v6162_v29 = vpop.permute.xlu0 %1668  ;;  %v2246_v20 = vadd.f32 %v5832_v27, %v2154_v24 }
 0x316   :  { %v2171_v47 = vrot.slane %v2170_v41, 1  ;;  %v2178_v51 = vrot.slane %v2177_v25, 2  ;;  %v2192_v10 = vsel %vm744_vm3, %v1925_v22, -inf  ;;  %v1924_v33 = vsel %vm6908_vm1, %v1293_v21, -1e+30  ;;  %6949 = vst [vmem:[#allocation38_spill] sm:$0xff] %v6162_v29 }
 0x317   :  { %v2247_v49 = vadd.f32 %v5832_v27, %v2163_v53  ;;  %v2185_v44 = vrot.slane %v2184_v42, 4  ;;  %v2191_v32 = vsel %vm744_vm3, %v1924_v33, -inf  ;;  %vm6915_vm1 = vcmp.gt.f32.partialorder %v6162_v29, 0.0 }
 0x318   :  { %v2172_v31 = vmax.f32 %v2170_v41, %v2171_v47  ;;  %v2179_v11 = vmax.f32 %v2177_v25, %v2178_v51  ;;  %v2193_v15 = vmax.f32 %v2191_v32, %v2192_v10  ;;  %v4969_v43 = vpop.f32.mrb[60].mxu1 }
 0x319   :  { %v2339_v8 = vrot.slane %v2247_v49, 7  ;;  %v2186_v9 = vmax.f32 %v2184_v42, %v2185_v44  ;;  %v1927_v21 = vsel %vm1735_vm8, %v4969_v43, -1e+30  ;;  %v1303_v6 = vpop.f32.mrb[61].mxu1 }
 0x31a   :  { %v2248_v53 = vadd.f32 %v5832_v27, %v2172_v31  ;;  %v2180_v22 = vrot.slane %v2179_v11, 1  ;;  %v2194_v33 = vrot.slane %v2193_v15, 4  ;;  %v2201_v41 = vsel %vm744_vm3, %v1927_v21, -inf }
 0x31b   :  { %v2340_v25 = vsel %vm2291_vm14, %v2339_v8, %v2246_v20  ;;  %v2187_v47 = vrot.slane %v2186_v9, 2  ;;  %v1926_v51 = vsel %vm1734_vm7, %v1303_v6, -1e+30 }
 0x31c   :  { %v2341_v24 = vrot.slane %v2248_v53, 6  ;;  %v2181_v42 = vmax.f32 %v2179_v11, %v2180_v22  ;;  %v2195_v10 = vmax.f32 %v2193_v15, %v2194_v33  ;;  %v2200_v49 = vsel %vm744_vm3, %v1926_v51, -inf  ;;  %v4972_v44 = vpop.f32.mrb[62].mxu1 }
 0x31d   :  { %v2188_v32 = vmax.f32 %v2186_v9, %v2187_v47  ;;  %v2202_v31 = vmax.f32 %v2200_v49, %v2201_v41  ;;  %v1929_v43 = vsel %vm1737_vm2, %v4972_v44, -1e+30  ;;  %v1313_v21 = vpop.f32.mrb[63].mxu1 }
 0x31e   :  { %v2249_v20 = vadd.f32 %v5832_v27, %v2181_v42  ;;  %v2196_v8 = vrot.slane %v2195_v10, 2  ;;  %v2210_v40 = vsel %vm744_vm3, %v1929_v43, -inf  ;;  %v1928_v6 = vsel %vm6915_vm1, %v1313_v21, -1e+30 }
 0x31f   :  { %v2189_v53 = vrot.slane %v2188_v32, 1  ;;  %v2203_v11 = vrot.slane %v2202_v31, 4  ;;  %v2209_v15 = vsel %vm744_vm3, %v1928_v6, -inf  ;;  %v2342_v22 = vsel %vm2294_vm13, %v2341_v24, %v2340_v25 }
 0x320   :  { %v2343_v9 = vrot.slane %v2249_v20, 5  ;;  %v2197_v33 = vmax.f32 %v2195_v10, %v2196_v8  ;;  %v2211_v41 = vmax.f32 %v2209_v15, %v2210_v40  ;;  %vm2586_vm1 = vcmask 392192  }
 0x321   :  { %v2190_v47 = vmax.f32 %v2188_v32, %v2189_v53  ;;  %v2204_v51 = vmax.f32 %v2202_v31, %v2203_v11 }
 0x322   :  { %v2198_v49 = vrot.slane %v2197_v33, 1  ;;  %v2212_v44 = vrot.slane %v2211_v41, 4  ;;  %v2344_v42 = vsel %vm2297_vm15, %v2343_v9, %v2342_v22  ;;  %v2552_v9 = vld [vmem:[%s6821_s6 + $0x8] sm:$0xff] }
 0x323   :  { %v2250_v43 = vadd.f32 %v5832_v27, %v2190_v47  ;;  %v2205_v38 = vrot.slane %v2204_v51, 2  ;;  %v5223_v47 = vld [vmem:[%s6816_s1 + $0x8] sm:$0xff] }
 0x324   :  { %v2199_v29 = vmax.f32 %v2197_v33, %v2198_v49  ;;  %v2213_v21 = vmax.f32 %v2211_v41, %v2212_v44  ;;  %v2553_v33 = vld [vmem:[%s6821_s6 + $0x10] sm:$0xff]  ;;  %v2554_v49 = vld [vmem:[%s6821_s6 + $0x18] sm:$0xff] }
 0x325   :  { %v2345_v39 = vrot.slane %v2250_v43, 4  ;;  %v2206_v3 = vmax.f32 %v2204_v51, %v2205_v38  ;;  %v5224_v51 = vld [vmem:[%s6816_s1] sm:$0xff]  ;;  %v5183_v44 = vpack.c.bf16 %v2554_v49, %v2553_v33  ;;  %v2556_v43 = vld [vmem:[%s6821_s6 + $0x28] sm:$0xff] }
 0x326   :  { %v2251_v6 = vadd.f32 %v5832_v27, %v2199_v29  ;;  %v2214_v34 = vrot.slane %v2213_v21, 2 }
 0x327   :  { %v2207_v25 = vrot.slane %v2206_v3, 1  ;;  %v2346_v24 = vsel %vm2300_vm12, %v2345_v39, %v2344_v42  ;;  %v2555_v42 = vld [vmem:[%s6821_s6 + $0x20] sm:$0xff] }
 0x328   :  { %v2347_v40 = vrot.slane %v2251_v6, 3  ;;  %v2215_v10 = vmax.f32 %v2213_v21, %v2214_v34  ;;  %v58_v34 = vld [vmem:[%s6819_s4 + $0x50] sm:$0xff]  ;;  %v5225_v21 = vld [vmem:[%s6816_s1 + $0x18] sm:$0xff]  ;;  %v5187_v6 = vpack.c.bf16 %v2556_v43, %v2555_v42 }
 0x329   :  { %v2208_v32 = vmax.f32 %v2206_v3, %v2207_v25  ;;  %v59_v3 = vld [vmem:[%s6819_s4 + $0x58] sm:$0xff]  ;;  %s5256_s4 = smov 32   ;;  %v5226_v25 = vld [vmem:[%s6816_s1 + $0x10] sm:$0xff] }
 0x32a   :  { %v2216_v31 = vrot.slane %v2215_v10, 1  ;;  %v2348_v20 = vsel %vm2303_vm11, %v2347_v40, %v2346_v24  ;;  %v5175_v39 = vpack.c.bf16 %v59_v3, %v58_v34  ;;  %2572 = vrot.lane.b32.xlu1 %v5223_v47, %s5256_s4  ;;  %2570 = vrot.lane.b32.xlu0 %v5224_v51, %s5256_s4  ;;  %v5227_v24 = vld [vmem:[%s6820_s5] sm:$0xf] }
 0x32b   :  { %v2252_v8 = vadd.f32 %v5832_v27, %v2208_v32  ;;  %v2257_v40 = vrot.slane %v5227_v24, %v5489_v7  ;;  %v2453_v3 = vrot.slane %v5227_v24, %v5501_v12 }
 0x32c   :  { %v2217_v53 = vmax.f32 %v2215_v10, %v2216_v31  ;;  %5176 = vmatprep.subr.bf16.mxu0 %v5175_v39 }
 0x32d   :  { %v2349_v11 = vrot.slane %v2252_v8, 2  ;;  %5178 = vmatpush3.bf16.msra.mxu0 %v5175_v39 }
 0x32e   :  { %v2253_v15 = vadd.f32 %v5832_v27, %v2217_v53  ;;  %v2551_v27 = vld [vmem:[%s6821_s6] sm:$0xff]  ;;  %2576 = vrot.lane.b32.xlu1 %v5225_v21, %s5256_s4  ;;  %2574 = vrot.lane.b32.xlu0 %v5226_v25, %s5256_s4 }
 0x32f   :  { %v2350_v38 = vsel %vm2306_vm0, %v2349_v11, %v2348_v20  ;;  %v5179_v41 = vpack.c.bf16 %v2552_v9, %v2551_v27 }
 0x330   :  { %v2351_v22 = vrot.slane %v2253_v15, 1 }
 0x331   :  { %5180 = vmatprep.subr.bf16.mxu1 %v5179_v41 }
 0x332   :  { %v2352_v29 = vsel %vm2309_vm9, %v2351_v22, %v2350_v38  ;;  %5182 = vmatpush3.bf16.msra.mxu1 %v5179_v41 }
 0x333   :  { %4985 = vmatmul.mubr.msk.f32.gmra.mrb[6].mxu0 %vm744_vm3, %v2352_v29  ;;  %5184 = vmatprep.subr.bf16.mxu1 %v5183_v44 }
 0x336   :  { %5186 = vmatpush3.bf16.msra.mxu1 %v5183_v44 }
 0x337   :  { %5188 = vmatprep.subr.bf16.mxu1 %v5187_v6 }
 0x33a   :  { %5190 = vmatpush3.bf16.msra.mxu1 %v5187_v6 }
 0x39c   :  { %v2571_v33 = vpop.permute.xlu0 %2570  ;;  %v2573_v47 = vpop.permute.xlu1 %2572 }
 0x3a0   :  { %v2575_v21 = vpop.permute.xlu0 %2574  ;;  %v2577_v25 = vpop.permute.xlu1 %2576 }
 0x3c7   :  { %v4983_v10 = vpop.f32.mrb[4].mxu0 }
 0x3c8   :  { %v2433_v32 = vadd.f32 %v4983_v10, %v2257_v40  ;;  %v2427_v31 = vpop.f32.mrb[5].mxu0  ;;  %v2557_v10 = vld [vmem:[%s6822_s7] sm:$0xff] }
 0x3c9   :  { %v2428_v20 = vadd.f32 %v2427_v31, %v2257_v40 }
 0x3ca   :  { %v2447_v53 = vmax.f32 %v2433_v32, 0.0  ;;  %v2558_v32 = vld [vmem:[%s6822_s7 + $0x8] sm:$0xff] }
 0x3cb   :  { %v2446_v8 = vmax.f32 %v2428_v20, 0.0  ;;  %v5191_v31 = vpack.c.bf16 %v2558_v32, %v2557_v10  ;;  %v2559_v20 = vld [vmem:[%s6822_s7 + $0x10] sm:$0xff] }
 0x3cd   :  { %4995 = vmatprep.mubr.msk.f32.mxu0 %vm744_vm3, %v2446_v8  ;;  %5192 = vmatprep.subr.bf16.mxu0 %v5191_v31  ;;  %v2560_v8 = vld [vmem:[%s6822_s7 + $0x18] sm:$0xff] }
 0x3ce   :  { %4996 = vmatmul.mubr.msk.f32.vlgmr.msra.gmra.mrb[8].mxu0 %vm744_vm3, %v2447_v53  ;;  %v5195_v53 = vpack.c.bf16 %v2560_v8, %v2559_v20 }
 0x3cf   :  { %5194 = vmatpush3.bf16.msra.mxu0 %v5191_v31 }
 0x3d0   :  { %5196 = vmatprep.subr.bf16.mxu0 %v5195_v53 }
 0x3d3   :  { %5198 = vmatpush3.bf16.msra.mxu0 %v5195_v53 }
 0x406   :  { %v4986_v11 = vpop.f32.mrb[6].mxu0 }
 0x407   :  { %v2443_v15 = vadd.f32 %v4986_v11, %v2257_v40  ;;  %v2437_v38 = vpop.f32.mrb[7].mxu0 }
 0x408   :  { %v2438_v22 = vadd.f32 %v2437_v38, %v2257_v40 }
 0x409   :  { %v2449_v34 = vmax.f32 %v2443_v15, 0.0 }
 0x40a   :  { %v2448_v29 = vmax.f32 %v2438_v22, 0.0 }
 0x40c   :  { %4998 = vmatprep.mubr.msk.f32.mxu0 %vm744_vm3, %v2448_v29 }
 0x40d   :  { %4999 = vmatmul.mubr.msk.f32.gmra.mrb[10].mxu0 %vm744_vm3, %v2449_v34 }
 0x4a1   :  { %v4997_v39 = vpop.f32.mrb[8].mxu0 }
 0x4a2   :  { %v2538_v27 = vadd.f32 %v4997_v39, %v2453_v3  ;;  %v2532_v9 = vpop.f32.mrb[9].mxu0 }
 0x4a3   :  { %v2533_v41 = vadd.f32 %v2532_v9, %v2453_v3 }
 0x4a4   :  { %v2583_v49 = vsel %vm744_vm3, %v2538_v27, %v2573_v47 }
 0x4a5   :  { %v2582_v51 = vsel %vm744_vm3, %v2533_v41, %v2571_v33 }
 0x4a6   :  { %5013 = vmatprep.mubr.msk.f32.mxu1 %vm2586_vm1, %v2582_v51 }
 0x4a7   :  { %5014 = vmatmul.mubr.msk.f32.vlgmr.msra.gmra.mrb[64].mxu1 %vm2586_vm1, %v2583_v49 }
 0x4e0   :  { %v5000_v44 = vpop.f32.mrb[10].mxu0 }
 0x4e1   :  { %v2548_v42 = vadd.f32 %v5000_v44, %v2453_v3  ;;  %v2542_v43 = vpop.f32.mrb[11].mxu0 }
 0x4e2   :  { %v2543_v6 = vadd.f32 %v2542_v43, %v2453_v3 }
 0x4e3   :  { %v2585_v40 = vsel %vm744_vm3, %v2548_v42, %v2577_v25 }
 0x4e4   :  { %v2584_v24 = vsel %vm744_vm3, %v2543_v6, %v2575_v21 }
 0x4e5   :  { %5016 = vmatprep.mubr.msk.f32.mxu1 %vm2586_vm1, %v2584_v24 }
 0x4e6   :  { %5017 = vmatmul.mubr.msk.f32.gmra.mrb[66].mxu1 %vm2586_vm1, %v2585_v40  ;;  %vm6950_vm1 = vcmp.gt.f32.partialorder %v5718_v55, 0.0 }
 0x57a   :  { %v6253_v11 = vpop.f32.mrb[64].mxu1 }
 0x57b   :  { %v6255_v15 = vpop.f32.mrb[65].mxu1  ;;  %v2752_v44 = vrot.slane %v6253_v11, %v5358_v30  ;;  %v2745_v25 = vcombine.high %v6253_v11, %v6253_v11 }
 0x57c   :  { %v2696_v38 = vcombine.high %v6255_v15, %v6255_v15  ;;  %v2703_v22 = vrot.slane %v6255_v15, %v5358_v30 }
 0x57d   :  { %v2760_v24 = vcombine.high %v2752_v44, %v2752_v44  ;;  %v2768_v32 = vrot.slane %v2752_v44, %v5358_v30  ;;  %v2759_v20 = vrot.slane %v2745_v25, %v5358_v30 }
 0x57e   :  { %v2710_v29 = vrot.slane %v2696_v38, %v5358_v30  ;;  %v2711_v34 = vcombine.high %v2703_v22, %v2703_v22  ;;  %v2719_v3 = vrot.slane %v2703_v22, %v5358_v30 }
 0x57f   :  { %v2782_v8 = vrot.slane %v2760_v24, %v5358_v30  ;;  %v2790_v38 = vcombine.high %v2768_v32, %v2768_v32  ;;  %v2927_v22 = vrot.slane %v2768_v32, %v5369_v36 }
 0x580   :  { %v2733_v39 = vrot.slane %v2711_v34, %v5358_v30  ;;  %v2741_v27 = vcombine.high %v2719_v3, %v2719_v3  ;;  %v2895_v9 = vrot.slane %v2719_v3, %v5369_v36  ;;  %v2712_v33 = vcombine.high %v2710_v29, %v2710_v29 }
 0x581   :  { %v2726_v51 = vrot.slane %v2710_v29, %v5358_v30  ;;  %v2761_v29 = vcombine.high %v2759_v20, %v2759_v20  ;;  %v2931_v34 = vrot.slane %v2782_v8, %v5369_v36  ;;  %v2792_v3 = vcombine.high %v2782_v8, %v2782_v8 }
 0x582   :  { %v2899_v41 = vrot.slane %v2733_v39, %v5369_v36  ;;  %v2743_v47 = vcombine.high %v2733_v39, %v2733_v39  ;;  %3020 = vrot.lane.b32.xlu0 %v2895_v9, %s5255_s19  ;;  %v2903_v49 = vrot.slane %v2741_v27, %v5369_v36  ;;  %v2740_v43 = vrot.slane %v2712_v33, %v5358_v30 }
 0x583   :  { %v2911_v21 = vrot.slane %v2726_v51, %v5369_v36  ;;  %v2742_v6 = vcombine.high %v2726_v51, %v2726_v51  ;;  %v2775_v39 = vrot.slane %v2759_v20, %v5358_v30  ;;  %v2935_v27 = vrot.slane %v2790_v38, %v5369_v36 }
 0x584   :  { %3022 = vrot.lane.b32.xlu1 %v2899_v41, %s5255_s19  ;;  %v2907_v42 = vrot.slane %v2743_v47, %v5369_v36  ;;  %v2915_v40 = vrot.slane %v2740_v43, %v5369_v36  ;;  %v2744_v10 = vcombine.high %v2740_v43, %v2740_v43  ;;  %v2939_v9 = vrot.slane %v2792_v3, %v5369_v36  ;;  %v6310_v43 = vld [vmem:[%s6823_s8] sm:$0xf] }
 0x585   :  { %v2919_v31 = vrot.slane %v2742_v6, %v5369_v36  ;;  %v2789_v33 = vrot.slane %v2761_v29, %v5358_v30  ;;  %v2943_v41 = vrot.slane %v2775_v39, %v5369_v36  ;;  %v2791_v47 = vcombine.high %v2775_v39, %v2775_v39 }
 0x586   :  { %3024 = vrot.lane.b32.xlu0 %v2903_v49, %s5255_s19  ;;  %v2923_v53 = vrot.slane %v2744_v10, %v5369_v36 }
 0x587   :  { %v2947_v51 = vrot.slane %v2789_v33, %v5369_v36  ;;  %v2793_v49 = vcombine.high %v2789_v33, %v2789_v33  ;;  %v2951_v44 = vrot.slane %v2791_v47, %v5369_v36 }
 0x588   :  { %3026 = vrot.lane.b32.xlu1 %v2907_v42, %s5255_s19 }
 0x589   :  { %v2955_v42 = vrot.slane %v2793_v49, %v5369_v36 }
 0x58a   :  { %3028 = vrot.lane.b32.xlu0 %v2911_v21, %s5255_s19  ;;  %v6314_v21 = vrot.slane %v6310_v43, %v5369_v36 }
 0x58c   :  { %3030 = vrot.lane.b32.xlu1 %v2915_v40, %s5255_s19 }
 0x58e   :  { %3032 = vrot.lane.b32.xlu0 %v2919_v31, %s5255_s19 }
 0x590   :  { %3034 = vrot.lane.b32.xlu1 %v2923_v53, %s5255_s19 }
 0x592   :  { %3036 = vrot.lane.b32.xlu0 %v2927_v22, %s5255_s19 }
 0x594   :  { %3038 = vrot.lane.b32.xlu1 %v2931_v34, %s5255_s19 }
 0x596   :  { %3040 = vrot.lane.b32.xlu0 %v2935_v27, %s5255_s19 }
 0x598   :  { %3042 = vrot.lane.b32.xlu1 %v2939_v9, %s5255_s19 }
 0x59a   :  { %3044 = vrot.lane.b32.xlu0 %v2943_v41, %s5255_s19 }
 0x59c   :  { %3046 = vrot.lane.b32.xlu1 %v2947_v51, %s5255_s19 }
 0x59e   :  { %3048 = vrot.lane.b32.xlu0 %v2951_v44, %s5255_s19 }
 0x5a0   :  { %3050 = vrot.lane.b32.xlu1 %v2955_v42, %s5255_s19 }
 0x5b9   :  { %v5018_v6 = vpop.f32.mrb[66].mxu1 }
 0x5ba   :  { %v6317_v25 = vadd.f32 %v5018_v6, %v6314_v21  ;;  %v2675_v24 = vpop.f32.mrb[67].mxu1  ;;  %v2850_v9 = vrot.slane %v5018_v6, %v5358_v30  ;;  %v2843_v49 = vcombine.high %v5018_v6, %v5018_v6 }
 0x5bb   :  { %v6320_v40 = vadd.f32 %v6314_v21, %v2675_v24  ;;  %v2794_v10 = vcombine.high %v2675_v24, %v2675_v24  ;;  %v2801_v32 = vrot.slane %v2675_v24, %v5358_v30 }
 0x5bc   :  { %v2858_v44 = vcombine.high %v2850_v9, %v2850_v9 }
 0x5bd   :  { %v2808_v31 = vrot.slane %v2794_v10, %v5358_v30  ;;  %v2809_v20 = vcombine.high %v2801_v32, %v2801_v32  ;;  %v2817_v8 = vrot.slane %v2801_v32, %v5358_v30  ;;  %v2866_v10 = vrot.slane %v2850_v9, %v5358_v30 }
 0x5bf   :  { %v2831_v53 = vrot.slane %v2809_v20, %v5358_v30  ;;  %v2839_v38 = vcombine.high %v2817_v8, %v2817_v8  ;;  %v2959_v22 = vrot.slane %v2817_v8, %v5369_v36  ;;  %v2810_v29 = vcombine.high %v2808_v31, %v2808_v31 }
 0x5c0   :  { %v2824_v39 = vrot.slane %v2808_v31, %v5358_v30  ;;  %v2857_v31 = vrot.slane %v2843_v49, %v5358_v30  ;;  %v2880_v20 = vrot.slane %v2858_v44, %v5358_v30  ;;  %v2888_v6 = vcombine.high %v2866_v10, %v2866_v10 }
 0x5c1   :  { %v2963_v34 = vrot.slane %v2831_v53, %v5369_v36  ;;  %v2841_v3 = vcombine.high %v2831_v53, %v2831_v53  ;;  %3052 = vrot.lane.b32.xlu0 %v2959_v22, %s5255_s19  ;;  %v2967_v27 = vrot.slane %v2839_v38, %v5369_v36  ;;  %v2838_v41 = vrot.slane %v2810_v29, %v5358_v30 }
 0x5c2   :  { %v2975_v47 = vrot.slane %v2824_v39, %v5369_v36  ;;  %v2840_v51 = vcombine.high %v2824_v39, %v2824_v39  ;;  %v2991_v53 = vrot.slane %v2866_v10, %v5369_v36  ;;  %v2859_v38 = vcombine.high %v2857_v31, %v2857_v31 }
 0x5c3   :  { %3054 = vrot.lane.b32.xlu1 %v2963_v34, %s5255_s19  ;;  %v2971_v33 = vrot.slane %v2841_v3, %v5369_v36  ;;  %v2979_v42 = vrot.slane %v2838_v41, %v5369_v36  ;;  %v2842_v24 = vcombine.high %v2838_v41, %v2838_v41  ;;  %v2995_v22 = vrot.slane %v2880_v20, %v5369_v36 }
 0x5c4   :  { %v2983_v32 = vrot.slane %v2840_v51, %v5369_v36  ;;  %v2890_v29 = vcombine.high %v2880_v20, %v2880_v20  ;;  %v2873_v34 = vrot.slane %v2857_v31, %v5358_v30  ;;  %v2999_v3 = vrot.slane %v2888_v6, %v5369_v36 }
 0x5c5   :  { %3056 = vrot.lane.b32.xlu0 %v2967_v27, %s5255_s19  ;;  %v2987_v8 = vrot.slane %v2842_v24, %v5369_v36  ;;  %v2887_v27 = vrot.slane %v2859_v38, %v5358_v30  ;;  %v6368_v30 = vadd.f32 %v6253_v11, %v6314_v21  ;;  %v6372_v44 = vadd.f32 %v6314_v21, %v6255_v15 }
 0x5c6   :  { %v3003_v39 = vrot.slane %v2890_v29, %v5369_v36  ;;  %v3007_v9 = vrot.slane %v2873_v34, %v5369_v36 }
 0x5c7   :  { %3058 = vrot.lane.b32.xlu1 %v2971_v33, %s5255_s19  ;;  %v2889_v33 = vcombine.high %v2873_v34, %v2873_v34  ;;  %v3011_v41 = vrot.slane %v2887_v27, %v5369_v36 }
 0x5c9   :  { %3060 = vrot.lane.b32.xlu0 %v2975_v47, %s5255_s19  ;;  %v2891_v47 = vcombine.high %v2887_v27, %v2887_v27  ;;  %v3015_v51 = vrot.slane %v2889_v33, %v5369_v36 }
 0x5cb   :  { %3062 = vrot.lane.b32.xlu1 %v2979_v42, %s5255_s19  ;;  %v3019_v49 = vrot.slane %v2891_v47, %v5369_v36 }
 0x5cd   :  { %3064 = vrot.lane.b32.xlu0 %v2983_v32, %s5255_s19 }
 0x5cf   :  { %3066 = vrot.lane.b32.xlu1 %v2987_v8, %s5255_s19 }
 0x5d1   :  { %3068 = vrot.lane.b32.xlu0 %v2991_v53, %s5255_s19 }
 0x5d3   :  { %3070 = vrot.lane.b32.xlu1 %v2995_v22, %s5255_s19 }
 0x5d5   :  { %3072 = vrot.lane.b32.xlu0 %v2999_v3, %s5255_s19 }
 0x5d7   :  { %3074 = vrot.lane.b32.xlu1 %v3003_v39, %s5255_s19 }
 0x5d9   :  { %3076 = vrot.lane.b32.xlu0 %v3007_v9, %s5255_s19 }
 0x5db   :  { %3078 = vrot.lane.b32.xlu1 %v3011_v41, %s5255_s19 }
 0x5dd   :  { %3080 = vrot.lane.b32.xlu0 %v3015_v51, %s5255_s19 }
 0x5df   :  { %3082 = vrot.lane.b32.xlu1 %v3019_v49, %s5255_s19 }
 0x5f4   :  { %v3021_v42 = vpop.permute.xlu0 %3020 }
 0x5f5   :  { %v3116_v24 = vsub.f32 %v6372_v44, %v3021_v42  ;;  %v3117_v10 = vsub.f32 %v6368_v30, %v3021_v42 }
 0x5f6   :  { %v3023_v32 = vpop.permute.xlu1 %3022 }
 0x5f7   :  { %v3118_v36 = vsub.f32 %v6372_v44, %v3023_v32  ;;  %v3180_v31 = vmax.f32 %v3116_v24, 0.0  ;;  %v3181_v20 = vmax.f32 %v3117_v10, 0.0  ;;  %v3119_v8 = vsub.f32 %v6368_v30, %v3023_v32 }
 0x5f8   :  { %v3025_v53 = vpop.permute.xlu0 %3024 }
 0x5f9   :  { %v3182_v6 = vmax.f32 %v3118_v36, 0.0  ;;  %v3120_v11 = vsub.f32 %v6372_v44, %v3025_v53  ;;  %5027 = vmatprep.mubr.msk.f32.mxu0 %vm744_vm3, %v3180_v31  ;;  %v3183_v21 = vmax.f32 %v3119_v8, 0.0  ;;  %v3121_v38 = vsub.f32 %v6368_v30, %v3025_v53 }
 0x5fa   :  { %v3027_v15 = vpop.permute.xlu1 %3026  ;;  %5028 = vmatmul.mubr.msk.f32.vlgmr.msra.gmra.mrb[12].mxu0 %vm744_vm3, %v3181_v20 }
 0x5fb   :  { %5030 = vmatprep.mubr.msk.f32.mxu0 %vm744_vm3, %v3182_v6  ;;  %v3184_v22 = vmax.f32 %v3120_v11, 0.0  ;;  %v3122_v29 = vsub.f32 %v6372_v44, %v3027_v15  ;;  %v3185_v3 = vmax.f32 %v3121_v38, 0.0  ;;  %v3123_v39 = vsub.f32 %v6368_v30, %v3027_v15 }
 0x5fc   :  { %v3029_v34 = vpop.permute.xlu0 %3028 }
 0x5fd   :  { %v3186_v27 = vmax.f32 %v3122_v29, 0.0  ;;  %v3124_v9 = vsub.f32 %v6372_v44, %v3029_v34  ;;  %v3187_v41 = vmax.f32 %v3123_v39, 0.0  ;;  %v3125_v47 = vsub.f32 %v6368_v30, %v3029_v34 }
 0x5fe   :  { %5031 = vmatmul.mubr.msk.f32.gmra.mrb[14].mxu0 %vm744_vm3, %v3183_v21  ;;  %v3031_v33 = vpop.permute.xlu1 %3030 }
 0x5ff   :  { %5033 = vmatprep.mubr.msk.f32.mxu0 %vm744_vm3, %v3184_v22  ;;  %v3188_v51 = vmax.f32 %v3124_v9, 0.0  ;;  %v3126_v49 = vsub.f32 %v6372_v44, %v3031_v33  ;;  %v3189_v24 = vmax.f32 %v3125_v47, 0.0  ;;  %v3127_v10 = vsub.f32 %v6368_v30, %v3031_v33 }
 0x600   :  { %v3033_v42 = vpop.permute.xlu0 %3032 }
 0x601   :  { %v3190_v32 = vmax.f32 %v3126_v49, 0.0  ;;  %v3128_v36 = vsub.f32 %v6372_v44, %v3033_v42  ;;  %v3191_v20 = vmax.f32 %v3127_v10, 0.0  ;;  %v3129_v8 = vsub.f32 %v6368_v30, %v3033_v42 }
 0x602   :  { %5034 = vmatmul.mubr.msk.f32.gmra.mrb[16].mxu0 %vm744_vm3, %v3185_v3  ;;  %v3035_v31 = vpop.permute.xlu1 %3034 }
 0x603   :  { %5036 = vmatprep.mubr.msk.f32.mxu0 %vm744_vm3, %v3186_v27  ;;  %v3192_v6 = vmax.f32 %v3128_v36, 0.0  ;;  %v3130_v53 = vsub.f32 %v6372_v44, %v3035_v31  ;;  %v3193_v15 = vmax.f32 %v3129_v8, 0.0  ;;  %v3131_v21 = vsub.f32 %v6368_v30, %v3035_v31 }
 0x604   :  { %v3037_v11 = vpop.permute.xlu0 %3036 }
 0x605   :  { %v3194_v38 = vmax.f32 %v3130_v53, 0.0  ;;  %v3132_v22 = vsub.f32 %v6372_v44, %v3037_v11  ;;  %v3195_v34 = vmax.f32 %v3131_v21, 0.0  ;;  %v3133_v3 = vsub.f32 %v6368_v30, %v3037_v11 }
 0x606   :  { %5037 = vmatmul.mubr.msk.f32.gmra.mrb[18].mxu0 %vm744_vm3, %v3187_v41  ;;  %v3039_v29 = vpop.permute.xlu1 %3038 }
 0x607   :  { %5039 = vmatprep.mubr.msk.f32.mxu0 %vm744_vm3, %v3188_v51  ;;  %v3196_v39 = vmax.f32 %v3132_v22, 0.0  ;;  %v3134_v27 = vsub.f32 %v6372_v44, %v3039_v29  ;;  %v3197_v33 = vmax.f32 %v3133_v3, 0.0  ;;  %v3135_v41 = vsub.f32 %v6368_v30, %v3039_v29 }
 0x608   :  { %v3041_v9 = vpop.permute.xlu0 %3040 }
 0x609   :  { %v3198_v47 = vmax.f32 %v3134_v27, 0.0  ;;  %v3136_v51 = vsub.f32 %v6372_v44, %v3041_v9  ;;  %v3199_v42 = vmax.f32 %v3135_v41, 0.0 }
 0x60a   :  { %5040 = vmatmul.mubr.msk.f32.gmra.mrb[20].mxu0 %vm744_vm3, %v3189_v24  ;;  %v3043_v49 = vpop.permute.xlu1 %3042  ;;  %v3137_v24 = vsub.f32 %v6368_v30, %v3041_v9 }
 0x60b   :  { %5042 = vmatprep.mubr.msk.f32.mxu0 %vm744_vm3, %v3190_v32  ;;  %v3200_v10 = vmax.f32 %v3136_v51, 0.0  ;;  %v3138_v32 = vsub.f32 %v6372_v44, %v3043_v49 }
 0x60c   :  { %v3045_v36 = vpop.permute.xlu0 %3044  ;;  %v3201_v31 = vmax.f32 %v3137_v24, 0.0 }
 0x60d   :  { %v3202_v8 = vmax.f32 %v3138_v32, 0.0 }
 0x60e   :  { %5043 = vmatmul.mubr.msk.f32.gmra.mrb[22].mxu0 %vm744_vm3, %v3191_v20  ;;  %v3139_v20 = vsub.f32 %v6368_v30, %v3043_v49  ;;  %v3047_v53 = vpop.permute.xlu1 %3046 }
 0x60f   :  { %5045 = vmatprep.mubr.msk.f32.mxu0 %vm744_vm3, %v3192_v6  ;;  %v3140_v6 = vsub.f32 %v6372_v44, %v3045_v36 }
 0x610   :  { %v3203_v11 = vmax.f32 %v3139_v20, 0.0  ;;  %v3049_v22 = vpop.permute.xlu0 %3048 }
 0x611   :  { %v3204_v21 = vmax.f32 %v3140_v6, 0.0 }
 0x612   :  { %5046 = vmatmul.mubr.msk.f32.gmra.mrb[24].mxu0 %vm744_vm3, %v3193_v15  ;;  %v3141_v15 = vsub.f32 %v6368_v30, %v3045_v36  ;;  %v3051_v27 = vpop.permute.xlu1 %3050 }
 0x613   :  { %5048 = vmatprep.mubr.msk.f32.mxu0 %vm744_vm3, %v3194_v38  ;;  %v3142_v38 = vsub.f32 %v6372_v44, %v3047_v53  ;;  %v3147_v49 = vsub.f32 %v6368_v30, %v3051_v27 }
 0x614   :  { %v3205_v29 = vmax.f32 %v3141_v15, 0.0 }
 0x615   :  { %v3206_v3 = vmax.f32 %v3142_v38, 0.0 }
 0x616   :  { %5049 = vmatmul.mubr.msk.f32.gmra.mrb[26].mxu0 %vm744_vm3, %v3195_v34  ;;  %v3143_v34 = vsub.f32 %v6368_v30, %v3047_v53 }
 0x617   :  { %5051 = vmatprep.mubr.msk.f32.mxu0 %vm744_vm3, %v3196_v39  ;;  %v3144_v39 = vsub.f32 %v6372_v44, %v3049_v22 }
 0x618   :  { %v3207_v9 = vmax.f32 %v3143_v34, 0.0 }
 0x619   :  { %v3208_v41 = vmax.f32 %v3144_v39, 0.0 }
 0x61a   :  { %5052 = vmatmul.mubr.msk.f32.gmra.mrb[28].mxu0 %vm744_vm3, %v3197_v33  ;;  %v3145_v33 = vsub.f32 %v6368_v30, %v3049_v22 }
 0x61b   :  { %5054 = vmatprep.mubr.msk.f32.mxu0 %vm744_vm3, %v3198_v47  ;;  %v3146_v47 = vsub.f32 %v6372_v44, %v3051_v27 }
 0x61c   :  { %v3209_v51 = vmax.f32 %v3145_v33, 0.0 }
 0x61e   :  { %5055 = vmatmul.mubr.msk.f32.gmra.mrb[30].mxu0 %vm744_vm3, %v3199_v42  ;;  %v3210_v42 = vmax.f32 %v3146_v47, 0.0 }
 0x61f   :  { %5057 = vmatprep.mubr.msk.f32.mxu0 %vm744_vm3, %v3200_v10  ;;  %v3211_v10 = vmax.f32 %v3147_v49, 0.0 }
 0x622   :  { %5058 = vmatmul.mubr.msk.f32.gmra.mrb[32].mxu0 %vm744_vm3, %v3201_v31 }
 0x623   :  { %5060 = vmatprep.mubr.msk.f32.mxu0 %vm744_vm3, %v3202_v8 }
 0x626   :  { %5061 = vmatmul.mubr.msk.f32.gmra.mrb[34].mxu0 %vm744_vm3, %v3203_v11 }
 0x627   :  { %5063 = vmatprep.mubr.msk.f32.mxu0 %vm744_vm3, %v3204_v21 }
 0x62a   :  { %5064 = vmatmul.mubr.msk.f32.gmra.mrb[36].mxu0 %vm744_vm3, %v3205_v29 }
 0x62b   :  { %5066 = vmatprep.mubr.msk.f32.mxu0 %vm744_vm3, %v3206_v3 }
 0x62e   :  { %5067 = vmatmul.mubr.msk.f32.gmra.mrb[38].mxu0 %vm744_vm3, %v3207_v9 }
 0x62f   :  { %5069 = vmatprep.mubr.msk.f32.mxu0 %vm744_vm3, %v3208_v41 }
 0x632   :  { %5070 = vmatmul.mubr.msk.f32.gmra.mrb[40].mxu0 %vm744_vm3, %v3209_v51 }
 0x633   :  { %5072 = vmatprep.mubr.msk.f32.mxu0 %vm744_vm3, %v3210_v42  ;;  %v3053_v24 = vpop.permute.xlu0 %3052 }
 0x634   :  { %v3148_v32 = vsub.f32 %v6320_v40, %v3053_v24  ;;  %v3149_v36 = vsub.f32 %v6317_v25, %v3053_v24 }
 0x635   :  { %v3055_v31 = vpop.permute.xlu1 %3054 }
 0x636   :  { %v3150_v44 = vsub.f32 %v6320_v40, %v3055_v31  ;;  %v3212_v20 = vmax.f32 %v3148_v32, 0.0  ;;  %v3213_v8 = vmax.f32 %v3149_v36, 0.0  ;;  %5073 = vmatmul.mubr.msk.f32.gmra.mrb[42].mxu0 %vm744_vm3, %v3211_v10  ;;  %v3151_v53 = vsub.f32 %v6317_v25, %v3055_v31 }
 0x637   :  { %v3057_v30 = vpop.permute.xlu0 %3056 }
 0x638   :  { %v3214_v6 = vmax.f32 %v3150_v44, 0.0  ;;  %5075 = vmatprep.mubr.msk.f32.mxu0 %vm744_vm3, %v3212_v20  ;;  %v3152_v11 = vsub.f32 %v6320_v40, %v3057_v30  ;;  %v3215_v21 = vmax.f32 %v3151_v53, 0.0  ;;  %v3153_v38 = vsub.f32 %v6317_v25, %v3057_v30 }
 0x639   :  { %v3059_v15 = vpop.permute.xlu1 %3058 }
 0x63a   :  { %5076 = vmatmul.mubr.msk.f32.gmra.mrb[44].mxu0 %vm744_vm3, %v3213_v8  ;;  %v3216_v22 = vmax.f32 %v3152_v11, 0.0  ;;  %v3154_v29 = vsub.f32 %v6320_v40, %v3059_v15  ;;  %v3217_v3 = vmax.f32 %v3153_v38, 0.0  ;;  %v3155_v39 = vsub.f32 %v6317_v25, %v3059_v15 }
 0x63b   :  { %5078 = vmatprep.mubr.msk.f32.mxu0 %vm744_vm3, %v3214_v6  ;;  %v3061_v34 = vpop.permute.xlu0 %3060 }
 0x63c   :  { %v3218_v27 = vmax.f32 %v3154_v29, 0.0  ;;  %v3156_v9 = vsub.f32 %v6320_v40, %v3061_v34  ;;  %v3219_v41 = vmax.f32 %v3155_v39, 0.0  ;;  %v3157_v47 = vsub.f32 %v6317_v25, %v3061_v34 }
 0x63d   :  { %v3063_v33 = vpop.permute.xlu1 %3062 }
 0x63e   :  { %5079 = vmatmul.mubr.msk.f32.gmra.mrb[46].mxu0 %vm744_vm3, %v3215_v21  ;;  %v3220_v51 = vmax.f32 %v3156_v9, 0.0  ;;  %v3158_v49 = vsub.f32 %v6320_v40, %v3063_v33  ;;  %v3221_v24 = vmax.f32 %v3157_v47, 0.0  ;;  %v3159_v10 = vsub.f32 %v6317_v25, %v3063_v33 }
 0x63f   :  { %5081 = vmatprep.mubr.msk.f32.mxu0 %vm744_vm3, %v3216_v22  ;;  %v3065_v42 = vpop.permute.xlu0 %3064 }
 0x640   :  { %v3222_v32 = vmax.f32 %v3158_v49, 0.0  ;;  %v3160_v36 = vsub.f32 %v6320_v40, %v3065_v42  ;;  %v3223_v44 = vmax.f32 %v3159_v10, 0.0  ;;  %v3161_v20 = vsub.f32 %v6317_v25, %v3065_v42 }
 0x641   :  { %v3067_v31 = vpop.permute.xlu1 %3066 }
 0x642   :  { %5082 = vmatmul.mubr.msk.f32.gmra.mrb[48].mxu0 %vm744_vm3, %v3217_v3  ;;  %v3224_v8 = vmax.f32 %v3160_v36, 0.0  ;;  %v3162_v6 = vsub.f32 %v6320_v40, %v3067_v31  ;;  %v3225_v53 = vmax.f32 %v3161_v20, 0.0  ;;  %v3163_v11 = vsub.f32 %v6317_v25, %v3067_v31 }
 0x643   :  { %5084 = vmatprep.mubr.msk.f32.mxu0 %vm744_vm3, %v3218_v27  ;;  %v3069_v30 = vpop.permute.xlu0 %3068 }
 0x644   :  { %v3226_v15 = vmax.f32 %v3162_v6, 0.0  ;;  %v3164_v21 = vsub.f32 %v6320_v40, %v3069_v30  ;;  %v3227_v22 = vmax.f32 %v3163_v11, 0.0  ;;  %v3165_v29 = vsub.f32 %v6317_v25, %v3069_v30 }
 0x645   :  { %v3071_v38 = vpop.permute.xlu1 %3070 }
 0x646   :  { %5085 = vmatmul.mubr.msk.f32.gmra.mrb[50].mxu0 %vm744_vm3, %v3219_v41  ;;  %v3228_v34 = vmax.f32 %v3164_v21, 0.0  ;;  %v3166_v3 = vsub.f32 %v6320_v40, %v3071_v38  ;;  %v3229_v27 = vmax.f32 %v3165_v29, 0.0  ;;  %v3167_v9 = vsub.f32 %v6317_v25, %v3071_v38 }
 0x647   :  { %5087 = vmatprep.mubr.msk.f32.mxu0 %vm744_vm3, %v3220_v51  ;;  %v3073_v39 = vpop.permute.xlu0 %3072 }
 0x648   :  { %v3230_v33 = vmax.f32 %v3166_v3, 0.0  ;;  %v3168_v41 = vsub.f32 %v6320_v40, %v3073_v39  ;;  %v3231_v51 = vmax.f32 %v3167_v9, 0.0  ;;  %v3169_v49 = vsub.f32 %v6317_v25, %v3073_v39 }
 0x649   :  { %v3075_v47 = vpop.permute.xlu1 %3074 }
 0x64a   :  { %5088 = vmatmul.mubr.msk.f32.gmra.mrb[52].mxu0 %vm744_vm3, %v3221_v24  ;;  %v3232_v42 = vmax.f32 %v3168_v41, 0.0  ;;  %v3170_v24 = vsub.f32 %v6320_v40, %v3075_v47  ;;  %v3171_v36 = vsub.f32 %v6317_v25, %v3075_v47 }
 0x64b   :  { %5090 = vmatprep.mubr.msk.f32.mxu0 %vm744_vm3, %v3222_v32  ;;  %v3077_v10 = vpop.permute.xlu0 %3076  ;;  %v3233_v32 = vmax.f32 %v3169_v49, 0.0 }
 0x64c   :  { %v3234_v31 = vmax.f32 %v3170_v24, 0.0  ;;  %v3173_v6 = vsub.f32 %v6317_v25, %v3077_v10 }
 0x64d   :  { %v3079_v20 = vpop.permute.xlu1 %3078 }
 0x64e   :  { %5091 = vmatmul.mubr.msk.f32.gmra.mrb[54].mxu0 %vm744_vm3, %v3223_v44  ;;  %v3172_v44 = vsub.f32 %v6320_v40, %v3077_v10  ;;  %v3175_v21 = vsub.f32 %v6317_v25, %v3079_v20 }
 0x64f   :  { %5093 = vmatprep.mubr.msk.f32.mxu0 %vm744_vm3, %v3224_v8  ;;  %v3235_v8 = vmax.f32 %v3171_v36, 0.0  ;;  %v3081_v11 = vpop.permute.xlu0 %3080 }
 0x650   :  { %v3236_v30 = vmax.f32 %v3172_v44, 0.0  ;;  %v3177_v3 = vsub.f32 %v6317_v25, %v3081_v11 }
 0x651   :  { %v3083_v29 = vpop.permute.xlu1 %3082 }
 0x652   :  { %5094 = vmatmul.mubr.msk.f32.gmra.mrb[56].mxu0 %vm744_vm3, %v3225_v53  ;;  %v3174_v53 = vsub.f32 %v6320_v40, %v3079_v20  ;;  %v3241_v9 = vmax.f32 %v3177_v3, 0.0 }
 0x653   :  { %5096 = vmatprep.mubr.msk.f32.mxu0 %vm744_vm3, %v3226_v15  ;;  %v3237_v15 = vmax.f32 %v3173_v6, 0.0 }
 0x654   :  { %v3238_v38 = vmax.f32 %v3174_v53, 0.0 }
 0x656   :  { %5097 = vmatmul.mubr.msk.f32.gmra.mrb[58].mxu0 %vm744_vm3, %v3227_v22  ;;  %v3176_v22 = vsub.f32 %v6320_v40, %v3081_v11 }
 0x657   :  { %5099 = vmatprep.mubr.msk.f32.mxu0 %vm744_vm3, %v3228_v34  ;;  %v3239_v34 = vmax.f32 %v3175_v21, 0.0 }
 0x658   :  { %v3240_v39 = vmax.f32 %v3176_v22, 0.0 }
 0x65a   :  { %5100 = vmatmul.mubr.msk.f32.gmra.mrb[60].mxu0 %vm744_vm3, %v3229_v27  ;;  %v3178_v27 = vsub.f32 %v6320_v40, %v3083_v29  ;;  %v2562_v40 = vld [vmem:[%s6822_s7 + $0x28] sm:$0xff] }
 0x65b   :  { %5102 = vmatprep.mubr.msk.f32.mxu0 %vm744_vm3, %v3230_v33  ;;  %v3179_v33 = vsub.f32 %v6317_v25, %v3083_v29  ;;  %v2563_v25 = vld [vmem:[%s6822_s7 + $0x30] sm:$0xff] }
 0x65c   :  { %v3242_v41 = vmax.f32 %v3178_v27, 0.0 }
 0x65d   :  { %v3243_v47 = vmax.f32 %v3179_v33, 0.0 }
 0x65e   :  { %5103 = vmatmul.mubr.msk.f32.gmra.mrb[62].mxu0 %vm744_vm3, %v3231_v51  ;;  %v2561_v51 = vld [vmem:[%s6822_s7 + $0x20] sm:$0xff] }
 0x65f   :  { %5105 = vmatprep.mubr.msk.f32.mxu0 %vm744_vm3, %v3232_v42  ;;  %v5199_v49 = vpack.c.bf16 %v2562_v40, %v2561_v51  ;;  %v2564_v42 = vld [vmem:[%s6822_s7 + $0x38] sm:$0xff] }
 0x660   :  { %v5203_v24 = vpack.c.bf16 %v2564_v42, %v2563_v25 }
 0x661   :  { %5200 = vmatprep.subr.bf16.mxu1 %v5199_v49 }
 0x662   :  { %5106 = vmatmul.mubr.msk.f32.gmra.mrb[64].mxu0 %vm744_vm3, %v3233_v32  ;;  %5202 = vmatpush3.bf16.msra.mxu1 %v5199_v49 }
 0x663   :  { %5108 = vmatprep.mubr.msk.f32.mxu0 %vm744_vm3, %v3234_v31  ;;  %5204 = vmatprep.subr.bf16.mxu1 %v5203_v24 }
 0x666   :  { %5109 = vmatmul.mubr.msk.f32.gmra.mrb[66].mxu0 %vm744_vm3, %v3235_v8  ;;  %5206 = vmatpush3.bf16.msra.mxu1 %v5203_v24 }
 0x667   :  { %5111 = vmatprep.mubr.msk.f32.mxu0 %vm744_vm3, %v3236_v30 }
 0x66a   :  { %5112 = vmatmul.mubr.msk.f32.gmra.mrb[68].mxu0 %vm744_vm3, %v3237_v15 }
 0x66b   :  { %5114 = vmatprep.mubr.msk.f32.mxu0 %vm744_vm3, %v3238_v38 }
 0x66e   :  { %5115 = vmatmul.mubr.msk.f32.gmra.mrb[70].mxu0 %vm744_vm3, %v3239_v34 }
 0x66f   :  { %5117 = vmatprep.mubr.msk.f32.mxu0 %vm744_vm3, %v3240_v39 }
 0x672   :  { %5118 = vmatmul.mubr.msk.f32.gmra.mrb[72].mxu0 %vm744_vm3, %v3241_v9 }
 0x673   :  { %5120 = vmatprep.mubr.msk.f32.mxu0 %vm744_vm3, %v3242_v41 }
 0x676   :  { %5121 = vmatmul.mubr.msk.f32.gmra.mrb[74].mxu0 %vm744_vm3, %v3243_v47 }
 0x6cd   :  { %v5029_v10 = vpop.f32.mrb[12].mxu0 }
 0x6ce   :  { %v3822_v32 = vsel %vm1675_vm4, %v5029_v10, -1e+30  ;;  %v3502_v36 = vpop.f32.mrb[13].mxu0  ;;  %vm6951_vm4 = vcmp.gt.f32.partialorder %v5720_v18, 0.0 }
 0x6cf   :  { %v3886_v31 = vsel %vm744_vm3, %v3822_v32, -inf  ;;  %v3821_v44 = vsel %vm1674_vm5, %v3502_v36, -1e+30  ;;  %vm6952_vm5 = vcmp.gt.f32.partialorder %v5722_v56, 0.0 }
 0x6d0   :  { %v3885_v20 = vsel %vm744_vm3, %v3821_v44, -inf }
 0x6d1   :  { %v3887_v8 = vmax.f32 %v3885_v20, %v3886_v31  ;;  %v5032_v6 = vpop.f32.mrb[14].mxu0 }
 0x6d2   :  { %v3824_v30 = vsel %vm1677_vm6, %v5032_v6, -1e+30  ;;  %v3512_v53 = vpop.f32.mrb[15].mxu0  ;;  %vm6953_vm6 = vcmp.gt.f32.partialorder %v5732_v60, 0.0 }
 0x6d3   :  { %v3888_v11 = vrot.slane %v3887_v8, 4  ;;  %v3895_v15 = vsel %vm744_vm3, %v3824_v30, -inf  ;;  %v3823_v52 = vsel %vm6950_vm1, %v3512_v53, -1e+30  ;;  %vm6954_vm1 = vcmp.gt.f32.partialorder %v5734_v61, 0.0  ;;  %v6956_v30 = vld [vmem:[#allocation5_spill] sm:$0xff] }
 0x6d4   :  { %v3894_v21 = vsel %vm744_vm3, %v3823_v52, -inf  ;;  %v6543_v53 = vrot.slane %v6310_v43, %v6956_v30 }
 0x6d5   :  { %v3889_v38 = vmax.f32 %v3887_v8, %v3888_v11  ;;  %v3896_v22 = vmax.f32 %v3894_v21, %v3895_v15  ;;  %v5035_v59 = vpop.f32.mrb[16].mxu0  ;;  %v6957_v15 = vld [vmem:[#allocation7_spill] sm:$0xff]  ;;  %v2565_v21 = vld [vmem:[%s6822_s7 + $0x40] sm:$0xff] }
 0x6d6   :  { %v3826_v29 = vsel %vm6951_vm4, %v5035_v59, -1e+30  ;;  %v3522_v34 = vpop.f32.mrb[17].mxu0  ;;  %vm6955_vm4 = vcmp.gt.f32.partialorder %v5740_v1, 0.0  ;;  %v2566_v1 = vld [vmem:[%s6822_s7 + $0x48] sm:$0xff] }
 0x6d7   :  { %v3890_v3 = vrot.slane %v3889_v38, 2  ;;  %v3897_v39 = vrot.slane %v3896_v22, 4  ;;  %v3904_v54 = vsel %vm744_vm3, %v3826_v29, -inf  ;;  %v3825_v27 = vsel %vm6952_vm5, %v3522_v34, -1e+30 }
 0x6d8   :  { %v3903_v9 = vsel %vm744_vm3, %v3825_v27, -inf  ;;  %vm6958_vm5 = vcmp.gt.f32.partialorder %v6957_v15, 0.0  ;;  %v6554_v43 = vpack.c.bf16 %v2566_v1, %v2565_v21 }
 0x6d9   :  { %v3891_v55 = vmax.f32 %v3889_v38, %v3890_v3  ;;  %v3898_v33 = vmax.f32 %v3896_v22, %v3897_v39  ;;  %v3905_v41 = vmax.f32 %v3903_v9, %v3904_v54  ;;  %v5038_v47 = vpop.f32.mrb[18].mxu0  ;;  %v6959_v39 = vld [vmem:[#allocation12_spill] sm:$0xff] }
 0x6da   :  { %v3828_v51 = vsel %vm6953_vm6, %v5038_v47, -1e+30  ;;  %v3532_v40 = vpop.f32.mrb[19].mxu0  ;;  %vm6960_vm6 = vcmp.gt.f32.partialorder %v6959_v39, 0.0  ;;  %5208 = vmatprep.subr.bf16.mxu1 %v6554_v43 }
 0x6db   :  { %v3899_v18 = vrot.slane %v3898_v33, 2  ;;  %v3906_v49 = vrot.slane %v3905_v41, 4  ;;  %v3913_v25 = vsel %vm744_vm3, %v3828_v51, -inf  ;;  %v3892_v42 = vrot.slane %v3891_v55, 1 }
 0x6dc   :  { %v3827_v24 = vsel %vm6954_vm1, %v3532_v40, -1e+30 }
 0x6dd   :  { %v3900_v56 = vmax.f32 %v3898_v33, %v3899_v18  ;;  %v3907_v10 = vmax.f32 %v3905_v41, %v3906_v49  ;;  %v3912_v32 = vsel %vm744_vm3, %v3827_v24, -inf  ;;  %v5041_v36 = vpop.f32.mrb[20].mxu0  ;;  %v3893_v61 = vmax.f32 %v3891_v55, %v3892_v42  ;;  %v6961_v41 = vld [vmem:[#allocation13_spill] sm:$0xff] }
 0x6de   :  { %v3914_v31 = vmax.f32 %v3912_v32, %v3913_v25  ;;  %v3830_v44 = vsel %vm6955_vm4, %v5041_v36, -1e+30  ;;  %v3542_v60 = vpop.f32.mrb[21].mxu0  ;;  %vm6962_vm1 = vcmp.gt.f32.partialorder %v6961_v41, 0.0  ;;  %vm6963_vm4 = vcmp.gt.f32.partialorder %v5772_v23, 0.0 }
 0x6df   :  { %v3901_v20 = vrot.slane %v3900_v56, 1  ;;  %v3908_v8 = vrot.slane %v3907_v10, 2  ;;  %v3922_v6 = vsel %vm744_vm3, %v3830_v44, -inf  ;;  %v3829_v52 = vsel %vm6958_vm5, %v3542_v60, -1e+30 }
 0x6e0   :  { %v3915_v11 = vrot.slane %v3914_v31, 4  ;;  %v3921_v59 = vsel %vm744_vm3, %v3829_v52, -inf  ;;  %v4177_v49 = vadd.f32 %v6543_v53, %v3893_v61  ;;  %v6964_v61 = vld [vmem:[#allocation16_spill] sm:$0xff] }
 0x6e1   :  { %v3902_v38 = vmax.f32 %v3900_v56, %v3901_v20  ;;  %v3909_v22 = vmax.f32 %v3907_v10, %v3908_v8  ;;  %v5044_v29 = vpop.f32.mrb[22].mxu0  ;;  %v3923_v3 = vmax.f32 %v3921_v59, %v3922_v6  ;;  %vm6965_vm5 = vcmp.gt.f32.partialorder %v6964_v61, 0.0  ;;  %v6966_v59 = vld [vmem:[#allocation18_spill] sm:$0xff] }
 0x6e2   :  { %v3916_v34 = vmax.f32 %v3914_v31, %v3915_v11  ;;  %v3832_v54 = vsel %vm6960_vm6, %v5044_v29, -1e+30  ;;  %v3552_v27 = vpop.f32.mrb[23].mxu0  ;;  %vm6967_vm6 = vcmp.gt.f32.partialorder %v6966_v59, 0.0 }
 0x6e3   :  { %v4178_v9 = vadd.f32 %v6543_v53, %v3902_v38  ;;  %v3910_v55 = vrot.slane %v3909_v22, 1  ;;  %v3931_v33 = vsel %vm744_vm3, %v3832_v54, -inf  ;;  %v3831_v47 = vsel %vm6962_vm1, %v3552_v27, -1e+30  ;;  %v6968_v54 = vld [vmem:[#allocation19_spill] sm:$0xff] }
 0x6e4   :  { %v3917_v51 = vrot.slane %v3916_v34, 2  ;;  %v3924_v40 = vrot.slane %v3923_v3, 4  ;;  %v3930_v18 = vsel %vm744_vm3, %v3831_v47, -inf  ;;  %vm6969_vm1 = vcmp.gt.f32.partialorder %v6968_v54, 0.0 }
 0x6e5   :  { %v4245_v25 = vrot.slane %v4178_v9, 7  ;;  %v3911_v42 = vmax.f32 %v3909_v22, %v3910_v55  ;;  %v3932_v24 = vmax.f32 %v3930_v18, %v3931_v33  ;;  %v5047_v56 = vpop.f32.mrb[24].mxu0 }
 0x6e6   :  { %v3918_v10 = vmax.f32 %v3916_v34, %v3917_v51  ;;  %v3925_v32 = vmax.f32 %v3923_v3, %v3924_v40  ;;  %v3834_v36 = vsel %vm6963_vm4, %v5047_v56, -1e+30  ;;  %v3562_v31 = vpop.f32.mrb[25].mxu0 }
 0x6e7   :  { %v4246_v44 = vsel %vm2291_vm14, %v4245_v25, %v4177_v49  ;;  %v4179_v60 = vadd.f32 %v6543_v53, %v3911_v42  ;;  %v3933_v20 = vrot.slane %v3932_v24, 4  ;;  %v3940_v8 = vsel %vm744_vm3, %v3834_v36, -inf }
 0x6e8   :  { %v3919_v6 = vrot.slane %v3918_v10, 1  ;;  %v3926_v30 = vrot.slane %v3925_v32, 2  ;;  %v3833_v11 = vsel %vm6965_vm5, %v3562_v31, -1e+30 }
 0x6e9   :  { %v4247_v15 = vrot.slane %v4179_v60, 6  ;;  %v3934_v52 = vmax.f32 %v3932_v24, %v3933_v20  ;;  %v3939_v21 = vsel %vm744_vm3, %v3833_v11, -inf  ;;  %v5050_v1 = vpop.f32.mrb[26].mxu0  ;;  %v6970_v24 = vld [vmem:[#allocation8_spill] sm:$0xff] }
 0x6ea   :  { %v3920_v23 = vmax.f32 %v3918_v10, %v3919_v6  ;;  %v3927_v38 = vmax.f32 %v3925_v32, %v3926_v30  ;;  %v3941_v22 = vmax.f32 %v3939_v21, %v3940_v8  ;;  %v3836_v29 = vsel %vm6967_vm6, %v5050_v1, -1e+30  ;;  %v3572_v34 = vpop.f32.mrb[27].mxu0 }
 0x6eb   :  { %v3935_v3 = vrot.slane %v3934_v52, 2  ;;  %v3949_v39 = vsel %vm744_vm3, %v3836_v29, -inf  ;;  %v3835_v27 = vsel %vm6969_vm1, %v3572_v34, -1e+30  ;;  %v4248_v9 = vsel %vm2294_vm13, %v4247_v15, %v4246_v44  ;;  %v6972_v44 = vld [vmem:[#allocation9_spill] sm:$0xff] }
 0x6ec   :  { %v4180_v55 = vadd.f32 %v6543_v53, %v3920_v23  ;;  %v3928_v33 = vrot.slane %v3927_v38, 1  ;;  %v3942_v41 = vrot.slane %v3941_v22, 4  ;;  %v3948_v47 = vsel %vm744_vm3, %v3835_v27, -inf }
 0x6ed   :  { %v3936_v51 = vmax.f32 %v3934_v52, %v3935_v3  ;;  %v3950_v40 = vmax.f32 %v3948_v47, %v3949_v39  ;;  %v5053_v18 = vpop.f32.mrb[28].mxu0  ;;  %vm6971_vm4 = vcmp.gt.f32.partialorder %v6970_v24, 0.0  ;;  %vm6973_vm5 = vcmp.gt.f32.partialorder %v6972_v44, 0.0  ;;  %v6975_v39 = vld [vmem:[#allocation6_spill] sm:$0xff] }
 0x6ee   :  { %v4249_v49 = vrot.slane %v4180_v55, 5  ;;  %v3929_v25 = vmax.f32 %v3927_v38, %v3928_v33  ;;  %v3943_v42 = vmax.f32 %v3941_v22, %v3942_v41  ;;  %v3838_v56 = vsel %vm6971_vm4, %v5053_v18, -1e+30  ;;  %v3582_v10 = vpop.f32.mrb[29].mxu0 }
 0x6ef   :  { %v3937_v32 = vrot.slane %v3936_v51, 1  ;;  %v3951_v36 = vrot.slane %v3950_v40, 4  ;;  %v3958_v31 = vsel %vm744_vm3, %v3838_v56, -inf  ;;  %v3837_v60 = vsel %vm6973_vm5, %v3582_v10, -1e+30 }
 0x6f0   :  { %v4181_v20 = vadd.f32 %v6543_v53, %v3929_v25  ;;  %v3944_v8 = vrot.slane %v3943_v42, 2  ;;  %v3957_v6 = vsel %vm744_vm3, %v3837_v60, -inf  ;;  %v4250_v30 = vsel %vm2297_vm15, %v4249_v49, %v4248_v9 }
 0x6f1   :  { %v3938_v61 = vmax.f32 %v3936_v51, %v3937_v32  ;;  %v3952_v11 = vmax.f32 %v3950_v40, %v3951_v36  ;;  %v3959_v15 = vmax.f32 %v3957_v6, %v3958_v31  ;;  %v5056_v52 = vpop.f32.mrb[30].mxu0  ;;  %vm6974_vm6 = vcmp.gt.f32.partialorder %v5724_v57, 0.0 }
 0x6f2   :  { %v4251_v21 = vrot.slane %v4181_v20, 4  ;;  %v3945_v1 = vmax.f32 %v3943_v42, %v3944_v8  ;;  %v3840_v23 = vsel %vm6974_vm6, %v5056_v52, -1e+30  ;;  %v3592_v38 = vpop.f32.mrb[31].mxu0  ;;  %vm6976_vm1 = vcmp.gt.f32.partialorder %v6975_v39, 0.0  ;;  %v6979_v8 = vld [vmem:[#allocation10_spill] sm:$0xff] }
 0x6f3   :  { %v4182_v22 = vadd.f32 %v6543_v53, %v3938_v61  ;;  %v3953_v59 = vrot.slane %v3952_v11, 2  ;;  %v3960_v29 = vrot.slane %v3959_v15, 4  ;;  %v3967_v34 = vsel %vm744_vm3, %v3840_v23, -inf  ;;  %v6983_v39 = vld [vmem:[#allocation14_spill] sm:$0xff] }
 0x6f4   :  { %v3946_v3 = vrot.slane %v3945_v1, 1  ;;  %v3839_v54 = vsel %vm6976_vm1, %v3592_v38, -1e+30  ;;  %v4252_v27 = vsel %vm2300_vm12, %v4251_v21, %v4250_v30  ;;  %vm6977_vm4 = vcmp.gt.f32.partialorder %v5736_v62, 0.0 }
 0x6f5   :  { %v4253_v9 = vrot.slane %v4182_v22, 3  ;;  %v3954_v55 = vmax.f32 %v3952_v11, %v3953_v59  ;;  %v3961_v33 = vmax.f32 %v3959_v15, %v3960_v29  ;;  %v3966_v41 = vsel %vm744_vm3, %v3839_v54, -inf  ;;  %v5059_v57 = vpop.f32.mrb[32].mxu0  ;;  %v6981_v15 = vld [vmem:[#allocation11_spill] sm:$0xff] }
 0x6f6   :  { %v3947_v47 = vmax.f32 %v3945_v1, %v3946_v3  ;;  %v3968_v51 = vmax.f32 %v3966_v41, %v3967_v34  ;;  %v3842_v40 = vsel %vm6977_vm4, %v5059_v57, -1e+30  ;;  %v3602_v18 = vpop.f32.mrb[33].mxu0  ;;  %vm6978_vm5 = vcmp.gt.f32.partialorder %v5738_v0, 0.0 }
 0x6f7   :  { %v3955_v49 = vrot.slane %v3954_v55, 1  ;;  %v3962_v25 = vrot.slane %v3961_v33, 2  ;;  %v3976_v42 = vsel %vm744_vm3, %v3842_v40, -inf  ;;  %v3841_v24 = vsel %vm6978_vm5, %v3602_v18, -1e+30 }
 0x6f8   :  { %v4183_v56 = vadd.f32 %v6543_v53, %v3947_v47  ;;  %v3969_v10 = vrot.slane %v3968_v51, 4  ;;  %v3975_v32 = vsel %vm744_vm3, %v3841_v24, -inf  ;;  %v4254_v36 = vsel %vm2303_vm11, %v4253_v9, %v4252_v27  ;;  %v6985_v47 = vld [vmem:[#allocation15_spill] sm:$0xff] }
 0x6f9   :  { %v3956_v31 = vmax.f32 %v3954_v55, %v3955_v49  ;;  %v3977_v44 = vmax.f32 %v3975_v32, %v3976_v42  ;;  %v5062_v60 = vpop.f32.mrb[34].mxu0  ;;  %v3963_v62 = vmax.f32 %v3961_v33, %v3962_v25  ;;  %vm6980_vm6 = vcmp.gt.f32.partialorder %v6979_v8, 0.0 }
 0x6fa   :  { %v3970_v20 = vmax.f32 %v3968_v51, %v3969_v10  ;;  %v3844_v6 = vsel %vm6980_vm6, %v5062_v60, -1e+30  ;;  %v3612_v30 = vpop.f32.mrb[35].mxu0  ;;  %v4255_v61 = vrot.slane %v4183_v56, 2  ;;  %vm6982_vm1 = vcmp.gt.f32.partialorder %v6981_v15, 0.0 }
 0x6fb   :  { %v3978_v11 = vrot.slane %v3977_v44, 4  ;;  %v3985_v0 = vsel %vm744_vm3, %v3844_v6, -inf  ;;  %v3843_v52 = vsel %vm6982_vm1, %v3612_v30, -1e+30  ;;  %v4184_v23 = vadd.f32 %v6543_v53, %v3956_v31 }
 0x6fc   :  { %v3971_v21 = vrot.slane %v3970_v20, 2  ;;  %v3984_v1 = vsel %vm744_vm3, %v3843_v52, -inf  ;;  %v4256_v38 = vsel %vm2306_vm0, %v4255_v61, %v4254_v36  ;;  %v3964_v34 = vrot.slane %v3963_v62, 1 }
 0x6fd   :  { %v3979_v22 = vmax.f32 %v3977_v44, %v3978_v11  ;;  %v3986_v59 = vmax.f32 %v3984_v1, %v3985_v0  ;;  %v5065_v29 = vpop.f32.mrb[36].mxu0  ;;  %vm6984_vm4 = vcmp.gt.f32.partialorder %v6983_v39, 0.0  ;;  %v4257_v9 = vrot.slane %v4184_v23, 1  ;;  %v6991_v39 = vld [vmem:[#allocation20_spill] sm:$0xff] }
 0x6fe   :  { %v3972_v3 = vmax.f32 %v3970_v20, %v3971_v21  ;;  %v3846_v54 = vsel %vm6984_vm4, %v5065_v29, -1e+30  ;;  %v3622_v27 = vpop.f32.mrb[37].mxu0  ;;  %vm6986_vm5 = vcmp.gt.f32.partialorder %v6985_v47, 0.0  ;;  %v3965_v24 = vmax.f32 %v3963_v62, %v3964_v34  ;;  %v6988_v20 = vld [vmem:[#allocation17_spill] sm:$0xff] }
 0x6ff   :  { %v3980_v55 = vrot.slane %v3979_v22, 2  ;;  %v3987_v33 = vrot.slane %v3986_v59, 4  ;;  %v3994_v41 = vsel %vm744_vm3, %v3846_v54, -inf  ;;  %v3845_v51 = vsel %vm6986_vm5, %v3622_v27, -1e+30 }
 0x700   :  { %v3973_v57 = vrot.slane %v3972_v3, 1  ;;  %v4258_v40 = vsel %vm2309_vm9, %v4257_v9, %v4256_v38  ;;  %v3993_v25 = vsel %vm744_vm3, %v3845_v51, -inf  ;;  %vm6987_vm6 = vcmp.gt.f32.partialorder %v5776_v26, 0.0 }
 0x701   :  { %v3981_v18 = vmax.f32 %v3979_v22, %v3980_v55  ;;  %v3988_v49 = vmax.f32 %v3986_v59, %v3987_v33  ;;  %5131 = vmatprep.mubr.msk.f32.mxu1 %vm744_vm3, %v4258_v40  ;;  %v5068_v42 = vpop.f32.mrb[38].mxu0  ;;  %v3995_v10 = vmax.f32 %v3993_v25, %v3994_v41  ;;  %vm6989_vm1 = vcmp.gt.f32.partialorder %v6988_v20, 0.0 }
 0x702   :  { %v3974_v56 = vmax.f32 %v3972_v3, %v3973_v57  ;;  %v3848_v32 = vsel %vm6987_vm6, %v5068_v42, -1e+30  ;;  %v3632_v36 = vpop.f32.mrb[39].mxu0  ;;  %v4185_v26 = vadd.f32 %v6543_v53, %v3965_v24  ;;  %vm6990_vm4 = vcmp.gt.f32.partialorder %v5784_v46, 0.0 }
 0x703   :  { %v3982_v31 = vrot.slane %v3981_v18, 1  ;;  %v3989_v44 = vrot.slane %v3988_v49, 2  ;;  %v4003_v60 = vsel %vm744_vm3, %v3848_v32, -inf  ;;  %v3847_v8 = vsel %vm6989_vm1, %v3632_v36, -1e+30 }
 0x704   :  { %v4186_v6 = vadd.f32 %v6543_v53, %v3974_v56  ;;  %v3996_v30 = vrot.slane %v3995_v10, 4  ;;  %v4002_v61 = vsel %vm744_vm3, %v3847_v8, -inf  ;;  %vm6992_vm5 = vcmp.gt.f32.partialorder %v6991_v39, 0.0  ;;  %v6994_v56 = vld [vmem:[#allocation21_spill] sm:$0xff] }
 0x705   :  { %v3983_v11 = vmax.f32 %v3981_v18, %v3982_v31  ;;  %v3990_v62 = vmax.f32 %v3988_v49, %v3989_v44  ;;  %v4004_v0 = vmax.f32 %v4002_v61, %v4003_v60  ;;  %v5071_v15 = vpop.f32.mrb[40].mxu0  ;;  %vm6993_vm6 = vcmp.gt.f32.partialorder %v5795_v63, 0.0 }
 0x706   :  { %v4259_v52 = vrot.slane %v4186_v6, 7  ;;  %v3997_v21 = vmax.f32 %v3995_v10, %v3996_v30  ;;  %v3850_v1 = vsel %vm6990_vm4, %v5071_v15, -1e+30  ;;  %v3642_v23 = vpop.f32.mrb[41].mxu0  ;;  %vm6995_vm1 = vcmp.gt.f32.partialorder %v6994_v56, 0.0 }
 0x707   :  { %v4187_v38 = vadd.f32 %v6543_v53, %v3983_v11  ;;  %v3991_v22 = vrot.slane %v3990_v62, 1  ;;  %v4005_v59 = vrot.slane %v4004_v0, 4  ;;  %v4012_v29 = vsel %vm744_vm3, %v3850_v1, -inf }
 0x708   :  { %v4260_v34 = vsel %vm2291_vm14, %v4259_v52, %v4185_v26  ;;  %v3998_v3 = vrot.slane %v3997_v21, 2  ;;  %v3849_v54 = vsel %vm6992_vm5, %v3642_v23, -1e+30 }
 0x709   :  { %v4261_v27 = vrot.slane %v4187_v38, 6  ;;  %v3992_v9 = vmax.f32 %v3990_v62, %v3991_v22  ;;  %v4006_v55 = vmax.f32 %v4004_v0, %v4005_v59  ;;  %v4011_v33 = vsel %vm744_vm3, %v3849_v54, -inf  ;;  %v5074_v46 = vpop.f32.mrb[42].mxu0  ;;  %v6996_v62 = vld [vmem:[#allocation26_spill] sm:$0xff] }
 0x70a   :  { %v3999_v41 = vmax.f32 %v3997_v21, %v3998_v3  ;;  %v4013_v57 = vmax.f32 %v4011_v33, %v4012_v29  ;;  %v3852_v47 = vsel %vm6993_vm6, %v5074_v46, -1e+30  ;;  %v3652_v51 = vpop.f32.mrb[43].mxu0  ;;  %vm6997_vm4 = vcmp.gt.f32.partialorder %v6996_v62, 0.0  ;;  %v6998_v29 = vld [vmem:[#allocation22_spill] sm:$0xff] }
 0x70b   :  { %v4262_v40 = vsel %vm2294_vm13, %v4261_v27, %v4260_v34  ;;  %v4188_v18 = vadd.f32 %v6543_v53, %v3992_v9  ;;  %v4007_v49 = vrot.slane %v4006_v55, 2  ;;  %v4021_v25 = vsel %vm744_vm3, %v3852_v47, -inf  ;;  %v7000_v9 = vld [vmem:[#allocation23_spill] sm:$0xff] }
 0x70c   :  { %v4000_v42 = vrot.slane %v3999_v41, 1  ;;  %v4014_v24 = vrot.slane %v4013_v57, 4  ;;  %v3851_v10 = vsel %vm6995_vm1, %v3652_v51, -1e+30  ;;  %vm7001_vm5 = vcmp.gt.f32.partialorder %v7000_v9, 0.0  ;;  %v7009_v9 = vld [vmem:[#allocation28_spill] sm:$0xff] }
 0x70d   :  { %v4263_v32 = vrot.slane %v4188_v18, 5  ;;  %v4008_v36 = vmax.f32 %v4006_v55, %v4007_v49  ;;  %v4020_v31 = vsel %vm744_vm3, %v3851_v10, -inf  ;;  %v5077_v44 = vpop.f32.mrb[44].mxu0 }
 0x70e   :  { %v4001_v63 = vmax.f32 %v3999_v41, %v4000_v42  ;;  %v4015_v60 = vmax.f32 %v4013_v57, %v4014_v24  ;;  %v4022_v20 = vmax.f32 %v4020_v31, %v4021_v25  ;;  %v3854_v8 = vsel %vm1707_vm10, %v5077_v44, -1e+30  ;;  %v3662_v6 = vpop.f32.mrb[45].mxu0  ;;  %v7002_v42 = vld [vmem:[#allocation24_spill] sm:$0xff]  ;;  %v7004_v31 = vld [vmem:[#allocation25_spill] sm:$0xff] }
 0x70f   :  { %v4264_v30 = vsel %vm2297_vm15, %v4263_v32, %v4262_v40  ;;  %v4009_v61 = vrot.slane %v4008_v36, 1  ;;  %v4030_v11 = vsel %vm744_vm3, %v3854_v8, -inf  ;;  %v3853_v0 = vsel %vm6997_vm4, %v3662_v6, -1e+30 }
 0x710   :  { %v4189_v15 = vadd.f32 %v6543_v53, %v4001_v63  ;;  %v4016_v26 = vrot.slane %v4015_v60, 2  ;;  %v4023_v52 = vrot.slane %v4022_v20, 4  ;;  %v4029_v21 = vsel %vm744_vm3, %v3853_v0, -inf }
 0x711   :  { %v4010_v1 = vmax.f32 %v4008_v36, %v4009_v61  ;;  %v4031_v23 = vmax.f32 %v4029_v21, %v4030_v11  ;;  %v5080_v38 = vpop.f32.mrb[46].mxu0  ;;  %vm6999_vm10 = vcmp.gt.f32.partialorder %v6998_v29, 0.0  ;;  %vm7003_vm6 = vcmp.gt.f32.partialorder %v7002_v42, 0.0 }
 0x712   :  { %v4265_v19 = vrot.slane %v4189_v15, 4  ;;  %v4017_v22 = vmax.f32 %v4015_v60, %v4016_v26  ;;  %v4024_v59 = vmax.f32 %v4022_v20, %v4023_v52  ;;  %v3856_v34 = vsel %vm6999_vm10, %v5080_v38, -1e+30  ;;  %v3672_v3 = vpop.f32.mrb[47].mxu0  ;;  %v7006_v15 = vld [vmem:[#allocation27_spill] sm:$0xff] }
 0x713   :  { %v4190_v39 = vadd.f32 %v6543_v53, %v4010_v1  ;;  %v4032_v54 = vrot.slane %v4031_v23, 4  ;;  %v4039_v27 = vsel %vm744_vm3, %v3856_v34, -inf  ;;  %v3855_v55 = vsel %vm7001_vm5, %v3672_v3, -1e+30 }
 0x714   :  { %v4018_v33 = vrot.slane %v4017_v22, 1  ;;  %v4025_v46 = vrot.slane %v4024_v59, 2  ;;  %v4038_v41 = vsel %vm744_vm3, %v3855_v55, -inf  ;;  %v4266_v57 = vsel %vm2300_vm12, %v4265_v19, %v4264_v30 }
 0x715   :  { %v4267_v47 = vrot.slane %v4190_v39, 3  ;;  %v4033_v51 = vmax.f32 %v4031_v23, %v4032_v54  ;;  %v4040_v40 = vmax.f32 %v4038_v41, %v4039_v27  ;;  %v5083_v18 = vpop.f32.mrb[48].mxu0  ;;  %vm7005_vm1 = vcmp.gt.f32.partialorder %v7004_v31, 0.0 }
 0x716   :  { %v4019_v49 = vmax.f32 %v4017_v22, %v4018_v33  ;;  %v4026_v25 = vmax.f32 %v4024_v59, %v4025_v46  ;;  %v3858_v24 = vsel %vm7003_vm6, %v5083_v18, -1e+30  ;;  %v3682_v56 = vpop.f32.mrb[49].mxu0  ;;  %vm7007_vm4 = vcmp.gt.f32.partialorder %v7006_v15, 0.0 }
 0x717   :  { %v4034_v10 = vrot.slane %v4033_v51, 2  ;;  %v4041_v32 = vrot.slane %v4040_v40, 4  ;;  %v4048_v36 = vsel %vm744_vm3, %v3858_v24, -inf  ;;  %v3857_v44 = vsel %vm7005_vm1, %v3682_v56, -1e+30 }
 0x718   :  { %v4191_v63 = vadd.f32 %v6543_v53, %v4019_v49  ;;  %v4027_v60 = vrot.slane %v4026_v25, 1  ;;  %v4047_v20 = vsel %vm744_vm3, %v3857_v44, -inf  ;;  %v4268_v8 = vsel %vm2303_vm11, %v4267_v47, %v4266_v57 }
 0x719   :  { %v4035_v6 = vmax.f32 %v4033_v51, %v4034_v10  ;;  %v4042_v30 = vmax.f32 %v4040_v40, %v4041_v32  ;;  %v4049_v61 = vmax.f32 %v4047_v20, %v4048_v36  ;;  %v5086_v11 = vpop.f32.mrb[50].mxu0  ;;  %vm7008_vm10 = vcmp.gt.f32.partialorder %v5905_v48, 0.0 }
 0x71a   :  { %v4269_v62 = vrot.slane %v4191_v63, 2  ;;  %v4028_v0 = vmax.f32 %v4026_v25, %v4027_v60  ;;  %v3860_v26 = vsel %vm7007_vm4, %v5086_v11, -1e+30  ;;  %v3692_v52 = vpop.f32.mrb[51].mxu0  ;;  %vm7010_vm5 = vcmp.gt.f32.partialorder %v7009_v9, 0.0 }
 0x71b   :  { %v4043_v21 = vrot.slane %v4042_v30, 2  ;;  %v4050_v1 = vrot.slane %v4049_v61, 4  ;;  %v4057_v23 = vsel %vm744_vm3, %v3860_v26, -inf  ;;  %v3859_v19 = vsel %vm7008_vm10, %v3692_v52, -1e+30 }
 0x71c   :  { %v4192_v38 = vadd.f32 %v6543_v53, %v4028_v0  ;;  %v4270_v22 = vsel %vm2306_vm0, %v4269_v62, %v4268_v8  ;;  %v4036_v59 = vrot.slane %v4035_v6, 1  ;;  %v4056_v3 = vsel %vm744_vm3, %v3859_v19, -inf }
 0x71d   :  { %v4044_v29 = vmax.f32 %v4042_v30, %v4043_v21  ;;  %v4051_v34 = vmax.f32 %v4049_v61, %v4050_v1  ;;  %v5089_v39 = vpop.f32.mrb[52].mxu0  ;;  %v4058_v27 = vmax.f32 %v4056_v3, %v4057_v23  ;;  %vm7011_vm6 = vcmp.gt.f32.partialorder %v5941_v37, 0.0  ;;  %v7015_v23 = vld [vmem:[#allocation31_spill] sm:$0xff] }
 0x71e   :  { %v4271_v54 = vrot.slane %v4192_v38, 1  ;;  %v3862_v55 = vsel %vm7010_vm5, %v5089_v39, -1e+30  ;;  %v3702_v33 = vpop.f32.mrb[53].mxu0  ;;  %v4037_v40 = vmax.f32 %v4035_v6, %v4036_v59  ;;  %vm7012_vm1 = vcmp.gt.f32.partialorder %v5991_v50, 0.0 }
 0x71f   :  { %v4045_v46 = vrot.slane %v4044_v29, 1  ;;  %v4052_v41 = vrot.slane %v4051_v34, 2  ;;  %v4066_v57 = vsel %vm744_vm3, %v3862_v55, -inf  ;;  %v4059_v48 = vrot.slane %v4058_v27, 4  ;;  %v7018_v55 = vld [vmem:[#allocation34_spill] sm:$0xff] }
 0x720   :  { %v3861_v47 = vsel %vm7011_vm6, %v3702_v33, -1e+30  ;;  %v4272_v51 = vsel %vm2309_vm9, %v4271_v54, %v4270_v22  ;;  %vm7013_vm4 = vcmp.gt.f32.partialorder %v5998_v2, 0.0  ;;  %v4193_v8 = vadd.f32 %v6543_v53, %v4037_v40 }
 0x721   :  { %v4046_v18 = vmax.f32 %v4044_v29, %v4045_v46  ;;  %v4053_v49 = vmax.f32 %v4051_v34, %v4052_v41  ;;  %v4065_v25 = vsel %vm744_vm3, %v3861_v47, -inf  ;;  %5132 = vmatmul.mubr.msk.f32.vlgmr.msra.gmra.mrb[68].mxu1 %vm744_vm3, %v4272_v51  ;;  %v5092_v42 = vpop.f32.mrb[54].mxu0  ;;  %v4060_v24 = vmax.f32 %v4058_v27, %v4059_v48 }
 0x722   :  { %v4067_v56 = vmax.f32 %v4065_v25, %v4066_v57  ;;  %v3864_v10 = vsel %vm7012_vm1, %v5092_v42, -1e+30  ;;  %v3712_v32 = vpop.f32.mrb[55].mxu0  ;;  %5210 = vmatpush3.bf16.msra.mxu1 %v6554_v43  ;;  %vm7014_vm10 = vcmp.gt.f32.partialorder %v6029_v16, 0.0  ;;  %vm7016_vm5 = vcmp.gt.f32.partialorder %v7015_v23, 0.0 }
 0x723   :  { %v4194_v37 = vadd.f32 %v6543_v53, %v4046_v18  ;;  %v4054_v36 = vrot.slane %v4053_v49, 1  ;;  %v4075_v31 = vsel %vm744_vm3, %v3864_v10, -inf  ;;  %v3863_v44 = vsel %vm7013_vm4, %v3712_v32, -1e+30 }
 0x724   :  { %v4061_v63 = vrot.slane %v4060_v24, 2  ;;  %v4068_v60 = vrot.slane %v4067_v56, 4  ;;  %v4074_v20 = vsel %vm744_vm3, %v3863_v44, -inf  ;;  %vm7017_vm6 = vcmp.gt.f32.partialorder %v6069_v45, 0.0 }
 0x725   :  { %v4273_v6 = vrot.slane %v4194_v37, 7  ;;  %v4055_v50 = vmax.f32 %v4053_v49, %v4054_v36  ;;  %v4076_v30 = vmax.f32 %v4074_v20, %v4075_v31  ;;  %v5095_v61 = vpop.f32.mrb[56].mxu0  ;;  %vm7019_vm1 = vcmp.gt.f32.partialorder %v7018_v55, 0.0 }
 0x726   :  { %v4062_v11 = vmax.f32 %v4060_v24, %v4061_v63  ;;  %v4069_v43 = vmax.f32 %v4067_v56, %v4068_v60  ;;  %v3866_v62 = vsel %vm7014_vm10, %v5095_v61, -1e+30  ;;  %v3722_v0 = vpop.f32.mrb[57].mxu0  ;;  %vm7020_vm4 = vcmp.gt.f32.partialorder %v5951_v17, 0.0 }
 0x727   :  { %v4274_v15 = vsel %vm2291_vm14, %v4273_v6, %v4193_v8  ;;  %v4195_v2 = vadd.f32 %v6543_v53, %v4055_v50  ;;  %v4077_v26 = vrot.slane %v4076_v30, 4  ;;  %v4084_v52 = vsel %vm744_vm3, %v3866_v62, -inf }
 0x728   :  { %v4063_v21 = vrot.slane %v4062_v11, 1  ;;  %v4070_v1 = vrot.slane %v4069_v43, 2  ;;  %v3865_v38 = vsel %vm7016_vm5, %v3722_v0, -1e+30  ;;  %vm7021_vm10 = vcmp.gt.f32.partialorder %v5960_v58, 0.0 }
 0x729   :  { %v4275_v19 = vrot.slane %v4195_v2, 6  ;;  %v4078_v22 = vmax.f32 %v4076_v30, %v4077_v26  ;;  %v4083_v59 = vsel %vm744_vm3, %v3865_v38, -inf  ;;  %v5098_v29 = vpop.f32.mrb[58].mxu0  ;;  %vm7022_vm5 = vcmp.gt.f32.partialorder %v5855_v13, 0.0 }
 0x72a   :  { %v4064_v16 = vmax.f32 %v4062_v11, %v4063_v21  ;;  %v4071_v34 = vmax.f32 %v4069_v43, %v4070_v1  ;;  %v4085_v3 = vmax.f32 %v4083_v59, %v4084_v52  ;;  %v3868_v39 = vsel %vm7017_vm6, %v5098_v29, -1e+30  ;;  %v3732_v54 = vpop.f32.mrb[59].mxu0 }
 0x72b   :  { %v4079_v27 = vrot.slane %v4078_v22, 2  ;;  %v4093_v9 = vsel %vm744_vm3, %v3868_v39, -inf  ;;  %v3867_v33 = vsel %vm7019_vm1, %v3732_v54, -1e+30  ;;  %v4276_v46 = vsel %vm2294_vm13, %v4275_v19, %v4274_v15 }
 0x72c   :  { %v4196_v41 = vadd.f32 %v6543_v53, %v4064_v16  ;;  %v4072_v57 = vrot.slane %v4071_v34, 1  ;;  %v4086_v48 = vrot.slane %v4085_v3, 4  ;;  %v4092_v47 = vsel %vm744_vm3, %v3867_v33, -inf }
 0x72d   :  { %v4080_v51 = vmax.f32 %v4078_v22, %v4079_v27  ;;  %v4094_v40 = vmax.f32 %v4092_v47, %v4093_v9  ;;  %v5101_v18 = vpop.f32.mrb[60].mxu0  ;;  %vm7023_vm6 = vcmp.gt.f32.partialorder %v5866_v4, 0.0  ;;  %vm7024_vm1 = vcmp.gt.f32.partialorder %v5915_v28, 0.0 }
 0x72e   :  { %v4277_v45 = vrot.slane %v4196_v41, 5  ;;  %v4073_v49 = vmax.f32 %v4071_v34, %v4072_v57  ;;  %v4087_v25 = vmax.f32 %v4085_v3, %v4086_v48  ;;  %v3870_v42 = vsel %vm7020_vm4, %v5101_v18, -1e+30  ;;  %v3742_v24 = vpop.f32.mrb[61].mxu0 }
 0x72f   :  { %v4081_v56 = vrot.slane %v4080_v51, 1  ;;  %v4095_v10 = vrot.slane %v4094_v40, 4  ;;  %v4102_v32 = vsel %vm744_vm3, %v3870_v42, -inf  ;;  %v3869_v37 = vsel %vm7021_vm10, %v3742_v24, -1e+30 }
 0x730   :  { %v4197_v36 = vadd.f32 %v6543_v53, %v4073_v49  ;;  %v4088_v31 = vrot.slane %v4087_v25, 2  ;;  %v4101_v44 = vsel %vm744_vm3, %v3869_v37, -inf  ;;  %v4278_v63 = vsel %vm2297_vm15, %v4277_v45, %v4276_v46 }
 0x731   :  { %v4082_v60 = vmax.f32 %v4080_v51, %v4081_v56  ;;  %v4096_v20 = vmax.f32 %v4094_v40, %v4095_v10  ;;  %v4103_v8 = vmax.f32 %v4101_v44, %v4102_v32  ;;  %v5104_v17 = vpop.f32.mrb[62].mxu0  ;;  %vm7025_vm4 = vcmp.gt.f32.partialorder %v5921_v5, 0.0  ;;  %v7028_v56 = vld [vmem:[#allocation29_spill] sm:$0xff] }
 0x732   :  { %v4279_v6 = vrot.slane %v4197_v36, 4  ;;  %v4089_v50 = vmax.f32 %v4087_v25, %v4088_v31  ;;  %v3872_v30 = vsel %vm7022_vm5, %v5104_v17, -1e+30  ;;  %v3752_v61 = vpop.f32.mrb[63].mxu0  ;;  %vm7026_vm10 = vcmp.gt.f32.partialorder %v5971_v35, 0.0 }
 0x733   :  { %v4198_v58 = vadd.f32 %v6543_v53, %v4082_v60  ;;  %v4097_v11 = vrot.slane %v4096_v20, 2  ;;  %v4104_v43 = vrot.slane %v4103_v8, 4  ;;  %v4111_v62 = vsel %vm744_vm3, %v3872_v30, -inf }
 0x734   :  { %v4090_v0 = vrot.slane %v4089_v50, 1  ;;  %v3871_v15 = vsel %vm7023_vm6, %v3752_v61, -1e+30  ;;  %v4280_v2 = vsel %vm2300_vm12, %v4279_v6, %v4278_v63  ;;  %vm7027_vm5 = vcmp.gt.f32.partialorder %v5978_v14, 0.0  ;;  %v7030_v63 = vld [vmem:[#allocation30_spill] sm:$0xff] }
 0x735   :  { %v4281_v26 = vrot.slane %v4198_v58, 3  ;;  %v4098_v52 = vmax.f32 %v4096_v20, %v4097_v11  ;;  %v4105_v21 = vmax.f32 %v4103_v8, %v4104_v43  ;;  %v4110_v1 = vsel %vm744_vm3, %v3871_v15, -inf  ;;  %v5107_v13 = vpop.f32.mrb[64].mxu0  ;;  %v7032_v11 = vld [vmem:[#allocation32_spill] sm:$0xff] }
 0x736   :  { %v4091_v23 = vmax.f32 %v4089_v50, %v4090_v0  ;;  %v4112_v38 = vmax.f32 %v4110_v1, %v4111_v62  ;;  %v3874_v19 = vsel %vm7024_vm1, %v5107_v13, -1e+30  ;;  %v3762_v22 = vpop.f32.mrb[65].mxu0  ;;  %vm7029_vm6 = vcmp.gt.f32.partialorder %v7028_v56, 0.0 }
 0x737   :  { %v4099_v59 = vrot.slane %v4098_v52, 1  ;;  %v4106_v29 = vrot.slane %v4105_v21, 2  ;;  %v4120_v16 = vsel %vm744_vm3, %v3874_v19, -inf  ;;  %v3873_v4 = vsel %vm7025_vm4, %v3762_v22, -1e+30 }
 0x738   :  { %v4199_v34 = vadd.f32 %v6543_v53, %v4091_v23  ;;  %v4113_v3 = vrot.slane %v4112_v38, 4  ;;  %v4119_v39 = vsel %vm744_vm3, %v3873_v4, -inf  ;;  %v4282_v54 = vsel %vm2303_vm11, %v4281_v26, %v4280_v2  ;;  %v7034_v26 = vld [vmem:[#allocation33_spill] sm:$0xff]  ;;  %v2568_v4 = vld [vmem:[%s6822_s7 + $0x58] sm:$0xff] }
 0x739   :  { %v4100_v27 = vmax.f32 %v4098_v52, %v4099_v59  ;;  %v4121_v9 = vmax.f32 %v4119_v39, %v4120_v16  ;;  %v5110_v55 = vpop.f32.mrb[66].mxu0  ;;  %v4107_v28 = vmax.f32 %v4105_v21, %v4106_v29  ;;  %vm7031_vm1 = vcmp.gt.f32.partialorder %v7030_v63, 0.0 }
 0x73a   :  { %v4114_v33 = vmax.f32 %v4112_v38, %v4113_v3  ;;  %v3876_v46 = vsel %vm7026_vm10, %v5110_v55, -1e+30  ;;  %v3772_v41 = vpop.f32.mrb[67].mxu0  ;;  %v4283_v57 = vrot.slane %v4199_v34, 2  ;;  %vm7033_vm4 = vcmp.gt.f32.partialorder %v7032_v11, 0.0 }
 0x73b   :  { %v4122_v48 = vrot.slane %v4121_v9, 4  ;;  %v4129_v5 = vsel %vm744_vm3, %v3876_v46, -inf  ;;  %v3875_v47 = vsel %vm7027_vm5, %v3772_v41, -1e+30  ;;  %v4200_v18 = vadd.f32 %v6543_v53, %v4100_v27 }
 0x73c   :  { %v4115_v51 = vrot.slane %v4114_v33, 2  ;;  %v4128_v40 = vsel %vm744_vm3, %v3875_v47, -inf  ;;  %v4284_v45 = vsel %vm2306_vm0, %v4283_v57, %v4282_v54  ;;  %v4108_v35 = vrot.slane %v4107_v28, 1 }
 0x73d   :  { %v4123_v49 = vmax.f32 %v4121_v9, %v4122_v48  ;;  %v4130_v25 = vmax.f32 %v4128_v40, %v4129_v5  ;;  %v5113_v42 = vpop.f32.mrb[68].mxu0  ;;  %v4285_v37 = vrot.slane %v4200_v18, 1  ;;  %vm7035_vm10 = vcmp.gt.f32.partialorder %v7034_v26, 0.0 }
 0x73e   :  { %v4116_v24 = vmax.f32 %v4114_v33, %v4115_v51  ;;  %v3878_v10 = vsel %vm7029_vm6, %v5113_v42, -1e+30  ;;  %v3782_v32 = vpop.f32.mrb[69].mxu0  ;;  %v4109_v30 = vmax.f32 %v4107_v28, %v4108_v35 }
 0x73f   :  { %v4124_v36 = vrot.slane %v4123_v49, 2  ;;  %v4131_v14 = vrot.slane %v4130_v25, 4  ;;  %v4138_v31 = vsel %vm744_vm3, %v3878_v10, -inf  ;;  %v3877_v60 = vsel %vm7031_vm1, %v3782_v32, -1e+30 }
 0x740   :  { %v4117_v44 = vrot.slane %v4116_v24, 1  ;;  %v4286_v20 = vsel %vm2309_vm9, %v4285_v37, %v4284_v45  ;;  %v4137_v6 = vsel %vm744_vm3, %v3877_v60, -inf  ;;  %v4201_v59 = vadd.f32 %v6543_v53, %v4109_v30 }
 0x741   :  { %v4125_v8 = vmax.f32 %v4123_v49, %v4124_v36  ;;  %v4132_v17 = vmax.f32 %v4130_v25, %v4131_v14  ;;  %5134 = vmatprep.mubr.msk.f32.mxu1 %vm744_vm3, %v4286_v20  ;;  %v5116_v50 = vpop.f32.mrb[70].mxu0  ;;  %v4139_v58 = vmax.f32 %v4137_v6, %v4138_v31 }
 0x742   :  { %v4118_v61 = vmax.f32 %v4116_v24, %v4117_v44  ;;  %v3880_v43 = vsel %vm7033_vm4, %v5116_v50, -1e+30  ;;  %v3792_v62 = vpop.f32.mrb[71].mxu0  ;;  %v7039_v24 = vld [vmem:[#allocation38_spill] sm:$0xff] }
 0x743   :  { %v4126_v0 = vrot.slane %v4125_v8, 1  ;;  %v4133_v15 = vrot.slane %v4132_v17, 2  ;;  %v4147_v2 = vsel %vm744_vm3, %v3880_v43, -inf  ;;  %v3879_v52 = vsel %vm7035_vm10, %v3792_v62, -1e+30 }
 0x744   :  { %v4202_v21 = vadd.f32 %v6543_v53, %v4118_v61  ;;  %v4140_v1 = vrot.slane %v4139_v58, 4  ;;  %v4146_v13 = vsel %vm744_vm3, %v3879_v52, -inf }
 0x745   :  { %v4127_v23 = vmax.f32 %v4125_v8, %v4126_v0  ;;  %v4134_v38 = vmax.f32 %v4132_v17, %v4133_v15  ;;  %v4148_v19 = vmax.f32 %v4146_v13, %v4147_v2  ;;  %v5119_v22 = vpop.f32.mrb[72].mxu0 }
 0x746   :  { %v4287_v29 = vrot.slane %v4202_v21, 7  ;;  %v4141_v16 = vmax.f32 %v4139_v58, %v4140_v1  ;;  %v3882_v34 = vsel %vm1735_vm8, %v5119_v22, -1e+30  ;;  %v3802_v3 = vpop.f32.mrb[73].mxu0  ;;  %vm7040_vm8 = vcmp.gt.f32.partialorder %v7039_v24, 0.0 }
 0x747   :  { %v4203_v39 = vadd.f32 %v6543_v53, %v4127_v23  ;;  %v4135_v54 = vrot.slane %v4134_v38, 1  ;;  %v4149_v27 = vrot.slane %v4148_v19, 4  ;;  %v4156_v9 = vsel %vm744_vm3, %v3882_v34, -inf }
 0x748   :  { %v4288_v55 = vsel %vm2291_vm14, %v4287_v29, %v4201_v59  ;;  %v4142_v28 = vrot.slane %v4141_v16, 2  ;;  %v3881_v46 = vsel %vm1734_vm7, %v3802_v3, -1e+30 }
 0x749   :  { %v4289_v41 = vrot.slane %v4203_v39, 6  ;;  %v4136_v57 = vmax.f32 %v4134_v38, %v4135_v54  ;;  %v4150_v48 = vmax.f32 %v4148_v19, %v4149_v27  ;;  %v4155_v5 = vsel %vm744_vm3, %v3881_v46, -inf  ;;  %v5122_v47 = vpop.f32.mrb[74].mxu0 }
 0x74a   :  { %v4143_v51 = vmax.f32 %v4141_v16, %v4142_v28  ;;  %v4157_v40 = vmax.f32 %v4155_v5, %v4156_v9  ;;  %v3884_v45 = vsel %vm1737_vm2, %v5122_v47, -1e+30  ;;  %v3812_v49 = vpop.f32.mrb[75].mxu0  ;;  %v2567_v16 = vld [vmem:[%s6822_s7 + $0x50] sm:$0xff]  ;;  %s5257_s7 = smov [#allocation2]  }
 0x74b   :  { %v4204_v25 = vadd.f32 %v6543_v53, %v4136_v57  ;;  %v4151_v42 = vrot.slane %v4150_v48, 2  ;;  %v4165_v35 = vsel %vm744_vm3, %v3884_v45, -inf  ;;  %v3883_v56 = vsel %vm7040_vm8, %v3812_v49, -1e+30 }
 0x74c   :  { %v4144_v10 = vrot.slane %v4143_v51, 1  ;;  %v4158_v32 = vrot.slane %v4157_v40, 4  ;;  %v4164_v37 = vsel %vm744_vm3, %v3883_v56, -inf  ;;  %v4290_v36 = vsel %vm2294_vm13, %v4289_v41, %v4288_v55 }
 0x74d   :  { %v4291_v14 = vrot.slane %v4204_v25, 5  ;;  %v4152_v31 = vmax.f32 %v4150_v48, %v4151_v42  ;;  %v4166_v44 = vmax.f32 %v4164_v37, %v4165_v35  ;;  %v5211_v34 = vpack.c.bf16 %v2568_v4, %v2567_v16 }
 0x74e   :  { %v4145_v63 = vmax.f32 %v4143_v51, %v4144_v10  ;;  %v4159_v60 = vmax.f32 %v4157_v40, %v4158_v32 }
 0x74f   :  { %v4153_v20 = vrot.slane %v4152_v31, 1  ;;  %v4167_v8 = vrot.slane %v4166_v44, 4  ;;  %v4292_v17 = vsel %vm2297_vm15, %v4291_v14, %v4290_v36  ;;  %5212 = vmatprep.subr.bf16.mxu1 %v5211_v34 }
 0x750   :  { %v4205_v6 = vadd.f32 %v6543_v53, %v4145_v63  ;;  %v4160_v50 = vrot.slane %v4159_v60, 2  ;;  %5214 = vmatpush3.bf16.msra.mxu1 %v5211_v34 }
 0x751   :  { %v4154_v30 = vmax.f32 %v4152_v31, %v4153_v20  ;;  %v4168_v61 = vmax.f32 %v4166_v44, %v4167_v8 }
 0x752   :  { %v4293_v58 = vrot.slane %v4205_v6, 4  ;;  %v4161_v11 = vmax.f32 %v4159_v60, %v4160_v50 }
 0x753   :  { %v4206_v43 = vadd.f32 %v6543_v53, %v4154_v30  ;;  %v4169_v62 = vrot.slane %v4168_v61, 2 }
 0x754   :  { %v4162_v0 = vrot.slane %v4161_v11, 1  ;;  %v4294_v15 = vsel %vm2300_vm12, %v4293_v58, %v4292_v17 }
 0x755   :  { %v4295_v2 = vrot.slane %v4206_v43, 3  ;;  %v4170_v26 = vmax.f32 %v4168_v61, %v4169_v62 }
 0x756   :  { %v4163_v52 = vmax.f32 %v4161_v11, %v4162_v0 }
 0x757   :  { %v4171_v21 = vrot.slane %v4170_v26, 1  ;;  %v4296_v1 = vsel %vm2303_vm11, %v4295_v2, %v4294_v15 }
 0x758   :  { %v4207_v13 = vadd.f32 %v6543_v53, %v4163_v52 }
 0x759   :  { %v4172_v23 = vmax.f32 %v4170_v26, %v4171_v21 }
 0x75a   :  { %v4297_v38 = vrot.slane %v4207_v13, 2 }
 0x75b   :  { %v4208_v19 = vadd.f32 %v6543_v53, %v4172_v23  ;;  %v5228_v53 = vld [vmem:[%s6823_s8] sm:$0xf]  ;;  %s4508_s8 = sshll.u32 %s5257_s7, 4  ;;  %s4509_s8 = int_to_ptr.vmem [resolvable:$true] %s4508_s8 }
 0x75c   :  { %v4298_v22 = vsel %vm2306_vm0, %v4297_v38, %v4296_v1  ;;  %v4212_v3 = vrot.slane %v5228_v53, %v5489_v7  ;;  %v4401_v7 = vrot.slane %v5228_v53, %v5501_v12  ;;  %s5229_s1 = scalar_lea.vmem %s4509_s8, 512  ;;  %p5234_p1 = scmp.lt.s32.totalorder %s4509_s8, %s4509_s8 }
 0x75d   :  { %v4299_v59 = vrot.slane %v4208_v19, 1  ;;  %p5230_p0 = scmp.ne.s32.totalorder %s4509_s8, %s5229_s1  ;;  %p5235_p2 = scmp.lt.s32.totalorder %s5229_s1, %s5229_s1 }
 0x75f   :  { %v4300_v29 = vsel %vm2309_vm9, %v4299_v59, %v4298_v22  ;;  %p5236_p3 = por %p5235_p2, %p5234_p1 }
 0x760   :  { %5135 = vmatmul.mubr.msk.f32.gmra.mrb[70].mxu1 %vm744_vm3, %v4300_v29 }
 0x761   :  { %p5237_p4 = pnand %p5236_p3, %p5230_p0 }
 0x7f4   :  { %v5133_v39 = vpop.f32.mrb[68].mxu1 }
 0x7f5   :  { %v4381_v54 = vadd.f32 %v5133_v39, %v4212_v3  ;;  %v4375_v27 = vpop.f32.mrb[69].mxu1 }
 0x7f6   :  { %v4376_v9 = vadd.f32 %v4375_v27, %v4212_v3 }
 0x7f7   :  { %v4395_v28 = vmax.f32 %v4381_v54, 0.0 }
 0x7f8   :  { %v4394_v55 = vmax.f32 %v4376_v9, 0.0 }
 0x7fa   :  { %5145 = vmatprep.mubr.msk.f32.mxu1 %vm744_vm3, %v4394_v55 }
 0x7fb   :  { %5146 = vmatmul.mubr.msk.f32.vlgmr.msra.gmra.mrb[72].mxu1 %vm744_vm3, %v4395_v28 }
 0x833   :  { %v5136_v33 = vpop.f32.mrb[70].mxu1 }
 0x834   :  { %v4391_v46 = vadd.f32 %v5136_v33, %v4212_v3  ;;  %v4385_v41 = vpop.f32.mrb[71].mxu1 }
 0x835   :  { %v4386_v57 = vadd.f32 %v4385_v41, %v4212_v3 }
 0x836   :  { %v4397_v5 = vmax.f32 %v4391_v46, 0.0 }
 0x837   :  { %v4396_v48 = vmax.f32 %v4386_v57, 0.0 }
 0x839   :  { %5148 = vmatprep.mubr.msk.f32.mxu1 %vm744_vm3, %v4396_v48 }
 0x83a   :  { %5149 = vmatmul.mubr.msk.f32.gmra.mrb[74].mxu1 %vm744_vm3, %v4397_v5 }
 0x8ce   :  { %v5147_v47 = vpop.f32.mrb[72].mxu1 }
 0x8cf   :  { %v4486_v51 = vadd.f32 %v5147_v47, %v4401_v7  ;;  %v4480_v40 = vpop.f32.mrb[73].mxu1 }
 0x8d0   :  { %v4481_v18 = vadd.f32 %v4480_v40, %v4401_v7 }
 0x8d1   :  { %4500 = vst.msk [vmem:[#allocation2 + $0x8] sm:$0xff] %vm744_vm3, %v4486_v51 }
 0x8d2   :  { %4499 = vst.msk [vmem:[#allocation2] sm:$0xff] %vm744_vm3, %v4481_v18 }
 0x90d   :  { %v5150_v45 = vpop.f32.mrb[74].mxu1 }
 0x90e   :  { %v4496_v49 = vadd.f32 %v5150_v45, %v4401_v7  ;;  %v4490_v25 = vpop.f32.mrb[75].mxu1 }
 0x90f   :  { %v4491_v42 = vadd.f32 %v4490_v25, %v4401_v7 }
 0x910   :  { %4502 = vst.msk [vmem:[#allocation2 + $0x18] sm:$0xff] %vm744_vm3, %v4496_v49 }
 0x911   :  { %4501 = vst.msk [vmem:[#allocation2 + $0x10] sm:$0xff] %vm744_vm3, %v4491_v42 }
 0x912   :  { %5240 = shalt.err (!%p5237_p4)
}
 0x913   :  { %s5241_s22 = scalar_lea.hbm %s6824_s9, 512 }
 0x914   :  { %p5242_p5 = scmp.ne.s32.totalorder %s6824_s9, %s5241_s22  ;;  %p5245_p6 = scmp.lt.u32.totalorder %s5241_s22, %s6824_s9 }
 0x916   :  { %p5247_p7 = pnand %p5245_p6, %p5242_p5 }
 0x918   :  { %5250 = shalt.err (!%p5247_p7)
}
 0x919   :  { %s5258_s27 = smov 128   ;;  %s5259_s2 = smov 8  }
 0x91a   :  { %4514 = dma.vmem_to_hbm [thread:$0]  %s4509_s8, 512, %s6824_s9, [#allocation3], %s5258_s27, %s5258_s27, %s5259_s2  }
 0x91b   :  { %5251 = dma.done.wait [#allocation3], 512  }
 0x91c   :  { %5252 = vsyncadd [#allocation3], 4294966784 }
 0x91d   :  { %4518 = vsyncpa [#allocation3], 1 }

</bundles_post_ra>
